<compile_context>
chip_gen: v6e
topology: v6e:2x2x1
jax: 0.10.0
libtpu: 0.0.40
codegen_flags: <defaults>
</compile_context>

<pallas_src>
import jax
import jax.numpy as jnp
import numpy as np
from jax import lax
from jax.experimental import pallas as pl
from jax.experimental.pallas import tpu as pltpu


# ----------------------------- kernel factory --------------------------------

def _make_block_kernel(*, H, W, TH, cin, cout, has_skip, compute_dtype):
    """Builds the fused residual-block kernel for one (batch, row-tile) step."""

    def pad_w(h):
        # (R, W, C) -> (R, W+2, C) with zero columns (conv W zero-padding).
        z = jnp.zeros((h.shape[0], 1, h.shape[2]), h.dtype)
        return jnp.concatenate([z, h, z], axis=1)

    def row_keep(nrows, start_row):
        # (nrows, 1, 1) bool: True where the global row index lies in [0, H).
        g = lax.broadcasted_iota(jnp.int32, (nrows, 1, 1), 0) + start_row
        return jnp.logical_and(g >= 0, g < H)

    def conv3x3(src, w_ref, b_ref):
        # src:   (R+2, W+2, C)  zero-padded input window, compute_dtype
        # w_ref: (3, 3*C, cout) rows ordered [dx=0 | dx=1 | dx=2] per dy (compute dtype)
        # b_ref: (1, cout) f32
        # returns (R, W, cout) in f32
        r = src.shape[0] - 2
        c = src.shape[2]
        # Fold the 3 dx taps into the contraction axis: 3 W-shifts, one concat,
        # then 3 deep-K (K = 3*C) MXU matmuls over free leading-dim dy slices.
        cat = jnp.concatenate(
            [src[:, 0:W, :], src[:, 1:W + 1, :], src[:, 2:W + 2, :]],
            axis=-1)                                        # (R+2, W, 3*C)
        acc = None
        for dy in range(3):
            lhs = cat[dy:dy + r].reshape(r * W, 3 * c)
            d = jnp.dot(lhs, w_ref[dy], preferred_element_type=jnp.float32)
            acc = d if acc is None else acc + d             # start from dy=0 matmul
        acc = acc + b_ref[...].astype(jnp.float32)
        return acc.reshape(r, W, cout)

    def kernel(xc_ref, xp_ref, xn_ref, w1_ref, b1_ref, w2_ref, b2_ref,
               w3_ref, b3_ref, *rest):
        if has_skip:
            ws_ref, o_ref = rest
        else:
            (o_ref,) = rest

        t = pl.program_id(1)
        r0 = t * TH                            # first output row of this tile

        core = xc_ref[0]                       # (TH, W, cin): rows [r0, r0+TH)
        # Halo rows: only these 3+3 boundary rows can ever be out-of-image, so
        # only they are masked (core rows are always in range).
        top = xp_ref[0, 5:8]                   # rows [r0-3, r0)
        bot = xn_ref[0, 0:3]                   # rows [r0+TH, r0+TH+3)
        top = jnp.where(row_keep(3, r0 - 3), top, 0.0)
        bot = jnp.where(row_keep(3, r0 + TH), bot, 0.0)
        # Cast ONCE to the MXU operand dtype before pad/concat (halves the
        # relayout traffic vs per-dy casts inside the matmul loop).
        xwin = jnp.concatenate(
            [top.astype(compute_dtype), core.astype(compute_dtype),
             bot.astype(compute_dtype)], axis=0)            # (TH+6, W, cin)

        # conv1; ReLU fused with the phantom-row mask so conv2 sees exactly the
        # reference zero padding (one select; no-op rows ride in MXU slack).
        h1 = conv3x3(pad_w(xwin), w1_ref, b1_ref)           # (TH+4, W, cout) f32
        h1 = jnp.where(row_keep(TH + 4, r0 - 2), jnp.maximum(h1, 0.0), 0.0)
        h1 = h1.astype(compute_dtype)

        # conv2; same fused ReLU + phantom-row mask.
        h2 = conv3x3(pad_w(h1), w2_ref, b2_ref)             # (TH+2, W, cout) f32
        h2 = jnp.where(row_keep(TH + 2, r0 - 1), jnp.maximum(h2, 0.0), 0.0)
        h2 = h2.astype(compute_dtype)

        # conv3 (all output rows are in [0, H): no mask; ReLU comes after skip).
        h3 = conv3x3(pad_w(h2), w3_ref, b3_ref)             # (TH, W, cout) f32

        if has_skip:
            skip = jnp.dot(core.reshape(TH * W, cin).astype(compute_dtype),
                           ws_ref[...],
                           preferred_element_type=jnp.float32
                           ).reshape(TH, W, cout)
        else:
            skip = core.astype(jnp.float32)    # identity skip (cin == cout), exact f32

        out = jnp.maximum(h3 + skip, 0.0)                   # fuse = ReLU
        # Lane-dense store: (TH, W*cout) instead of narrow cout-lane stores.
        o_ref[0] = out.reshape(TH, W * cout).astype(o_ref.dtype)

    return kernel


# ----------------------- VMEM budgeting & tile selection ----------------------

def _round_up(x, m):
    return (x + m - 1) // m * m


def _padded_elems(shape):
    """Elements a buffer occupies in VMEM after (sublane=8, lane=128) padding."""
    s = list(shape)
    if not s:
        return 1
    s[-1] = _round_up(s[-1], 128)
    if len(s) >= 2:
        s[-2] = _round_up(s[-2], 8)
    n = 1
    for d in s:
        n *= d
    return n


def _vmem_budget_bytes():
    """~85% of this generation's VMEM (v5e/v6e: 128 MiB, v7x: 64 MiB per core)."""
    try:
        cap = int(pltpu.get_tpu_info().vmem_capacity_bytes)
    except Exception:
        cap = 64 * 1024 * 1024            # conservative fallback (v7x-sized)
    return max(int(0.85 * cap), 16 * 1024 * 1024)


def _estimate_vmem_bytes(TH, W, cin, cout, cdt_bytes):
    """Padding-aware upper bound on the kernel's per-step VMEM footprint."""
    f32 = 4
    # Pipelined I/O blocks (double-buffered by Pallas), f32 in HBM.
    est = 2 * f32 * _padded_elems((TH, W, cin))             # core row tile
    est += 2 * 2 * f32 * _padded_elems((8, W, cin))         # prev / next halos
    est += 2 * f32 * _padded_elems((TH, W * cout))          # lane-dense output
    # Weights (compute dtype) + biases (f32), double-buffered.
    est += 2 * cdt_bytes * (_padded_elems((3, 3 * cin, cout))
                            + 2 * _padded_elems((3, 3 * cout, cout))
                            + _padded_elems((cin, cout)))
    est += 2 * f32 * 3 * _padded_elems((1, cout))

    # In-kernel intermediates (conservatively summed rather than max'd).
    def conv_tmp(rows, c):
        return (cdt_bytes * _padded_elems((rows, W + 2, c))      # W-padded window
                + cdt_bytes * _padded_elems((rows, W, 3 * c))    # dx-concat slab
                + f32 * _padded_elems(((rows - 2) * W, cout)))   # f32 accumulator

    est += (cdt_bytes * _padded_elems((TH + 6, W, cin))          # xwin
            + conv_tmp(TH + 6, cin)
            + (f32 + cdt_bytes) * _padded_elems((TH + 4, W, cout))   # h1
            + conv_tmp(TH + 4, cout)
            + (f32 + cdt_bytes) * _padded_elems((TH + 2, W, cout))   # h2
            + conv_tmp(TH + 2, cout)
            + 3 * f32 * _padded_elems((TH, W, cout)))                # h3/skip/out
    return int(1.25 * est)    # scheduling / relayout slack


def _pick_tile_h(H, W, cin, cout, cdt_bytes, budget, want_split):
    """Largest row tile (multiple of 8, divides H, <= 256) fitting the budget.
    If want_split (N == 1), keep >= 2 tiles so both v7x TensorCores get work."""
    cands = [th for th in range(8, min(H, 256) + 1, 8)
             if H % th == 0
             and _estimate_vmem_bytes(th, W, cin, cout, cdt_bytes) <= budget]
    if not cands:
        return 8
    if want_split:
        split = [th for th in cands if H // th >= 2]
        if split:
            cands = split
    return max(cands)


# ------------------------------- wrapper --------------------------------------

def block_forward(x_nchw, kparams, *, tile_h=None, compute_dtype=jnp.bfloat16):
    """x_nchw: (N, Cin, H, W) float32 -> (N, Cout, H, W) float32.

    compute_dtype is the MXU operand dtype (accumulation is always f32):
    bfloat16 (default, v5e/v6e/v7x MXU throughput) or float32 for exactness.
    """
    N, Cin, H, W = x_nchw.shape
    Cout = int(kparams["b1"].shape[-1])
    has_skip = kparams.get("wskip", None) is not None
    assert has_skip or Cin == Cout, "identity skip requires n_in == n_out"

    # TODO(synk): support H not a multiple of 8 via a masked partial last row-tile.
    assert H % 8 == 0 and H >= 8, "H must be a multiple of 8"

    cdt_bytes = jnp.dtype(compute_dtype).itemsize
    budget = _vmem_budget_bytes()
    if tile_h is None:
        TH = _pick_tile_h(H, W, Cin, Cout, cdt_bytes, budget, want_split=(N == 1))
    else:
        TH = int(tile_h)
    assert TH % 8 == 0 and H % TH == 0, "tile_h must be a multiple of 8 dividing H"
    nt = H // TH
    hb = TH // 8
    nb8 = H // 8

    need = _estimate_vmem_bytes(TH, W, Cin, Cout, cdt_bytes)
    vmem_limit = int(min(budget, max(32 * 1024 * 1024, 2 * need)))

    x = jnp.transpose(x_nchw, (0, 2, 3, 1))   # NHWC; zero-padding handled in-kernel

    # Pre-cast matmul weights to the compute dtype (halves weight DMA, removes
    # per-step in-kernel casts).  Biases stay f32 for the accumulator add.
    w1 = kparams["w1"].astype(compute_dtype)
    w2 = kparams["w2"].astype(compute_dtype)
    w3 = kparams["w3"].astype(compute_dtype)
    b1 = kparams["b1"].astype(jnp.float32)
    b2 = kparams["b2"].astype(jnp.float32)
    b3 = kparams["b3"].astype(jnp.float32)
    ws = kparams["wskip"].astype(compute_dtype) if has_skip else None

    def full_spec(shape):
        nd = len(shape)
        return pl.BlockSpec(shape, lambda n, t: (0,) * nd)

    in_specs = [
        # current row tile
        pl.BlockSpec((1, TH, W, Cin), lambda n, t: (n, t, 0, 0)),
        # previous 8-row block (halo above), clamped at the top edge
        pl.BlockSpec((1, 8, W, Cin),
                     lambda n, t: (n, jnp.maximum(t * hb - 1, 0), 0, 0)),
        # next 8-row block (halo below), clamped at the bottom edge
        pl.BlockSpec((1, 8, W, Cin),
                     lambda n, t: (n, jnp.minimum((t + 1) * hb, nb8 - 1), 0, 0)),
        full_spec(w1.shape), full_spec(b1.shape),
        full_spec(w2.shape), full_spec(b2.shape),
        full_spec(w3.shape), full_spec(b3.shape),
    ]
    args = [x, x, x, w1, b1, w2, b2, w3, b3]
    if has_skip:
        in_specs.append(full_spec(ws.shape))
        args.append(ws)

    kernel = _make_block_kernel(H=H, W=W, TH=TH, cin=Cin, cout=Cout,
                                has_skip=has_skip, compute_dtype=compute_dtype)

    out = pl.pallas_call(
        kernel,
        out_shape=jax.ShapeDtypeStruct((N, H, W * Cout), x.dtype),
        grid_spec=pltpu.PrefetchScalarGridSpec(
            num_scalar_prefetch=0,
            grid=(N, nt),
            in_specs=in_specs,
            out_specs=pl.BlockSpec((1, TH, W * Cout), lambda n, t: (n, t, 0)),
        ),
        compiler_params=pltpu.CompilerParams(
            dimension_semantics=("parallel", "parallel"),
            vmem_limit_bytes=vmem_limit,
        ),
    )(*args)

    out = out.reshape(N, H, W, Cout)
    return jnp.transpose(out, (0, 3, 1, 2))   # back to NCHW


# ----------------------- deterministic parameter setup -----------------------

def init_params(key, n_in, n_out):
    """Returns (torch-layout params for the reference, kernel-layout params)."""
    ks = jax.random.split(key, 7)
    scale = 0.1

    w1 = scale * jax.random.normal(ks[0], (n_out, n_in, 3, 3), jnp.float32)
    b1 = scale * jax.random.normal(ks[1], (n_out,), jnp.float32)
    w2 = scale * jax.random.normal(ks[2], (n_out, n_out, 3, 3), jnp.float32)
    b2 = scale * jax.random.normal(ks[3], (n_out,), jnp.float32)
    w3 = scale * jax.random.normal(ks[4], (n_out, n_out, 3, 3), jnp.float32)
    b3 = scale * jax.random.normal(ks[5], (n_out,), jnp.float32)
    wskip = (scale * jax.random.normal(ks[6], (n_out, n_in, 1, 1), jnp.float32)
             if n_in != n_out else None)

    torch_p = dict(w1=w1, b1=b1, w2=w2, b2=b2, w3=w3, b3=b3, wskip=wskip)

    def to_kernel_w(w_oihw):
        # OIHW -> (ky, kx, Cin, Cout) -> (3, 3*Cin, Cout); rows per dy are
        # ordered [dx=0 | dx=1 | dx=2] to match the in-kernel dx concat.
        cout, cin = w_oihw.shape[0], w_oihw.shape[1]
        return jnp.transpose(w_oihw, (2, 3, 1, 0)).reshape(3, 3 * cin, cout)

    kernel_p = dict(
        w1=to_kernel_w(w1), b1=b1[None, :],
        w2=to_kernel_w(w2), b2=b2[None, :],
        w3=to_kernel_w(w3), b3=b3[None, :],
        wskip=(jnp.transpose(wskip[:, :, 0, 0], (1, 0))   # (Cin, Cout)
               if wskip is not None else None),
    )
    return torch_p, kernel_p


# ------------------------------ pure-JAX reference ---------------------------

def _conv2d_ref(x, w, b=None, pad=1):
    y = lax.conv_general_dilated(
        x, w, window_strides=(1, 1), padding=[(pad, pad), (pad, pad)],
        dimension_numbers=("NCHW", "OIHW", "NCHW"))
    if b is not None:
        y = y + b[None, :, None, None]
    return y


def block_ref(x, p):
    h = jax.nn.relu(_conv2d_ref(x, p["w1"], p["b1"]))
    h = jax.nn.relu(_conv2d_ref(h, p["w2"], p["b2"]))
    h = _conv2d_ref(h, p["w3"], p["b3"])
    s = x if p["wskip"] is None else _conv2d_ref(x, p["wskip"], None, pad=0)
    return jax.nn.relu(h + s)


# ------------------------------------ main ------------------------------------

if __name__ == "__main__":
    key = jax.random.PRNGKey(0)
    k1, k2, k3, k4 = jax.random.split(key, 4)

    # Case 1: n_in != n_out (1x1-conv skip), 4 row tiles (edge + interior tiles),
    # exact f32 matmul operands -> tight tolerances.
    N, n_in, n_out, H, W = 1, 4, 8, 32, 16
    x = jax.random.normal(k1, (N, n_in, H, W), jnp.float32)     # NCHW like PyTorch
    torch_p, kernel_p = init_params(k2, n_in, n_out)
    y = jax.block_until_ready(
        block_forward(x, kernel_p, tile_h=8, compute_dtype=jnp.float32))
    y_ref = jax.block_until_ready(block_ref(x, torch_p))
    np.testing.assert_allclose(np.asarray(y), np.asarray(y_ref),
                               rtol=1e-4, atol=1e-4)

    # Case 2: n_in == n_out (identity skip), auto tile pick, f32 operands.
    n_in2 = n_out2 = 8
    x2 = jax.random.normal(k3, (2, n_in2, 16, 16), jnp.float32)
    torch_p2, kernel_p2 = init_params(k4, n_in2, n_out2)
    y2 = jax.block_until_ready(
        block_forward(x2, kernel_p2, compute_dtype=jnp.float32))
    y2_ref = jax.block_until_ready(block_ref(x2, torch_p2))
    np.testing.assert_allclose(np.asarray(y2), np.asarray(y2_ref),
                               rtol=1e-4, atol=1e-4)

    # Case 3: default bf16 matmul operands (f32 accumulation) — the fast MXU
    # path for v5e/v6e/v7x; tolerances loosened for bf16 operand rounding.
    y3 = jax.block_until_ready(block_forward(x, kernel_p))
    np.testing.assert_allclose(np.asarray(y3), np.asarray(y_ref),
                               rtol=1e-1, atol=1e-1)

    print("KERNEL_OK")
</pallas_src>

<mosaic_0001>
module attributes {stable_mosaic.version = 11 : i64} {
  func.func @kernel(%arg0: i32, %arg1: i32, %arg2: memref<1x8x16x4xf32, #tpu.memory_space<vmem>>, %arg3: memref<1x8x16x4xf32, #tpu.memory_space<vmem>>, %arg4: memref<1x8x16x4xf32, #tpu.memory_space<vmem>>, %arg5: memref<3x12x8xf32, #tpu.memory_space<vmem>>, %arg6: memref<1x8xf32, #tpu.memory_space<vmem>>, %arg7: memref<3x24x8xf32, #tpu.memory_space<vmem>>, %arg8: memref<1x8xf32, #tpu.memory_space<vmem>>, %arg9: memref<3x24x8xf32, #tpu.memory_space<vmem>>, %arg10: memref<1x8xf32, #tpu.memory_space<vmem>>, %arg11: memref<4x8xf32, #tpu.memory_space<vmem>>, %arg12: memref<1x8x128xf32, #tpu.memory_space<vmem>>) attributes {dimension_semantics = [#tpu.dimension_semantics<parallel>, #tpu.dimension_semantics<parallel>], iteration_bounds = array<i64: 1, 4>, scalar_prefetch = 0 : i64, scratch_operands = 0 : i64, tpu.core_type = #tpu.core_type<tc>, window_params = [{transform_indices = @transform_0, window_bounds = array<i64: 1, 8, 16, 4>}, {transform_indices = @transform_1, window_bounds = array<i64: 1, 8, 16, 4>}, {transform_indices = @transform_2, window_bounds = array<i64: 1, 8, 16, 4>}, {pipeline_mode = #tpu.pipeline_mode<synchronous>, transform_indices = @transform_3, window_bounds = array<i64: 3, 12, 8>}, {pipeline_mode = #tpu.pipeline_mode<synchronous>, transform_indices = @transform_4, window_bounds = array<i64: 1, 8>}, {pipeline_mode = #tpu.pipeline_mode<synchronous>, transform_indices = @transform_5, window_bounds = array<i64: 3, 24, 8>}, {pipeline_mode = #tpu.pipeline_mode<synchronous>, transform_indices = @transform_6, window_bounds = array<i64: 1, 8>}, {pipeline_mode = #tpu.pipeline_mode<synchronous>, transform_indices = @transform_7, window_bounds = array<i64: 3, 24, 8>}, {pipeline_mode = #tpu.pipeline_mode<synchronous>, transform_indices = @transform_8, window_bounds = array<i64: 1, 8>}, {pipeline_mode = #tpu.pipeline_mode<synchronous>, transform_indices = @transform_9, window_bounds = array<i64: 4, 8>}, {transform_indices = @transform_10, window_bounds = array<i64: 1, 8, 128>}]} {
    %c8_i32 = arith.constant 8 : i32
    %0 = arith.muli %arg1, %c8_i32 : i32
    %c0 = arith.constant 0 : index
    %c0_0 = arith.constant 0 : index
    %c0_1 = arith.constant 0 : index
    %c0_2 = arith.constant 0 : index
    %1 = vector.load %arg2[%c0, %c0_0, %c0_1, %c0_2] : memref<1x8x16x4xf32, #tpu.memory_space<vmem>>, vector<1x8x16x4xf32>
    %2 = vector.shape_cast %1 : vector<1x8x16x4xf32> to vector<8x16x4xf32>
    %c0_3 = arith.constant 0 : index
    %c5 = arith.constant 5 : index
    %c0_4 = arith.constant 0 : index
    %c0_5 = arith.constant 0 : index
    %3 = vector.load %arg3[%c0_3, %c5, %c0_4, %c0_5] : memref<1x8x16x4xf32, #tpu.memory_space<vmem>>, vector<1x3x16x4xf32>
    %4 = vector.shape_cast %3 : vector<1x3x16x4xf32> to vector<3x16x4xf32>
    %c0_6 = arith.constant 0 : index
    %c0_7 = arith.constant 0 : index
    %c0_8 = arith.constant 0 : index
    %c0_9 = arith.constant 0 : index
    %5 = vector.load %arg4[%c0_6, %c0_7, %c0_8, %c0_9] : memref<1x8x16x4xf32, #tpu.memory_space<vmem>>, vector<1x3x16x4xf32>
    %6 = vector.shape_cast %5 : vector<1x3x16x4xf32> to vector<3x16x4xf32>
    %c3_i32 = arith.constant 3 : i32
    %7 = arith.subi %0, %c3_i32 : i32
    %8 = tpu.iota {dimensions = array<i32: 0>} : vector<3x1x1xi32>
    %9 = vector.broadcast %7 : i32 to vector<3x1x1xi32>
    %10 = arith.addi %8, %9 : vector<3x1x1xi32>
    %c0_i32 = arith.constant 0 : i32
    %11 = vector.broadcast %c0_i32 : i32 to vector<3x1x1xi32>
    %12 = arith.cmpi sge, %10, %11 : vector<3x1x1xi32>
    %c32_i32 = arith.constant 32 : i32
    %13 = vector.broadcast %c32_i32 : i32 to vector<3x1x1xi32>
    %14 = arith.cmpi slt, %10, %13 : vector<3x1x1xi32>
    %15 = arith.andi %12, %14 : vector<3x1x1xi1>
    %cst = arith.constant 0.000000e+00 : f32
    %16 = vector.shape_cast %15 : vector<3x1x1xi1> to vector<3x1x1xi1>
    %17 = vector.broadcast %16 : vector<3x1x1xi1> to vector<3x16x4xi1>
    %18 = vector.broadcast %cst : f32 to vector<3x16x4xf32>
    %19 = arith.select %17, %4, %18 : vector<3x16x4xi1>, vector<3x16x4xf32>
    %c8_i32_10 = arith.constant 8 : i32
    %20 = arith.addi %0, %c8_i32_10 : i32
    %21 = tpu.iota {dimensions = array<i32: 0>} : vector<3x1x1xi32>
    %22 = vector.broadcast %20 : i32 to vector<3x1x1xi32>
    %23 = arith.addi %21, %22 : vector<3x1x1xi32>
    %c0_i32_11 = arith.constant 0 : i32
    %24 = vector.broadcast %c0_i32_11 : i32 to vector<3x1x1xi32>
    %25 = arith.cmpi sge, %23, %24 : vector<3x1x1xi32>
    %c32_i32_12 = arith.constant 32 : i32
    %26 = vector.broadcast %c32_i32_12 : i32 to vector<3x1x1xi32>
    %27 = arith.cmpi slt, %23, %26 : vector<3x1x1xi32>
    %28 = arith.andi %25, %27 : vector<3x1x1xi1>
    %cst_13 = arith.constant 0.000000e+00 : f32
    %29 = vector.shape_cast %28 : vector<3x1x1xi1> to vector<3x1x1xi1>
    %30 = vector.broadcast %29 : vector<3x1x1xi1> to vector<3x16x4xi1>
    %31 = vector.broadcast %cst_13 : f32 to vector<3x16x4xf32>
    %32 = arith.select %30, %6, %31 : vector<3x16x4xi1>, vector<3x16x4xf32>
    %33 = tpu.concatenate %19, %2, %32 in 0 : vector<3x16x4xf32>, vector<8x16x4xf32>, vector<3x16x4xf32> -> vector<14x16x4xf32>
    %cst_14 = arith.constant 0.000000e+00 : f32
    %34 = vector.broadcast %cst_14 : f32 to vector<14x1x4xf32>
    %35 = tpu.concatenate %34, %33, %34 in 1 : vector<14x1x4xf32>, vector<14x16x4xf32>, vector<14x1x4xf32> -> vector<14x18x4xf32>
    %36 = vector.extract_strided_slice %35 {offsets = [0, 0, 0], sizes = [14, 16, 4], strides = [1, 1, 1]} : vector<14x18x4xf32> to vector<14x16x4xf32>
    %37 = vector.extract_strided_slice %35 {offsets = [0, 1, 0], sizes = [14, 16, 4], strides = [1, 1, 1]} : vector<14x18x4xf32> to vector<14x16x4xf32>
    %38 = vector.extract_strided_slice %35 {offsets = [0, 2, 0], sizes = [14, 16, 4], strides = [1, 1, 1]} : vector<14x18x4xf32> to vector<14x16x4xf32>
    %39 = tpu.concatenate %36, %37, %38 in 2 : vector<14x16x4xf32>, vector<14x16x4xf32>, vector<14x16x4xf32> -> vector<14x16x12xf32>
    %40 = vector.extract_strided_slice %39 {offsets = [0, 0, 0], sizes = [12, 16, 12], strides = [1, 1, 1]} : vector<14x16x12xf32> to vector<12x16x12xf32>
    %41 = vector.shape_cast %40 : vector<12x16x12xf32> to vector<192x12xf32>
    %c0_15 = arith.constant 0 : index
    %c0_16 = arith.constant 0 : index
    %c0_17 = arith.constant 0 : index
    %42 = vector.load %arg5[%c0_15, %c0_16, %c0_17] : memref<3x12x8xf32, #tpu.memory_space<vmem>>, vector<1x12x8xf32>
    %43 = vector.shape_cast %42 : vector<1x12x8xf32> to vector<12x8xf32>
    %cst_18 = arith.constant dense<0.000000e+00> : vector<192x8xf32>
    %44 = tpu.matmul %41, %43, %cst_18 {dimension_numbers = #tpu.dot_dimension_numbers<[1], [0], [0], [1], [0, 0, 1, 1], [], []>} : vector<192x12xf32>, vector<12x8xf32>, vector<192x8xf32> -> vector<192x8xf32>
    %45 = vector.extract_strided_slice %39 {offsets = [1, 0, 0], sizes = [12, 16, 12], strides = [1, 1, 1]} : vector<14x16x12xf32> to vector<12x16x12xf32>
    %46 = vector.shape_cast %45 : vector<12x16x12xf32> to vector<192x12xf32>
    %c1 = arith.constant 1 : index
    %c0_19 = arith.constant 0 : index
    %c0_20 = arith.constant 0 : index
    %47 = vector.load %arg5[%c1, %c0_19, %c0_20] : memref<3x12x8xf32, #tpu.memory_space<vmem>>, vector<1x12x8xf32>
    %48 = vector.shape_cast %47 : vector<1x12x8xf32> to vector<12x8xf32>
    %cst_21 = arith.constant dense<0.000000e+00> : vector<192x8xf32>
    %49 = tpu.matmul %46, %48, %cst_21 {dimension_numbers = #tpu.dot_dimension_numbers<[1], [0], [0], [1], [0, 0, 1, 1], [], []>} : vector<192x12xf32>, vector<12x8xf32>, vector<192x8xf32> -> vector<192x8xf32>
    %50 = arith.addf %44, %49 : vector<192x8xf32>
    %51 = vector.extract_strided_slice %39 {offsets = [2, 0, 0], sizes = [12, 16, 12], strides = [1, 1, 1]} : vector<14x16x12xf32> to vector<12x16x12xf32>
    %52 = vector.shape_cast %51 : vector<12x16x12xf32> to vector<192x12xf32>
    %c2 = arith.constant 2 : index
    %c0_22 = arith.constant 0 : index
    %c0_23 = arith.constant 0 : index
    %53 = vector.load %arg5[%c2, %c0_22, %c0_23] : memref<3x12x8xf32, #tpu.memory_space<vmem>>, vector<1x12x8xf32>
    %54 = vector.shape_cast %53 : vector<1x12x8xf32> to vector<12x8xf32>
    %cst_24 = arith.constant dense<0.000000e+00> : vector<192x8xf32>
    %55 = tpu.matmul %52, %54, %cst_24 {dimension_numbers = #tpu.dot_dimension_numbers<[1], [0], [0], [1], [0, 0, 1, 1], [], []>} : vector<192x12xf32>, vector<12x8xf32>, vector<192x8xf32> -> vector<192x8xf32>
    %56 = arith.addf %50, %55 : vector<192x8xf32>
    %c0_25 = arith.constant 0 : index
    %c0_26 = arith.constant 0 : index
    %57 = vector.load %arg6[%c0_25, %c0_26] : memref<1x8xf32, #tpu.memory_space<vmem>>, vector<1x8xf32>
    %58 = vector.broadcast %57 : vector<1x8xf32> to vector<192x8xf32>
    %59 = arith.addf %56, %58 : vector<192x8xf32>
    %60 = vector.shape_cast %59 : vector<192x8xf32> to vector<12x16x8xf32>
    %c2_i32 = arith.constant 2 : i32
    %61 = arith.subi %0, %c2_i32 : i32
    %62 = tpu.iota {dimensions = array<i32: 0>} : vector<12x1x1xi32>
    %63 = vector.broadcast %61 : i32 to vector<12x1x1xi32>
    %64 = arith.addi %62, %63 : vector<12x1x1xi32>
    %c0_i32_27 = arith.constant 0 : i32
    %65 = vector.broadcast %c0_i32_27 : i32 to vector<12x1x1xi32>
    %66 = arith.cmpi sge, %64, %65 : vector<12x1x1xi32>
    %c32_i32_28 = arith.constant 32 : i32
    %67 = vector.broadcast %c32_i32_28 : i32 to vector<12x1x1xi32>
    %68 = arith.cmpi slt, %64, %67 : vector<12x1x1xi32>
    %69 = arith.andi %66, %68 : vector<12x1x1xi1>
    %cst_29 = arith.constant 0.000000e+00 : f32
    %70 = vector.broadcast %cst_29 : f32 to vector<12x16x8xf32>
    %71 = arith.maximumf %60, %70 : vector<12x16x8xf32>
    %cst_30 = arith.constant 0.000000e+00 : f32
    %72 = vector.shape_cast %69 : vector<12x1x1xi1> to vector<12x1x1xi1>
    %73 = vector.broadcast %72 : vector<12x1x1xi1> to vector<12x16x8xi1>
    %74 = vector.broadcast %cst_30 : f32 to vector<12x16x8xf32>
    %75 = arith.select %73, %71, %74 : vector<12x16x8xi1>, vector<12x16x8xf32>
    %cst_31 = arith.constant 0.000000e+00 : f32
    %76 = vector.broadcast %cst_31 : f32 to vector<12x1x8xf32>
    %77 = tpu.concatenate %76, %75, %76 in 1 : vector<12x1x8xf32>, vector<12x16x8xf32>, vector<12x1x8xf32> -> vector<12x18x8xf32>
    %78 = vector.extract_strided_slice %77 {offsets = [0, 0, 0], sizes = [12, 16, 8], strides = [1, 1, 1]} : vector<12x18x8xf32> to vector<12x16x8xf32>
    %79 = vector.extract_strided_slice %77 {offsets = [0, 1, 0], sizes = [12, 16, 8], strides = [1, 1, 1]} : vector<12x18x8xf32> to vector<12x16x8xf32>
    %80 = vector.extract_strided_slice %77 {offsets = [0, 2, 0], sizes = [12, 16, 8], strides = [1, 1, 1]} : vector<12x18x8xf32> to vector<12x16x8xf32>
    %81 = tpu.concatenate %78, %79, %80 in 2 : vector<12x16x8xf32>, vector<12x16x8xf32>, vector<12x16x8xf32> -> vector<12x16x24xf32>
    %82 = vector.extract_strided_slice %81 {offsets = [0, 0, 0], sizes = [10, 16, 24], strides = [1, 1, 1]} : vector<12x16x24xf32> to vector<10x16x24xf32>
    %83 = vector.shape_cast %82 : vector<10x16x24xf32> to vector<160x24xf32>
    %c0_32 = arith.constant 0 : index
    %c0_33 = arith.constant 0 : index
    %c0_34 = arith.constant 0 : index
    %84 = vector.load %arg7[%c0_32, %c0_33, %c0_34] : memref<3x24x8xf32, #tpu.memory_space<vmem>>, vector<1x24x8xf32>
    %85 = vector.shape_cast %84 : vector<1x24x8xf32> to vector<24x8xf32>
    %cst_35 = arith.constant dense<0.000000e+00> : vector<160x8xf32>
    %86 = tpu.matmul %83, %85, %cst_35 {dimension_numbers = #tpu.dot_dimension_numbers<[1], [0], [0], [1], [0, 0, 1, 1], [], []>} : vector<160x24xf32>, vector<24x8xf32>, vector<160x8xf32> -> vector<160x8xf32>
    %87 = vector.extract_strided_slice %81 {offsets = [1, 0, 0], sizes = [10, 16, 24], strides = [1, 1, 1]} : vector<12x16x24xf32> to vector<10x16x24xf32>
    %88 = vector.shape_cast %87 : vector<10x16x24xf32> to vector<160x24xf32>
    %c1_36 = arith.constant 1 : index
    %c0_37 = arith.constant 0 : index
    %c0_38 = arith.constant 0 : index
    %89 = vector.load %arg7[%c1_36, %c0_37, %c0_38] : memref<3x24x8xf32, #tpu.memory_space<vmem>>, vector<1x24x8xf32>
    %90 = vector.shape_cast %89 : vector<1x24x8xf32> to vector<24x8xf32>
    %cst_39 = arith.constant dense<0.000000e+00> : vector<160x8xf32>
    %91 = tpu.matmul %88, %90, %cst_39 {dimension_numbers = #tpu.dot_dimension_numbers<[1], [0], [0], [1], [0, 0, 1, 1], [], []>} : vector<160x24xf32>, vector<24x8xf32>, vector<160x8xf32> -> vector<160x8xf32>
    %92 = arith.addf %86, %91 : vector<160x8xf32>
    %93 = vector.extract_strided_slice %81 {offsets = [2, 0, 0], sizes = [10, 16, 24], strides = [1, 1, 1]} : vector<12x16x24xf32> to vector<10x16x24xf32>
    %94 = vector.shape_cast %93 : vector<10x16x24xf32> to vector<160x24xf32>
    %c2_40 = arith.constant 2 : index
    %c0_41 = arith.constant 0 : index
    %c0_42 = arith.constant 0 : index
    %95 = vector.load %arg7[%c2_40, %c0_41, %c0_42] : memref<3x24x8xf32, #tpu.memory_space<vmem>>, vector<1x24x8xf32>
    %96 = vector.shape_cast %95 : vector<1x24x8xf32> to vector<24x8xf32>
    %cst_43 = arith.constant dense<0.000000e+00> : vector<160x8xf32>
    %97 = tpu.matmul %94, %96, %cst_43 {dimension_numbers = #tpu.dot_dimension_numbers<[1], [0], [0], [1], [0, 0, 1, 1], [], []>} : vector<160x24xf32>, vector<24x8xf32>, vector<160x8xf32> -> vector<160x8xf32>
    %98 = arith.addf %92, %97 : vector<160x8xf32>
    %c0_44 = arith.constant 0 : index
    %c0_45 = arith.constant 0 : index
    %99 = vector.load %arg8[%c0_44, %c0_45] : memref<1x8xf32, #tpu.memory_space<vmem>>, vector<1x8xf32>
    %100 = vector.broadcast %99 : vector<1x8xf32> to vector<160x8xf32>
    %101 = arith.addf %98, %100 : vector<160x8xf32>
    %102 = vector.shape_cast %101 : vector<160x8xf32> to vector<10x16x8xf32>
    %c1_i32 = arith.constant 1 : i32
    %103 = arith.subi %0, %c1_i32 : i32
    %104 = tpu.iota {dimensions = array<i32: 0>} : vector<10x1x1xi32>
    %105 = vector.broadcast %103 : i32 to vector<10x1x1xi32>
    %106 = arith.addi %104, %105 : vector<10x1x1xi32>
    %c0_i32_46 = arith.constant 0 : i32
    %107 = vector.broadcast %c0_i32_46 : i32 to vector<10x1x1xi32>
    %108 = arith.cmpi sge, %106, %107 : vector<10x1x1xi32>
    %c32_i32_47 = arith.constant 32 : i32
    %109 = vector.broadcast %c32_i32_47 : i32 to vector<10x1x1xi32>
    %110 = arith.cmpi slt, %106, %109 : vector<10x1x1xi32>
    %111 = arith.andi %108, %110 : vector<10x1x1xi1>
    %cst_48 = arith.constant 0.000000e+00 : f32
    %112 = vector.broadcast %cst_48 : f32 to vector<10x16x8xf32>
    %113 = arith.maximumf %102, %112 : vector<10x16x8xf32>
    %cst_49 = arith.constant 0.000000e+00 : f32
    %114 = vector.shape_cast %111 : vector<10x1x1xi1> to vector<10x1x1xi1>
    %115 = vector.broadcast %114 : vector<10x1x1xi1> to vector<10x16x8xi1>
    %116 = vector.broadcast %cst_49 : f32 to vector<10x16x8xf32>
    %117 = arith.select %115, %113, %116 : vector<10x16x8xi1>, vector<10x16x8xf32>
    %cst_50 = arith.constant 0.000000e+00 : f32
    %118 = vector.broadcast %cst_50 : f32 to vector<10x1x8xf32>
    %119 = tpu.concatenate %118, %117, %118 in 1 : vector<10x1x8xf32>, vector<10x16x8xf32>, vector<10x1x8xf32> -> vector<10x18x8xf32>
    %120 = vector.extract_strided_slice %119 {offsets = [0, 0, 0], sizes = [10, 16, 8], strides = [1, 1, 1]} : vector<10x18x8xf32> to vector<10x16x8xf32>
    %121 = vector.extract_strided_slice %119 {offsets = [0, 1, 0], sizes = [10, 16, 8], strides = [1, 1, 1]} : vector<10x18x8xf32> to vector<10x16x8xf32>
    %122 = vector.extract_strided_slice %119 {offsets = [0, 2, 0], sizes = [10, 16, 8], strides = [1, 1, 1]} : vector<10x18x8xf32> to vector<10x16x8xf32>
    %123 = tpu.concatenate %120, %121, %122 in 2 : vector<10x16x8xf32>, vector<10x16x8xf32>, vector<10x16x8xf32> -> vector<10x16x24xf32>
    %124 = vector.extract_strided_slice %123 {offsets = [0, 0, 0], sizes = [8, 16, 24], strides = [1, 1, 1]} : vector<10x16x24xf32> to vector<8x16x24xf32>
    %125 = vector.shape_cast %124 : vector<8x16x24xf32> to vector<128x24xf32>
    %c0_51 = arith.constant 0 : index
    %c0_52 = arith.constant 0 : index
    %c0_53 = arith.constant 0 : index
    %126 = vector.load %arg9[%c0_51, %c0_52, %c0_53] : memref<3x24x8xf32, #tpu.memory_space<vmem>>, vector<1x24x8xf32>
    %127 = vector.shape_cast %126 : vector<1x24x8xf32> to vector<24x8xf32>
    %cst_54 = arith.constant dense<0.000000e+00> : vector<128x8xf32>
    %128 = tpu.matmul %125, %127, %cst_54 {dimension_numbers = #tpu.dot_dimension_numbers<[1], [0], [0], [1], [0, 0, 1, 1], [], []>} : vector<128x24xf32>, vector<24x8xf32>, vector<128x8xf32> -> vector<128x8xf32>
    %129 = vector.extract_strided_slice %123 {offsets = [1, 0, 0], sizes = [8, 16, 24], strides = [1, 1, 1]} : vector<10x16x24xf32> to vector<8x16x24xf32>
    %130 = vector.shape_cast %129 : vector<8x16x24xf32> to vector<128x24xf32>
    %c1_55 = arith.constant 1 : index
    %c0_56 = arith.constant 0 : index
    %c0_57 = arith.constant 0 : index
    %131 = vector.load %arg9[%c1_55, %c0_56, %c0_57] : memref<3x24x8xf32, #tpu.memory_space<vmem>>, vector<1x24x8xf32>
    %132 = vector.shape_cast %131 : vector<1x24x8xf32> to vector<24x8xf32>
    %cst_58 = arith.constant dense<0.000000e+00> : vector<128x8xf32>
    %133 = tpu.matmul %130, %132, %cst_58 {dimension_numbers = #tpu.dot_dimension_numbers<[1], [0], [0], [1], [0, 0, 1, 1], [], []>} : vector<128x24xf32>, vector<24x8xf32>, vector<128x8xf32> -> vector<128x8xf32>
    %134 = arith.addf %128, %133 : vector<128x8xf32>
    %135 = vector.extract_strided_slice %123 {offsets = [2, 0, 0], sizes = [8, 16, 24], strides = [1, 1, 1]} : vector<10x16x24xf32> to vector<8x16x24xf32>
    %136 = vector.shape_cast %135 : vector<8x16x24xf32> to vector<128x24xf32>
    %c2_59 = arith.constant 2 : index
    %c0_60 = arith.constant 0 : index
    %c0_61 = arith.constant 0 : index
    %137 = vector.load %arg9[%c2_59, %c0_60, %c0_61] : memref<3x24x8xf32, #tpu.memory_space<vmem>>, vector<1x24x8xf32>
    %138 = vector.shape_cast %137 : vector<1x24x8xf32> to vector<24x8xf32>
    %cst_62 = arith.constant dense<0.000000e+00> : vector<128x8xf32>
    %139 = tpu.matmul %136, %138, %cst_62 {dimension_numbers = #tpu.dot_dimension_numbers<[1], [0], [0], [1], [0, 0, 1, 1], [], []>} : vector<128x24xf32>, vector<24x8xf32>, vector<128x8xf32> -> vector<128x8xf32>
    %140 = arith.addf %134, %139 : vector<128x8xf32>
    %c0_63 = arith.constant 0 : index
    %c0_64 = arith.constant 0 : index
    %141 = vector.load %arg10[%c0_63, %c0_64] : memref<1x8xf32, #tpu.memory_space<vmem>>, vector<1x8xf32>
    %142 = vector.broadcast %141 : vector<1x8xf32> to vector<128x8xf32>
    %143 = arith.addf %140, %142 : vector<128x8xf32>
    %144 = vector.shape_cast %143 : vector<128x8xf32> to vector<8x16x8xf32>
    %145 = vector.shape_cast %2 : vector<8x16x4xf32> to vector<128x4xf32>
    %c0_65 = arith.constant 0 : index
    %c0_66 = arith.constant 0 : index
    %146 = vector.load %arg11[%c0_65, %c0_66] : memref<4x8xf32, #tpu.memory_space<vmem>>, vector<4x8xf32>
    %cst_67 = arith.constant dense<0.000000e+00> : vector<128x8xf32>
    %147 = tpu.matmul %145, %146, %cst_67 {dimension_numbers = #tpu.dot_dimension_numbers<[1], [0], [0], [1], [0, 0, 1, 1], [], []>} : vector<128x4xf32>, vector<4x8xf32>, vector<128x8xf32> -> vector<128x8xf32>
    %148 = vector.shape_cast %147 : vector<128x8xf32> to vector<8x16x8xf32>
    %149 = arith.addf %144, %148 : vector<8x16x8xf32>
    %cst_68 = arith.constant 0.000000e+00 : f32
    %150 = vector.broadcast %cst_68 : f32 to vector<8x16x8xf32>
    %151 = arith.maximumf %149, %150 : vector<8x16x8xf32>
    %152 = vector.shape_cast %151 : vector<8x16x8xf32> to vector<8x128xf32>
    %c0_69 = arith.constant 0 : index
    %c0_70 = arith.constant 0 : index
    %c0_71 = arith.constant 0 : index
    %153 = vector.load %arg12[%c0_69, %c0_70, %c0_71] : memref<1x8x128xf32, #tpu.memory_space<vmem>>, vector<1x8x128xf32>
    %154 = vector.shape_cast %153 : vector<1x8x128xf32> to vector<8x128xf32>
    %155 = vector.shape_cast %152 : vector<8x128xf32> to vector<1x8x128xf32>
    tpu.vector_store %arg12[%c0_69, %c0_70, %c0_71], %155 {strides = array<i32>} : memref<1x8x128xf32, #tpu.memory_space<vmem>>, vector<1x8x128xf32>,
    return
  }
  func.func @transform_0(%arg0: i32, %arg1: i32) -> (i32, i32, i32, i32) {
    %c0_i32 = arith.constant 0 : i32
    %c0_i32_0 = arith.constant 0 : i32
    %c0_i32_1 = arith.constant 0 : i32
    return %arg0, %arg1, %c0_i32, %c0_i32_0 : i32, i32, i32, i32
  }
  func.func @transform_1(%arg0: i32, %arg1: i32) -> (i32, i32, i32, i32) {
    %c1_i32 = arith.constant 1 : i32
    %0 = arith.muli %arg1, %c1_i32 : i32
    %c1_i32_0 = arith.constant 1 : i32
    %1 = arith.subi %0, %c1_i32_0 : i32
    %c0_i32 = arith.constant 0 : i32
    %2 = arith.maxsi %1, %c0_i32 : i32
    %c0_i32_1 = arith.constant 0 : i32
    %c0_i32_2 = arith.constant 0 : i32
    %c0_i32_3 = arith.constant 0 : i32
    return %arg0, %2, %c0_i32_1, %c0_i32_2 : i32, i32, i32, i32
  }
  func.func @transform_2(%arg0: i32, %arg1: i32) -> (i32, i32, i32, i32) {
    %c1_i32 = arith.constant 1 : i32
    %0 = arith.addi %arg1, %c1_i32 : i32
    %c1_i32_0 = arith.constant 1 : i32
    %1 = arith.muli %0, %c1_i32_0 : i32
    %c3_i32 = arith.constant 3 : i32
    %2 = arith.minsi %1, %c3_i32 : i32
    %c0_i32 = arith.constant 0 : i32
    %c0_i32_1 = arith.constant 0 : i32
    %c0_i32_2 = arith.constant 0 : i32
    return %arg0, %2, %c0_i32, %c0_i32_1 : i32, i32, i32, i32
  }
  func.func @transform_3(%arg0: i32, %arg1: i32) -> (i32, i32, i32) {
    %c0_i32 = arith.constant 0 : i32
    %c0_i32_0 = arith.constant 0 : i32
    %c0_i32_1 = arith.constant 0 : i32
    %c0_i32_2 = arith.constant 0 : i32
    return %c0_i32, %c0_i32_0, %c0_i32_1 : i32, i32, i32
  }
  func.func @transform_4(%arg0: i32, %arg1: i32) -> (i32, i32) {
    %c0_i32 = arith.constant 0 : i32
    %c0_i32_0 = arith.constant 0 : i32
    %c0_i32_1 = arith.constant 0 : i32
    return %c0_i32, %c0_i32_0 : i32, i32
  }
  func.func @transform_5(%arg0: i32, %arg1: i32) -> (i32, i32, i32) {
    %c0_i32 = arith.constant 0 : i32
    %c0_i32_0 = arith.constant 0 : i32
    %c0_i32_1 = arith.constant 0 : i32
    %c0_i32_2 = arith.constant 0 : i32
    return %c0_i32, %c0_i32_0, %c0_i32_1 : i32, i32, i32
  }
  func.func @transform_6(%arg0: i32, %arg1: i32) -> (i32, i32) {
    %c0_i32 = arith.constant 0 : i32
    %c0_i32_0 = arith.constant 0 : i32
    %c0_i32_1 = arith.constant 0 : i32
    return %c0_i32, %c0_i32_0 : i32, i32
  }
  func.func @transform_7(%arg0: i32, %arg1: i32) -> (i32, i32, i32) {
    %c0_i32 = arith.constant 0 : i32
    %c0_i32_0 = arith.constant 0 : i32
    %c0_i32_1 = arith.constant 0 : i32
    %c0_i32_2 = arith.constant 0 : i32
    return %c0_i32, %c0_i32_0, %c0_i32_1 : i32, i32, i32
  }
  func.func @transform_8(%arg0: i32, %arg1: i32) -> (i32, i32) {
    %c0_i32 = arith.constant 0 : i32
    %c0_i32_0 = arith.constant 0 : i32
    %c0_i32_1 = arith.constant 0 : i32
    return %c0_i32, %c0_i32_0 : i32, i32
  }
  func.func @transform_9(%arg0: i32, %arg1: i32) -> (i32, i32) {
    %c0_i32 = arith.constant 0 : i32
    %c0_i32_0 = arith.constant 0 : i32
    %c0_i32_1 = arith.constant 0 : i32
    return %c0_i32, %c0_i32_0 : i32, i32
  }
  func.func @transform_10(%arg0: i32, %arg1: i32) -> (i32, i32, i32) {
    %c0_i32 = arith.constant 0 : i32
    %c0_i32_0 = arith.constant 0 : i32
    return %arg0, %arg1, %c0_i32 : i32, i32, i32
  }
}

</mosaic_0001>

<bundles_post_ra>
// kernel: tpu_custom_call.1
= control target key start
LH: loop header
LB: loop body
LE: loop exit
PB: predicated region body
PF: predicated region fallthrough
CT: control target
= control target key end

     0   :  { %s8432_s0 = inlined_call_operand.vmem [shape: f32[1,32,16,4], index: 0, kind: input, shape index: {}]   ;;  %s8433_s1 = inlined_call_operand.vmem [shape: f32[1,32,16,4], index: 1, kind: input, shape index: {}]   ;;  %s8434_s2 = inlined_call_operand.vmem [shape: f32[1,32,16,4], index: 2, kind: input, shape index: {}]   ;;  %s8435_s3 = inlined_call_operand.vmem [shape: f32[3,12,8], index: 3, kind: input, shape index: {}]   ;;  %s8436_s4 = inlined_call_operand.vmem [shape: f32[1,8], index: 4, kind: input, shape index: {}]   ;;  %s8437_s5 = inlined_call_operand.vmem [shape: f32[3,24,8], index: 5, kind: input, shape index: {}]   ;;  %s8438_s6 = inlined_call_operand.vmem [shape: f32[1,8], index: 6, kind: input, shape index: {}]   ;;  %s8439_s7 = inlined_call_operand.vmem [shape: f32[3,24,8], index: 7, kind: input, shape index: {}]   ;;  %s8440_s8 = inlined_call_operand.vmem [shape: f32[1,8], index: 8, kind: input, shape index: {}]   ;;  %s8441_s9 = inlined_call_operand.vmem [shape: f32[4,8], index: 9, kind: input, shape index: {}]   ;;  %s8442_s10 = inlined_call_operand.hbm [shape: f32[1,32,128], index: 10, kind: output, shape index: {}]  }
   0x1   :  { %8447 = sst [smem:[#allocation5_spill]] %s8432_s0 }
   0x2   :  { %15 = vsyncpa [#allocation3], 0 }
   0x3   :  { %17 = vsyncpa [#allocation3 + $0x1], 0  ;;  %s5844_s13 = smov 0   ;;  %s5846_s14 = smov 0  }
   0x4   :  { %s5848_s15 = smov 0   ;;  %s5850_s16 = smov 0  }
   0x5   :  { %s5852_s17 = smov 0   ;;  %s5854_s18 = smov 0  }
   0x6 LB: > { %s4780_s19 = sadd.s32 4294967295, %s5768_s18   ;;  %s4781_s20 = sadd.s32 4294967294, %s5768_s18   ;;  %s5768_s18 = sphi %s5854_s18, %s23_s18   ;;  %s5764_s17 = sphi %s5852_s17, %s8603_s17   ;;  %s5760_s16 = sphi %s5850_s16, %s8602_s16   ;;  %s5756_s15 = sphi %s5848_s15, %s8601_s15   ;;  %s5752_s14 = sphi %s5846_s14, %s8600_s14   ;;  %s5748_s13 = sphi %s5844_s13, %s8599_s13  }
   0x7   : > { %s32_s21 = sadd.s32 1, %s5764_s17  ;;  %s287_s22 = sadd.s32 1, %s5756_s15 }
   0x8   : > { %p33_p0 = scmp.ge.s32.totalorder %s32_s21, 4  ;;  %p297_p1 = scmp.ne.s32.totalorder %s5756_s15, %s5752_s14 }
   0x9   : > { %p298_p2 = scmp.eq.s32.totalorder %s4780_s19, 3  ;;  %p303_p3 = scmp.ne.s32.totalorder %s5752_s14, %s5748_s13 }
   0xa   : > { %s8605_s21 = smov (%p33_p0, %s32_s21), 0  ;;  %p304_p5 = scmp.eq.s32.totalorder %s4781_s20, 3 }
   0xb   : > { %p5884_p4 = por %p298_p2, %p297_p1  ;;  %s283_s24 = ssub.s32 %s5764_s17, %s8605_s21 }
   0xc   : > { %p4786_p6 = scmp.ge.s32.totalorder %s5768_s18, 1  ;;  %p285_p7 = scmp.eq.s32.totalorder %s283_s24, 0 }
   0xd   : > { %p5891_p8 = por %p304_p5, %p303_p3  ;;  %p397_p9 = scmp.lt.s32.totalorder %s5768_s18, 5 }
   0xe   : > { %s5897_s26 = scalar_select %p285_p7, %s5756_s15, %s287_s22  }
   0xf   : > { %p398_p10 = pnand %p4786_p6, %p397_p9 }
  0x10   : > { %s5900_s27 = sshll.u32 (!%p398_p10), %s5760_s16, 3  ;;  %s4791_s28 = sadd.s32 (!%p398_p10), 4294967295, %s5760_s16 }
  0x11   : > { %401 = sbr.rel (%p398_p10) target bundleno = 1477 (0x5c5), region = 60  ;;  %p469_p11 = scmp.lt.s32.totalorder (!%p398_p10), %s5900_s27, 31 }
  0x12   : > { %s4805_s29 = sadd.s32 (!%p398_p10), 4294967293, %s5900_s27  ;;  %p478_p12 = scmp.gt.s32.totalorder (!%p398_p10), %s4791_s28, 0 }
  0x13   : > { %s8450_s0 = sld [smem:[#allocation5_spill]] (!%p398_p10)  ;;  %s5770_s24 = smov (!%p398_p10), 4  }
  0x14   : > { %s5771_s12 = smov (!%p398_p10), 8   ;;  %s494_s19 = sadd.s32 (!%p398_p10), 1, %s5760_s16 }
  0x15   : > { %p6062_p0 = scmp.lt.s32.totalorder (!%p398_p10), %s494_s19, 3 }
  0x16   : > { %s470_s30 = scalar_select %p469_p11, %s5900_s27, 31  ;;  %v5906_v0 = vstv %s4805_s29  ;;  %vm619_vm0 = vcmask 1040384   ;;  %vm760_vm1 = vcmask 1046528   ;;  %vm915_vm6 = vcmask 1045504  }
  0x17   : > { %v543_v1 = vadd.s32 1, %v5906_v0  ;;  %v544_v2 = vadd.s32 2, %v5906_v0  ;;  %s8607_s28 = smov (!%p478_p12, %s4791_s28), 0  ;;  %vm545_vm9 = vcmp.ge.s32.totalorder %v5906_v0, 0  ;;  %vm548_vm10 = vcmp.lt.s32.totalorder %v5906_v0, 32  ;;  %s8611_s19 = smov (!%p6062_p0, %s494_s19), 3 }
  0x18   : > { %s5031_s11 = sshll.u32 %s470_s30, 4  ;;  %s4792_s22 = sshll.u32 %s8607_s28, 3  ;;  %vm6058_vm11 = vmand %vm545_vm9, %vm548_vm10  ;;  %vm1206_vm12 = vcmask 1043456   ;;  %vm8443_vm9 = vcmask 31744   ;;  %vm1133_vm10 = vcmask 97280  }
  0x19   : > { %s5913_s20 = scalar_lea.vmem %s8450_s0, %s5031_s11  ;;  %vm546_vm2 = vcmp.ge.s32.totalorder %v543_v1, 0  ;;  %vm549_vm3 = vcmp.lt.s32.totalorder %v543_v1, 32  ;;  %vm547_vm4 = vcmp.ge.s32.totalorder %v544_v2, 0  ;;  %p483_p13 = scmp.lt.s32.totalorder %s4792_s22, 31  ;;  %vm550_vm5 = vcmp.lt.s32.totalorder %v544_v2, 32 }
  0x1a   : > { %v512_v3 = vld [vmem:[%s5913_s20] sm:$0xff]  ;;  %v513_v4 = vld [vmem:[%s5913_s20 + $0x8] sm:$0xff]  ;;  %vm5932_vm7 = vmand %vm546_vm2, %vm549_vm3  ;;  %s566_s30 = sadd.s32 8, %s5900_s27  ;;  %s4886_s29 = sadd.s32 4294967294, %s5900_s27 }
  0x1b   : > { %v629_v5 = vrot.slane %v512_v3, 7  ;;  %v630_v6 = vrot.slane %v513_v4, 7  ;;  %s8609_s22 = smov (!%p483_p13, %s4792_s22), 31  ;;  %vm5940_vm8 = vmand %vm547_vm4, %vm550_vm5  ;;  %v514_v42 = vld [vmem:[%s5913_s20 + $0x10] sm:$0xff]  ;;  %v515_v43 = vld [vmem:[%s5913_s20 + $0x18] sm:$0xff] }
  0x1c   : > { %s5032_s28 = sshll.u32 %s8609_s22, 4  ;;  %v632_v51 = vrot.slane %v514_v42, 7  ;;  %v633_v52 = vrot.slane %v515_v43, 7  ;;  %v516_v2 = vld [vmem:[%s5913_s20 + $0x20] sm:$0xff]  ;;  %v517_v3 = vld [vmem:[%s5913_s20 + $0x28] sm:$0xff]  ;;  %s5772_s22 = smov 16  }
  0x1d   : > { %v5918_v7 = vsel %vm619_vm0, %v629_v5, %v630_v6  ;;  %v721_v8 = vsel %vm619_vm0, %v630_v6, 0.0  ;;  %v5922_v9 = vsel %vm619_vm0, 0.0, %v629_v5  ;;  %s5949_s11 = scalar_lea.vmem %s8433_s1, %s5032_s28  ;;  %s4795_s28 = sshll.u32 %s8611_s19, 3 }
  0x1e   : > { %v777_v10 = vrot.slane %v5918_v7, 1  ;;  %v779_v11 = vrot.slane %v721_v8, 1  ;;  %v776_v12 = vrot.slane %v5922_v9, 1  ;;  %v932_v13 = vrot.slane %v5918_v7, 2  ;;  %v4801_v22 = vld [vmem:[%s5949_s11 + $0x60] sm:$0xff]  ;;  %v4802_v23 = vld [vmem:[%s5949_s11 + $0x68] sm:$0xff] }
  0x1f   : > { %v934_v14 = vrot.slane %v721_v8, 2  ;;  %v931_v15 = vrot.slane %v5922_v9, 2  ;;  %v4803_v24 = vld [vmem:[%s5949_s11 + $0x70] sm:$0xff]  ;;  %v562_v25 = vsel %vm5932_vm7, %v4801_v22, 0.0  ;;  %v563_v26 = vsel %vm5932_vm7, %v4802_v23, 0.0  ;;  %v4804_v27 = vld [vmem:[%s5949_s11 + $0x78] sm:$0xff] }
  0x20   : > { %v780_v16 = vsel %vm760_vm1, %v777_v10, %v779_v11  ;;  %v778_v17 = vsel %vm760_vm1, %v776_v12, %v777_v10  ;;  %v564_v28 = vsel %vm5940_vm8, %v4803_v24, 0.0  ;;  %v623_v29 = vrot.slane %v562_v25, 7  ;;  %v519_v22 = vld [vmem:[%s5913_s20 + $0x38] sm:$0xff]  ;;  %v4799_v43 = vld [vmem:[%s5949_s11 + $0x50] sm:$0xff]  ;;  %p6112_p1 = scmp.lt.s32.totalorder %s4795_s28, 31 }
  0x21   : > { %845 = vrot.lane.b32.xlu1 %v780_v16, %s5770_s24  ;;  %843 = vrot.lane.b32.xlu0 %v778_v17, %s5770_s24  ;;  %v935_v20 = vsel %vm915_vm6, %v932_v13, %v934_v14  ;;  %v933_v21 = vsel %vm915_vm6, %v931_v15, %v932_v13  ;;  %v624_v30 = vrot.slane %v563_v26, 7  ;;  %v565_v31 = vsel %vm5940_vm8, %v4804_v27, 0.0 }
  0x22   : > { %v626_v32 = vrot.slane %v564_v28, 7  ;;  %v627_v33 = vrot.slane %v565_v31, 7  ;;  %v5969_v35 = vsel %vm619_vm0, 0.0, %v623_v29  ;;  %v5997_v58 = vsel %vm619_vm0, %v632_v51, %v633_v52  ;;  %s8613_s28 = smov (!%p6112_p1, %s4795_s28), 31 }
  0x23   : > { %v5966_v34 = vsel %vm619_vm0, %v623_v29, %v624_v30  ;;  %v719_v36 = vsel %vm619_vm0, %v624_v30, 0.0  ;;  %v921_v38 = vrot.slane %v5969_v35, 2  ;;  %v766_v40 = vrot.slane %v5969_v35, 1  ;;  %s5033_s19 = sshll.u32 %s8613_s28, 4  ;;  %s5777_s28 = smov 88  }
  0x24   : > { %v5973_v37 = vsel %vm619_vm0, 0.0, %v626_v32  ;;  %v922_v39 = vrot.slane %v5966_v34, 2  ;;  %v767_v41 = vrot.slane %v5966_v34, 1  ;;  %v924_v44 = vrot.slane %v719_v36, 2 }
  0x25   : > { %1000 = vrot.lane.b32.xlu1 %v935_v20, %s5771_s12  ;;  %998 = vrot.lane.b32.xlu0 %v933_v21, %s5771_s12  ;;  %v769_v45 = vrot.slane %v719_v36, 1  ;;  %v5982_v46 = vsel %vm619_vm0, %v626_v32, %v627_v33  ;;  %v720_v47 = vsel %vm619_vm0, %v627_v33, 0.0  ;;  %v771_v56 = vrot.slane %v5973_v37, 1  ;;  %v518_v21 = vld [vmem:[%s5913_s20 + $0x30] sm:$0xff] }
  0x26   : > { %v923_v48 = vsel %vm915_vm6, %v921_v38, %v922_v39  ;;  %v768_v49 = vsel %vm760_vm1, %v766_v40, %v767_v41  ;;  %v772_v50 = vrot.slane %v5982_v46, 1  ;;  %v925_v53 = vsel %vm915_vm6, %v922_v39, %v924_v44  ;;  %v520_v38 = vld [vmem:[%s5913_s20 + $0x40] sm:$0xff]  ;;  %v521_v39 = vld [vmem:[%s5913_s20 + $0x48] sm:$0xff] }
  0x27   : > { %v770_v54 = vsel %vm760_vm1, %v767_v41, %v769_v45  ;;  %v774_v55 = vrot.slane %v720_v47, 1  ;;  %v927_v57 = vrot.slane %v5982_v46, 2  ;;  %v929_v61 = vrot.slane %v720_v47, 2 }
  0x28   : > { %v773_v60 = vsel %vm760_vm1, %v771_v56, %v772_v50  ;;  %v926_v62 = vrot.slane %v5973_v37, 2  ;;  %v722_v63 = vsel %vm619_vm0, %v633_v52, 0.0  ;;  %v6004_v1 = vsel %vm619_vm0, 0.0, %v632_v51 }
  0x29   : > { %990 = vrot.lane.b32.xlu1 %v923_v48, %s5771_s12  ;;  %835 = vrot.lane.b32.xlu0 %v768_v49, %s5770_s24  ;;  %v775_v59 = vsel %vm760_vm1, %v772_v50, %v774_v55  ;;  %v782_v4 = vrot.slane %v5997_v58, 1  ;;  %v930_v5 = vsel %vm915_vm6, %v927_v57, %v929_v61  ;;  %v784_v8 = vrot.slane %v722_v63, 1 }
  0x2a   : > { %v928_v6 = vsel %vm915_vm6, %v926_v62, %v927_v57  ;;  %v781_v10 = vrot.slane %v6004_v1, 1  ;;  %v635_v11 = vrot.slane %v516_v2, 7  ;;  %v636_v12 = vrot.slane %v517_v3, 7  ;;  %v522_v2 = vld [vmem:[%s5913_s20 + $0x50] sm:$0xff]  ;;  %v523_v3 = vld [vmem:[%s5913_s20 + $0x58] sm:$0xff] }
  0x2b   : > { %v937_v13 = vrot.slane %v5997_v58, 2  ;;  %v939_v14 = vrot.slane %v722_v63, 2  ;;  %v785_v15 = vsel %vm760_vm1, %v782_v4, %v784_v8  ;;  %v936_v17 = vrot.slane %v6004_v1, 2 }
  0x2c   : > { %v783_v16 = vsel %vm760_vm1, %v781_v10, %v782_v4  ;;  %v6021_v18 = vsel %vm619_vm0, %v635_v11, %v636_v12  ;;  %v723_v19 = vsel %vm619_vm0, %v636_v12, 0.0  ;;  %v6025_v20 = vsel %vm619_vm0, 0.0, %v635_v11 }
  0x2d   : > { %992 = vrot.lane.b32.xlu1 %v925_v53, %s5771_s12  ;;  %837 = vrot.lane.b32.xlu0 %v770_v54, %s5770_s24  ;;  %v940_v23 = vsel %vm915_vm6, %v937_v13, %v939_v14  ;;  %v938_v24 = vsel %vm915_vm6, %v936_v17, %v937_v13  ;;  %v787_v25 = vrot.slane %v6021_v18, 1  ;;  %v789_v26 = vrot.slane %v723_v19, 1  ;;  %v4800_v53 = vld [vmem:[%s5949_s11 + $0x58] sm:$0xff]  ;;  %v4806_v17 = vld [vmem:[%s8435_s3 + $0x10] sm:$0xff]  ;;  %s5776_s11 = smov 64  }
  0x2e   : > { %v786_v27 = vrot.slane %v6025_v20, 1  ;;  %v638_v28 = vrot.slane %v518_v21, 7  ;;  %v639_v29 = vrot.slane %v519_v22, 7  ;;  %v942_v30 = vrot.slane %v6021_v18, 2 }
  0x2f   : > { %v944_v31 = vrot.slane %v723_v19, 2  ;;  %v941_v32 = vrot.slane %v6025_v20, 2  ;;  %v790_v33 = vsel %vm760_vm1, %v787_v25, %v789_v26  ;;  %v641_v48 = vrot.slane %v520_v38, 7 }
  0x30   : > { %v788_v36 = vsel %vm760_vm1, %v786_v27, %v787_v25  ;;  %v6047_v40 = vsel %vm619_vm0, %v638_v28, %v639_v29  ;;  %v724_v41 = vsel %vm619_vm0, %v639_v29, 0.0  ;;  %v6051_v42 = vsel %vm619_vm0, 0.0, %v638_v28  ;;  %v524_v28 = vld [vmem:[%s5913_s20 + $0x60] sm:$0xff]  ;;  %v525_v29 = vld [vmem:[%s5913_s20 + $0x68] sm:$0xff] }
  0x31   : > { %841 = vrot.lane.b32.xlu1 %v775_v59, %s5770_s24  ;;  %839 = vrot.lane.b32.xlu0 %v773_v60, %s5770_s24  ;;  %v945_v45 = vsel %vm915_vm6, %v942_v30, %v944_v31  ;;  %v943_v47 = vsel %vm915_vm6, %v941_v32, %v942_v30  ;;  %v642_v49 = vrot.slane %v521_v39, 7  ;;  %v792_v0 = vrot.slane %v6047_v40, 1 }
  0x32   : > { %v794_v50 = vrot.slane %v724_v41, 1  ;;  %v791_v51 = vrot.slane %v6051_v42, 1  ;;  %v560_v52 = vsel %vm6058_vm11, %v4799_v43, 0.0  ;;  %v947_v54 = vrot.slane %v6047_v40, 2 }
  0x33   : > { %v949_v55 = vrot.slane %v724_v41, 2  ;;  %v946_v56 = vrot.slane %v6051_v42, 2  ;;  %v6084_v57 = vsel %vm619_vm0, %v641_v48, %v642_v49  ;;  %v725_v61 = vsel %vm619_vm0, %v642_v49, 0.0 }
  0x34   : > { %v795_v59 = vsel %vm760_vm1, %v792_v0, %v794_v50  ;;  %v793_v60 = vsel %vm760_vm1, %v791_v51, %v792_v0  ;;  %v561_v62 = vsel %vm6058_vm11, %v4800_v53, 0.0  ;;  %v6092_v63 = vsel %vm619_vm0, 0.0, %v641_v48  ;;  %v526_v53 = vld [vmem:[%s5913_s20 + $0x70] sm:$0xff] }
  0x35   : > { %996 = vrot.lane.b32.xlu1 %v930_v5, %s5771_s12  ;;  %994 = vrot.lane.b32.xlu0 %v928_v6, %s5771_s12  ;;  %v950_v4 = vsel %vm915_vm6, %v947_v54, %v949_v55  ;;  %v797_v5 = vrot.slane %v6084_v57, 1  ;;  %v4807_v6 = vld [vmem:[%s8435_s3 + $0x18] sm:$0xf]  ;;  %v948_v8 = vsel %vm915_vm6, %v946_v56, %v947_v54  ;;  %v799_v10 = vrot.slane %v725_v61, 1 }
  0x36   : > { %v6105_v11 = vrot.slane %v560_v52, 7  ;;  %v6107_v12 = vrot.slane %v561_v62, 7  ;;  %v796_v13 = vrot.slane %v6092_v63, 1  ;;  %v644_v14 = vrot.slane %v522_v2, 7  ;;  %5255 = vmatprep.subr.msk.mxu0 %vm1206_vm12, %v4807_v6  ;;  %5599 = vmatprep.subr.msk.mxu1 %vm1206_vm12, %v4807_v6  ;;  %v527_v54 = vld [vmem:[%s5913_s20 + $0x78] sm:$0xff] }
  0x37   : > { %5256 = vmatpush3.msk.msra.mxu0 %vm1206_vm12, %v4807_v6  ;;  %5601 = vmatpush3.msk.msra.mxu1 %vm1206_vm12, %v4807_v6  ;;  %v952_v19 = vrot.slane %v6084_v57, 2  ;;  %v954_v21 = vrot.slane %v725_v61, 2  ;;  %v951_v22 = vrot.slane %v6092_v63, 2  ;;  %v6153_v31 = vstv %s566_s30  ;;  %s6177_s30 = scalar_lea.vmem %s8434_s2, %s5033_s19  ;;  %s5784_s19 = smov 56  }
  0x38   : > { %v798_v25 = vsel %vm760_vm1, %v796_v13, %v797_v5  ;;  %5257 = vmatprep.subr.mxu0 %v4806_v17  ;;  %5600 = vmatprep.subr.mxu1 %v4806_v17  ;;  %v6147_v30 = vsel %vm619_vm0, 0.0, %v644_v14  ;;  %v648_v38 = vrot.slane %v525_v29, 7  ;;  %v568_v44 = vadd.s32 1, %v6153_v31  ;;  %v538_v61 = vld [vmem:[%s6177_s30 + $0x18] sm:$0xff]  ;;  %v536_v29 = vld [vmem:[%s6177_s30 + $0x8] sm:$0xff] }
  0x39   : > { %849 = vrot.lane.b32.xlu1 %v785_v15, %s5770_s24  ;;  %847 = vrot.lane.b32.xlu0 %v783_v16, %s5770_s24  ;;  %v645_v15 = vrot.slane %v523_v3, 7  ;;  %v6119_v16 = vsel %vm619_vm0, %v6105_v11, %v6107_v12  ;;  %v955_v39 = vsel %vm915_vm6, %v952_v19, %v954_v21  ;;  %v953_v41 = vsel %vm915_vm6, %v951_v22, %v952_v19 }
  0x3a   : > { %5258 = vmatpush3.msra.mxu0 %v4806_v17  ;;  %5602 = vmatpush3.msra.mxu1 %v4806_v17  ;;  %v801_v43 = vrot.slane %v6147_v30, 1  ;;  %v956_v49 = vrot.slane %v6147_v30, 2  ;;  %v727_v51 = vsel %vm619_vm0, %v648_v38, 0.0  ;;  %vm571_vm13 = vcmp.ge.s32.totalorder %v568_v44, 0 }
  0x3b   : > { %v6141_v26 = vsel %vm619_vm0, %v644_v14, %v645_v15  ;;  %v726_v27 = vsel %vm619_vm0, %v645_v15, 0.0  ;;  %vm574_vm14 = vcmp.lt.s32.totalorder %v568_v44, 32  ;;  %v964_v14 = vrot.slane %v727_v51, 2 }
  0x3c   : > { %v802_v32 = vrot.slane %v6141_v26, 1  ;;  %v959_v48 = vrot.slane %v726_v27, 2  ;;  %vm6190_vm15 = vmand %vm571_vm13, %vm574_vm14  ;;  %vm570_vm2 = vcmp.ge.s32.totalorder %v6153_v31, 0  ;;  %vm573_vm3 = vcmp.lt.s32.totalorder %v6153_v31, 32 }
  0x3d   : > { %1004 = vrot.lane.b32.xlu1 %v940_v23, %s5771_s12  ;;  %1002 = vrot.lane.b32.xlu0 %v938_v24, %s5771_s12  ;;  %v6136_v23 = vld [vmem:[%s8435_s3 + $0x28] sm:$0xf]  ;;  %v800_v24 = vsel %vm760_vm1, %v797_v5, %v799_v10  ;;  %v651_v5 = vrot.slane %v527_v54, 7  ;;  %vm6220_vm4 = vmand %vm570_vm2, %vm573_vm3  ;;  %vm8446_vm11 = vcmask 64512  }
  0x3e   : > { %5335 = vmatprep.subr.msk.mxu0 %vm1206_vm12, %v6136_v23  ;;  %v803_v50 = vsel %vm760_vm1, %v801_v43, %v802_v32 }
  0x3f   : > { %v728_v21 = vsel %vm619_vm0, %v651_v5, 0.0 }
  0x41   : > { %853 = vrot.lane.b32.xlu1 %v790_v33, %s5770_s24  ;;  %851 = vrot.lane.b32.xlu0 %v788_v36, %s5770_s24  ;;  %v804_v33 = vrot.slane %v726_v27, 1  ;;  %v647_v36 = vrot.slane %v524_v28, 7  ;;  %v535_v28 = vld [vmem:[%s6177_s30] sm:$0xff] }
  0x42   : > { %v585_v44 = vsel %vm6220_vm4, %v535_v28, 0.0 }
  0x43   : > { %v6170_v0 = vsel %vm619_vm0, %v647_v36, %v648_v38  ;;  %v6180_v52 = vsel %vm619_vm0, 0.0, %v647_v36  ;;  %v814_v38 = vrot.slane %v728_v21, 1 }
  0x44   : > { %v807_v56 = vrot.slane %v6170_v0, 1  ;;  %v806_v3 = vrot.slane %v6180_v52, 1  ;;  %v962_v13 = vrot.slane %v6170_v0, 2  ;;  %v961_v15 = vrot.slane %v6180_v52, 2 }
  0x45   : > { %1008 = vrot.lane.b32.xlu1 %v945_v45, %s5771_s12  ;;  %1006 = vrot.lane.b32.xlu0 %v943_v47, %s5771_s12  ;;  %v957_v45 = vrot.slane %v6141_v26, 2  ;;  %v805_v47 = vsel %vm760_vm1, %v802_v32, %v804_v33  ;;  %v540_v32 = vld [vmem:[%s6177_s30 + $0x28] sm:$0xff] }
  0x46   : > { %v808_v17 = vsel %vm760_vm1, %v806_v3, %v807_v56  ;;  %v965_v27 = vsel %vm915_vm6, %v962_v13, %v964_v14  ;;  %v963_v33 = vsel %vm915_vm6, %v961_v15, %v962_v13  ;;  %v569_v14 = vadd.s32 2, %v6153_v31  ;;  %v539_v31 = vld [vmem:[%s6177_s30 + $0x20] sm:$0xff] }
  0x47   : > { %v960_v55 = vsel %vm915_vm6, %v957_v45, %v959_v48  ;;  %v958_v2 = vsel %vm915_vm6, %v956_v49, %v957_v45  ;;  %v586_v45 = vsel %vm6220_vm4, %v536_v29, 0.0 }
  0x48   : > { %vm572_vm5 = vcmp.ge.s32.totalorder %v569_v14, 0  ;;  %vm575_vm7 = vcmp.lt.s32.totalorder %v569_v14, 32 }
  0x49   : > { %857 = vrot.lane.b32.xlu1 %v795_v59, %s5770_s24  ;;  %855 = vrot.lane.b32.xlu0 %v793_v60, %s5770_s24  ;;  %v809_v59 = vrot.slane %v727_v51, 1  ;;  %v537_v60 = vld [vmem:[%s6177_s30 + $0x10] sm:$0xff]  ;;  %vm6280_vm8 = vmand %vm572_vm5, %vm575_vm7  ;;  %s5778_s30 = smov 80  }
  0x4a   : > { %v587_v6 = vsel %vm6190_vm15, %v537_v60, 0.0 }
  0x4b   : > { %v810_v10 = vsel %vm760_vm1, %v807_v56, %v809_v59  ;;  %v654_v56 = vrot.slane %v586_v45, 7  ;;  %v969_v59 = vrot.slane %v728_v21, 2  ;;  %v718_v45 = vsel %vm619_vm0, %v6107_v12, 0.0 }
  0x4c   : > { %v917_v12 = vrot.slane %v6119_v16, 2 }
  0x4d   : > { %1012 = vrot.lane.b32.xlu1 %v950_v4, %s5771_s12  ;;  %1010 = vrot.lane.b32.xlu0 %v948_v8, %s5771_s12  ;;  %v650_v4 = vrot.slane %v526_v53, 7  ;;  %v588_v8 = vsel %vm6190_vm15, %v538_v61, 0.0  ;;  %v729_v15 = vsel %vm619_vm0, %v654_v56, 0.0 }
  0x4f   : > { %v6207_v19 = vsel %vm619_vm0, %v650_v4, %v651_v5  ;;  %v6213_v22 = vsel %vm619_vm0, 0.0, %v650_v4 }
  0x50   : > { %v812_v36 = vrot.slane %v6207_v19, 1  ;;  %v967_v48 = vrot.slane %v6207_v19, 2 }
  0x51   : > { %861 = vrot.lane.b32.xlu1 %v800_v24, %s5770_s24  ;;  %859 = vrot.lane.b32.xlu0 %v798_v25, %s5770_s24  ;;  %v656_v24 = vrot.slane %v587_v6, 7  ;;  %v657_v25 = vrot.slane %v588_v8, 7 }
  0x52   : > { %v815_v49 = vsel %vm760_vm1, %v812_v36, %v814_v38  ;;  %v970_v4 = vsel %vm915_vm6, %v967_v48, %v969_v59 }
  0x53   : > { %v6231_v43 = vsel %vm619_vm0, 0.0, %v656_v24  ;;  %v730_v54 = vsel %vm619_vm0, %v657_v25, 0.0 }
  0x54   : > { %v821_v51 = vrot.slane %v6231_v43, 1  ;;  %v824_v62 = vrot.slane %v730_v54, 1  ;;  %v976_v5 = vrot.slane %v6231_v43, 2  ;;  %v979_v21 = vrot.slane %v730_v54, 2 }
  0x55   : > { %1016 = vrot.lane.b32.xlu1 %v955_v39, %s5771_s12  ;;  %1014 = vrot.lane.b32.xlu0 %v953_v41, %s5771_s12  ;;  %v811_v39 = vrot.slane %v6213_v22, 1  ;;  %v6228_v41 = vsel %vm619_vm0, %v656_v24, %v657_v25  ;;  %v819_v25 = vrot.slane %v729_v15, 1 }
  0x56   : > { %v822_v53 = vrot.slane %v6228_v41, 1  ;;  %v977_v6 = vrot.slane %v6228_v41, 2 }
  0x58   : > { %v823_v60 = vsel %vm760_vm1, %v821_v51, %v822_v53  ;;  %v825_v8 = vsel %vm760_vm1, %v822_v53, %v824_v62  ;;  %v980_v28 = vsel %vm915_vm6, %v977_v6, %v979_v21  ;;  %v764_v51 = vrot.slane %v718_v45, 1 }
  0x59   : > { %865 = vrot.lane.b32.xlu1 %v805_v47, %s5770_s24  ;;  %863 = vrot.lane.b32.xlu0 %v803_v50, %s5770_s24  ;;  %v966_v47 = vrot.slane %v6213_v22, 2  ;;  %v813_v50 = vsel %vm760_vm1, %v811_v39, %v812_v36  ;;  %v6287_v36 = vld [vmem:[%s8435_s3 + $0x8] sm:$0xf]  ;;  %v762_v39 = vrot.slane %v6119_v16, 1  ;;  %v974_v53 = vrot.slane %v729_v15, 2 }
  0x5a   : > { %5295 = vmatprep.subr.msk.mxu1 %vm1206_vm12, %v6287_v36 }
  0x5b   : > { %v968_v61 = vsel %vm915_vm6, %v966_v47, %v967_v48  ;;  %v589_v47 = vsel %vm6280_vm8, %v539_v31, 0.0  ;;  %v590_v48 = vsel %vm6280_vm8, %v540_v32, 0.0  ;;  %v765_v59 = vsel %vm760_vm1, %v762_v39, %v764_v51  ;;  %v4858_v51 = vld [vmem:[%s8435_s3 + $0x20] sm:$0xff] }
  0x5c   : > { %v659_v54 = vrot.slane %v589_v47, 7 }
  0x5d   : > { %1020 = vrot.lane.b32.xlu1 %v960_v55, %s5771_s12  ;;  %1018 = vrot.lane.b32.xlu0 %v958_v2, %s5771_s12  ;;  %v653_v55 = vrot.slane %v585_v44, 7 }
  0x5f   : > { %v6251_v2 = vsel %vm619_vm0, %v653_v55, %v654_v56  ;;  %v6254_v3 = vsel %vm619_vm0, 0.0, %v653_v55  ;;  %v660_v55 = vrot.slane %v590_v48, 7  ;;  %v919_v56 = vrot.slane %v718_v45, 2 }
  0x60   : > { %v817_v13 = vrot.slane %v6251_v2, 1  ;;  %v971_v29 = vrot.slane %v6254_v3, 2  ;;  %v972_v44 = vrot.slane %v6251_v2, 2 }
  0x61   : > { %869 = vrot.lane.b32.xlu1 %v810_v10, %s5770_s24  ;;  %867 = vrot.lane.b32.xlu0 %v808_v17, %s5770_s24  ;;  %v816_v10 = vrot.slane %v6254_v3, 1  ;;  %v978_v17 = vsel %vm915_vm6, %v976_v5, %v977_v6  ;;  %v6312_v62 = vsel %vm619_vm0, %v659_v54, %v660_v55  ;;  %v731_v5 = vsel %vm619_vm0, %v660_v55, 0.0 }
  0x62   : > { %v920_v6 = vsel %vm915_vm6, %v917_v12, %v919_v56  ;;  %v829_v14 = vrot.slane %v731_v5, 1 }
  0x63   : > { %v818_v24 = vsel %vm760_vm1, %v816_v10, %v817_v13 }
  0x65   : > { %1024 = vrot.lane.b32.xlu1 %v965_v27, %s5771_s12  ;;  %1022 = vrot.lane.b32.xlu0 %v963_v33, %s5771_s12  ;;  %v6272_v27 = vsel %vm619_vm0, 0.0, %v6105_v11  ;;  %v820_v11 = vsel %vm760_vm1, %v817_v13, %v819_v25  ;;  %v827_v13 = vrot.slane %v6312_v62, 1  ;;  %v984_v25 = vrot.slane %v731_v5, 2 }
  0x66   : > { %v761_v38 = vrot.slane %v6272_v27, 1 }
  0x67   : > { %v830_v21 = vsel %vm760_vm1, %v827_v13, %v829_v14 }
  0x69   : > { %873 = vrot.lane.b32.xlu1 %v815_v49, %s5770_s24  ;;  %871 = vrot.lane.b32.xlu0 %v813_v50, %s5770_s24  ;;  %v763_v49 = vsel %vm760_vm1, %v761_v38, %v762_v39  ;;  %v973_v50 = vsel %vm915_vm6, %v971_v29, %v972_v44 }
  0x6d   : > { %879 = vrot.lane.b32.xlu1 %v823_v60, %s5770_s24  ;;  %1026 = vrot.lane.b32.xlu0 %v968_v61, %s5771_s12  ;;  %v975_v60 = vsel %vm915_vm6, %v972_v44, %v974_v53  ;;  %v916_v61 = vrot.slane %v6272_v27, 2 }
  0x71   : > { %881 = vrot.lane.b32.xlu1 %v825_v8, %s5770_s24  ;;  %1028 = vrot.lane.b32.xlu0 %v970_v4, %s5771_s12  ;;  %v6315_v4 = vsel %vm619_vm0, 0.0, %v659_v54  ;;  %v918_v8 = vsel %vm915_vm6, %v916_v61, %v917_v12 }
  0x72   : > { %v826_v10 = vrot.slane %v6315_v4, 1  ;;  %v981_v15 = vrot.slane %v6315_v4, 2 }
  0x75   : > { %875 = vrot.lane.b32.xlu1 %v818_v24, %s5770_s24  ;;  %1034 = vrot.lane.b32.xlu0 %v978_v17, %s5771_s12  ;;  %v828_v17 = vsel %vm760_vm1, %v826_v10, %v827_v13  ;;  %v982_v24 = vrot.slane %v6312_v62, 2 }
  0x77   : > { %v983_v31 = vsel %vm915_vm6, %v981_v15, %v982_v24 }
  0x79   : > { %877 = vrot.lane.b32.xlu1 %v820_v11, %s5770_s24  ;;  %1036 = vrot.lane.b32.xlu0 %v980_v28, %s5771_s12  ;;  %v985_v28 = vsel %vm915_vm6, %v982_v24, %v984_v25 }
  0x7d   : > { %831 = vrot.lane.b32.xlu1 %v763_v49, %s5770_s24  ;;  %1030 = vrot.lane.b32.xlu0 %v973_v50, %s5771_s12 }
  0x81   : > { %833 = vrot.lane.b32.xlu1 %v765_v59, %s5770_s24  ;;  %1032 = vrot.lane.b32.xlu0 %v975_v60, %s5771_s12 }
  0x85   : > { %988 = vrot.lane.b32.xlu1 %v920_v6, %s5771_s12  ;;  %986 = vrot.lane.b32.xlu0 %v918_v8, %s5771_s12 }
  0x89   : > { %883 = vrot.lane.b32.xlu0 %v828_v17, %s5770_s24  ;;  %885 = vrot.lane.b32.xlu1 %v830_v21, %s5770_s24  ;;  %s5780_s24 = smov 24  }
  0x8d   : > { %1038 = vrot.lane.b32.xlu0 %v983_v31, %s5771_s12  ;;  %1040 = vrot.lane.b32.xlu1 %v985_v28, %s5771_s12 }
  0x93   : > { %v846_v29 = vpop.permute.xlu1 %845  ;;  %v844_v32 = vpop.permute.xlu0 %843 }
  0x94   : > { %v1077_v60 = vsel %vm8443_vm9, %v5922_v9, %v844_v32  ;;  %v1078_v61 = vsel %vm8443_vm9, %v5918_v7, %v846_v29 }
  0x97   : > { %v1001_v33 = vpop.permute.xlu1 %1000  ;;  %v999_v11 = vpop.permute.xlu0 %998 }
  0x98   : > { %v6379_v5 = vsel %vm8446_vm11, %v1078_v61, %v1001_v33 }
  0x9b   : > { %v991_v38 = vpop.permute.xlu1 %990  ;;  %v836_v39 = vpop.permute.xlu0 %835 }
  0x9c   : > { %v1073_v44 = vsel %vm8443_vm9, %v5969_v35, %v836_v39 }
  0x9d   : > { %v6339_v45 = vsel %vm8446_vm11, %v1073_v44, %v991_v38 }
  0x9e   : > { %5259 = vmatprep.mubr.msk.f32.mxu0 %vm1133_vm10, %v6339_v45 }
  0x9f   : > { %v993_v47 = vpop.permute.xlu1 %992  ;;  %v838_v48 = vpop.permute.xlu0 %837 }
  0xa0   : > { %v1074_v49 = vsel %vm8443_vm9, %v5966_v34, %v838_v48 }
  0xa1   : > { %v6346_v50 = vsel %vm8446_vm11, %v1074_v49, %v993_v47 }
  0xa2   : > { %5260 = vmatmul.mubr.msk.f32.vlgmr.msra.gmra.mxu0 %vm1133_vm10, %v6346_v50 }
  0xa3   : > { %v842_v35 = vpop.permute.xlu1 %841  ;;  %v840_v53 = vpop.permute.xlu0 %839  ;;  %5336 = vmatpush3.msk.msra.mxu0 %vm1206_vm12, %v6136_v23  ;;  %v6370_v23 = vsel %vm8446_vm11, %v1077_v60, %v999_v11 }
  0xa4   : > { %5337 = vmatprep.subr.mxu0 %v4858_v51  ;;  %v1076_v34 = vsel %vm8443_vm9, %v5982_v46, %v842_v35  ;;  %v1075_v54 = vsel %vm8443_vm9, %v5973_v37, %v840_v53 }
  0xa5   : > { %5338 = vmatpush3.msra.mxu0 %v4858_v51 }
  0xa7   : > { %v997_v55 = vpop.permute.xlu1 %996  ;;  %v995_v12 = vpop.permute.xlu0 %994 }
  0xa8   : > { %v6360_v56 = vsel %vm8446_vm11, %v1076_v34, %v997_v55  ;;  %v6363_v59 = vsel %vm8446_vm11, %v1075_v54, %v995_v12 }
  0xa9   : > { %5262 = vmatprep.mubr.msk.f32.mxu0 %vm1133_vm10, %v6363_v59 }
  0xaa   : > { %5263 = vmatmul.mubr.msk.f32.gmra.mxu0 %vm1133_vm10, %v6360_v56 }
  0xab   : > { %v850_v37 = vpop.permute.xlu1 %849  ;;  %5265 = vmatprep.mubr.msk.f32.mxu0 %vm1133_vm10, %v6370_v23  ;;  %v848_v46 = vpop.permute.xlu0 %847 }
  0xac   : > { %v1080_v9 = vsel %vm8443_vm9, %v5997_v58, %v850_v37  ;;  %v1079_v6 = vsel %vm8443_vm9, %v6004_v1, %v848_v46 }
  0xae   : > { %5266 = vmatmul.mubr.msk.f32.gmra.mxu0 %vm1133_vm10, %v6379_v5 }
  0xaf   : > { %v1005_v8 = vpop.permute.xlu1 %1004  ;;  %v1003_v10 = vpop.permute.xlu0 %1002 }
  0xb0   : > { %v6388_v13 = vsel %vm8446_vm11, %v1080_v9, %v1005_v8  ;;  %v6391_v14 = vsel %vm8446_vm11, %v1079_v6, %v1003_v10 }
  0xb1   : > { %5268 = vmatprep.mubr.msk.f32.mxu0 %vm1133_vm10, %v6391_v14 }
  0xb2   : > { %5269 = vmatmul.mubr.msk.f32.gmra.mxu0 %vm1133_vm10, %v6388_v13 }
  0xb3   : > { %v854_v7 = vpop.permute.xlu1 %853  ;;  %v852_v15 = vpop.permute.xlu0 %851 }
  0xb4   : > { %v1082_v58 = vsel %vm8443_vm9, %v6021_v18, %v854_v7  ;;  %v1081_v1 = vsel %vm8443_vm9, %v6025_v20, %v852_v15 }
  0xb7   : > { %v1009_v17 = vpop.permute.xlu1 %1008  ;;  %v1007_v21 = vpop.permute.xlu0 %1006 }
  0xb8   : > { %v6402_v24 = vsel %vm8446_vm11, %v1082_v58, %v1009_v17  ;;  %v6405_v25 = vsel %vm8446_vm11, %v1081_v1, %v1007_v21 }
  0xb9   : > { %5271 = vmatprep.mubr.msk.f32.mxu0 %vm1133_vm10, %v6405_v25 }
  0xba   : > { %5272 = vmatmul.mubr.msk.f32.gmra.mxu0 %vm1133_vm10, %v6402_v24 }
  0xbb   : > { %v858_v31 = vpop.permute.xlu1 %857  ;;  %v856_v28 = vpop.permute.xlu0 %855 }
  0xbc   : > { %v1084_v18 = vsel %vm8443_vm9, %v6047_v40, %v858_v31  ;;  %v1083_v20 = vsel %vm8443_vm9, %v6051_v42, %v856_v28 }
  0xbf   : > { %v1013_v29 = vpop.permute.xlu1 %1012  ;;  %v1011_v32 = vpop.permute.xlu0 %1010 }
  0xc0   : > { %v6416_v33 = vsel %vm8446_vm11, %v1084_v18, %v1013_v29  ;;  %v6419_v11 = vsel %vm8446_vm11, %v1083_v20, %v1011_v32 }
  0xc1   : > { %5274 = vmatprep.mubr.msk.f32.mxu0 %vm1133_vm10, %v6419_v11 }
  0xc2   : > { %5275 = vmatmul.mubr.msk.f32.gmra.mxu0 %vm1133_vm10, %v6416_v33 }
  0xc3   : > { %v862_v38 = vpop.permute.xlu1 %861  ;;  %v860_v39 = vpop.permute.xlu0 %859 }
  0xc4   : > { %v1086_v40 = vsel %vm8443_vm9, %v6084_v57, %v862_v38  ;;  %v1085_v42 = vsel %vm8443_vm9, %v6092_v63, %v860_v39 }
  0xc7   : > { %v1017_v44 = vpop.permute.xlu1 %1016  ;;  %v1015_v47 = vpop.permute.xlu0 %1014 }
  0xc8   : > { %v6430_v48 = vsel %vm8446_vm11, %v1086_v40, %v1017_v44  ;;  %v6433_v49 = vsel %vm8446_vm11, %v1085_v42, %v1015_v47 }
  0xc9   : > { %5277 = vmatprep.mubr.msk.f32.mxu0 %vm1133_vm10, %v6433_v49 }
  0xca   : > { %5278 = vmatmul.mubr.msk.f32.gmra.mxu0 %vm1133_vm10, %v6430_v48 }
  0xcb   : > { %v866_v51 = vpop.permute.xlu1 %865  ;;  %v864_v35 = vpop.permute.xlu0 %863 }
  0xcc   : > { %v1088_v57 = vsel %vm8443_vm9, %v6141_v26, %v866_v51  ;;  %v1087_v63 = vsel %vm8443_vm9, %v6147_v30, %v864_v35 }
  0xcf   : > { %v1021_v53 = vpop.permute.xlu1 %1020  ;;  %v1019_v34 = vpop.permute.xlu0 %1018 }
  0xd0   : > { %v6444_v54 = vsel %vm8446_vm11, %v1088_v57, %v1021_v53  ;;  %v6447_v55 = vsel %vm8446_vm11, %v1087_v63, %v1019_v34 }
  0xd1   : > { %5280 = vmatprep.mubr.msk.f32.mxu0 %vm1133_vm10, %v6447_v55 }
  0xd2   : > { %5281 = vmatmul.mubr.msk.f32.gmra.mxu0 %vm1133_vm10, %v6444_v54 }
  0xd3   : > { %v870_v12 = vpop.permute.xlu1 %869  ;;  %v868_v60 = vpop.permute.xlu0 %867 }
  0xd4   : > { %v1090_v26 = vsel %vm8443_vm9, %v6170_v0, %v870_v12  ;;  %v1089_v30 = vsel %vm8443_vm9, %v6180_v52, %v868_v60 }
  0xd7   : > { %v1025_v37 = vpop.permute.xlu1 %1024  ;;  %v1023_v46 = vpop.permute.xlu0 %1022 }
  0xd8   : > { %v6458_v61 = vsel %vm8446_vm11, %v1090_v26, %v1025_v37  ;;  %v6461_v9 = vsel %vm8446_vm11, %v1089_v30, %v1023_v46  ;;  %v4889_v46 = vld [vmem:[%s8437_s5 + $0x28] sm:$0xff] }
  0xd9   : > { %5283 = vmatprep.mubr.msk.f32.mxu0 %vm1133_vm10, %v6461_v9 }
  0xda   : > { %5284 = vmatmul.mubr.msk.f32.gmra.mxu0 %vm1133_vm10, %v6458_v61 }
  0xdb   : > { %v874_v6 = vpop.permute.xlu1 %873  ;;  %v872_v8 = vpop.permute.xlu0 %871 }
  0xdc   : > { %v1091_v0 = vsel %vm8443_vm9, %v6213_v22, %v872_v8  ;;  %v1092_v15 = vsel %vm8443_vm9, %v6207_v19, %v874_v6 }
  0xdf   : > { %v880_v52 = vpop.permute.xlu1 %879  ;;  %v1027_v10 = vpop.permute.xlu0 %1026 }
  0xe0   : > { %v6470_v7 = vsel %vm8446_vm11, %v1091_v0, %v1027_v10  ;;  %v1095_v22 = vsel %vm8443_vm9, %v6231_v43, %v880_v52  ;;  %v1128_v43 = vld [vmem:[%s8435_s3] sm:$0xff]  ;;  %v6660_v10 = vstv %s4886_s29  ;;  %s4954_s29 = sadd.s32 4294967295, %s5900_s27  ;;  %s5775_s27 = smov 72  }
  0xe1   : > { %5286 = vmatprep.mubr.msk.f32.mxu0 %vm1133_vm10, %v6470_v7  ;;  %vm1854_vm13 = vcmp.ge.s32.totalorder %v6660_v10, 0  ;;  %vm1866_vm14 = vcmp.lt.s32.totalorder %v6660_v10, 32 }
  0xe2   : > { %vm6671_vm15 = vmand %vm1854_vm13, %vm1866_vm14 }
  0xe3   : > { %v882_v58 = vpop.permute.xlu1 %881  ;;  %v1029_v1 = vpop.permute.xlu0 %1028 }
  0xe4   : > { %v6477_v17 = vsel %vm8446_vm11, %v1092_v15, %v1029_v1  ;;  %v1096_v19 = vsel %vm8443_vm9, %v6228_v41, %v882_v58  ;;  %v6665_v58 = vld [vmem:[%s8436_s4] ss:$0 sm:$0xff] }
  0xe5   : > { %5287 = vmatmul.mubr.msk.f32.gmra.mxu0 %vm1133_vm10, %v6477_v17 }
  0xe7   : > { %v876_v21 = vpop.permute.xlu1 %875  ;;  %v1035_v31 = vpop.permute.xlu0 %1034 }
  0xe8   : > { %v6484_v28 = vsel %vm8446_vm11, %v1095_v22, %v1035_v31  ;;  %v1093_v32 = vsel %vm8443_vm9, %v6254_v3, %v876_v21 }
  0xe9   : > { %5292 = vmatprep.mubr.msk.f32.mxu1 %vm1133_vm10, %v6484_v28 }
  0xeb   : > { %v878_v18 = vpop.permute.xlu1 %877  ;;  %v1037_v20 = vpop.permute.xlu0 %1036 }
  0xec   : > { %v6491_v29 = vsel %vm8446_vm11, %v1096_v19, %v1037_v20  ;;  %v1094_v40 = vsel %vm8443_vm9, %v6251_v2, %v878_v18 }
  0xed   : > { %5293 = vmatmul.mubr.msk.f32.vlgmr.msra.gmra.mxu1 %vm1133_vm10, %v6491_v29 }
  0xee   : > { %5296 = vmatpush3.msk.msra.mxu1 %vm1206_vm12, %v6287_v36 }
  0xef   : > { %v832_v38 = vpop.permute.xlu1 %831  ;;  %v1031_v41 = vpop.permute.xlu0 %1030  ;;  %5297 = vmatprep.subr.mxu1 %v1128_v43 }
  0xf0   : > { %v6503_v39 = vsel %vm8446_vm11, %v1093_v32, %v1031_v41  ;;  %5298 = vmatpush3.msra.mxu1 %v1128_v43  ;;  %v1071_v3 = vsel %vm8443_vm9, %v6272_v27, %v832_v38 }
  0xf1   : > { %5289 = vmatprep.mubr.msk.f32.mxu0 %vm1133_vm10, %v6503_v39  ;;  %5375 = vmatprep.subr.mxu1 %v4889_v46 }
  0xf3   : > { %v834_v42 = vpop.permute.xlu1 %833  ;;  %v1033_v44 = vpop.permute.xlu0 %1032 }
  0xf4   : > { %v6510_v36 = vsel %vm8446_vm11, %v1094_v40, %v1033_v44  ;;  %v1072_v47 = vsel %vm8443_vm9, %v6119_v16, %v834_v42 }
  0xf5   : > { %5290 = vmatmul.mubr.msk.f32.gmra.mxu0 %vm1133_vm10, %v6510_v36 }
  0xf6   : > { %5339 = vmatprep.mubr.msk.f32.mxu0 %vm1133_vm10, %v6363_v59 }
  0xf7   : > { %v989_v51 = vpop.permute.xlu1 %988  ;;  %v987_v35 = vpop.permute.xlu0 %986 }
  0xf8   : > { %v1101_v2 = vsel %vm8446_vm11, %v1072_v47, %v989_v51  ;;  %v1100_v57 = vsel %vm8446_vm11, %v1071_v3, %v987_v35 }
  0xf9   : > { %5299 = vmatprep.mubr.msk.f32.mxu1 %vm1133_vm10, %v1100_v57  ;;  %5340 = vmatmul.mubr.msk.f32.vlgmr.msra.gmra.mxu0 %vm1133_vm10, %v6360_v56 }
  0xfa   : > { %5300 = vmatmul.mubr.msk.f32.vlgmr.msra.gmra.mxu1 %vm1133_vm10, %v1101_v2  ;;  %5342 = vmatprep.mubr.msk.f32.mxu0 %vm1133_vm10, %v6370_v23 }
  0xfb   : > { %5302 = vmatprep.mubr.msk.f32.mxu1 %vm1133_vm10, %v6339_v45  ;;  %v884_v16 = vpop.permute.xlu0 %883  ;;  %v886_v27 = vpop.permute.xlu1 %885  ;;  %5376 = vmatpush3.msra.mxu1 %v4889_v46  ;;  %v6696_v46 = vadd.s32 3, %v6660_v10 }
  0xfc   : > { %v1097_v45 = vsel %vm8443_vm9, %v6315_v4, %v884_v16 }
  0xfd   : > { %5343 = vmatmul.mubr.msk.f32.gmra.mxu0 %vm1133_vm10, %v6379_v5  ;;  %vm1857_vm8 = vcmp.ge.s32.totalorder %v6696_v46, 0 }
  0xfe   : > { %5303 = vmatmul.mubr.msk.f32.gmra.mxu1 %vm1133_vm10, %v6346_v50  ;;  %5345 = vmatprep.mubr.msk.f32.mxu0 %vm1133_vm10, %v6391_v14 }
  0xff   : > { %5305 = vmatprep.mubr.msk.f32.mxu1 %vm1133_vm10, %v6363_v59  ;;  %v1039_v50 = vpop.permute.xlu0 %1038 }
 0x100   : > { %v1126_v59 = vsel %vm8446_vm11, %v1097_v45, %v1039_v50 }
 0x101   : > { %5346 = vmatmul.mubr.msk.f32.gmra.mxu0 %vm1133_vm10, %v6388_v13 }
 0x102   : > { %5306 = vmatmul.mubr.msk.f32.gmra.mxu1 %vm1133_vm10, %v6360_v56  ;;  %5348 = vmatprep.mubr.msk.f32.mxu0 %vm1133_vm10, %v6405_v25  ;;  %v1098_v56 = vsel %vm8443_vm9, %v6312_v62, %v886_v27 }
 0x103   : > { %5308 = vmatprep.mubr.msk.f32.mxu1 %vm1133_vm10, %v6370_v23  ;;  %v1041_v23 = vpop.permute.xlu1 %1040 }
 0x104   : > { %v1127_v4 = vsel %vm8446_vm11, %v1098_v56, %v1041_v23 }
 0x105   : > { %5349 = vmatmul.mubr.msk.f32.gmra.mxu0 %vm1133_vm10, %v6402_v24 }
 0x106   : > { %5309 = vmatmul.mubr.msk.f32.gmra.mxu1 %vm1133_vm10, %v6379_v5  ;;  %5351 = vmatprep.mubr.msk.f32.mxu0 %vm1133_vm10, %v6419_v11 }
 0x107   : > { %5311 = vmatprep.mubr.msk.f32.mxu1 %vm1133_vm10, %v6391_v14 }
 0x109   : > { %5352 = vmatmul.mubr.msk.f32.gmra.mxu0 %vm1133_vm10, %v6416_v33 }
 0x10a   : > { %5312 = vmatmul.mubr.msk.f32.gmra.mxu1 %vm1133_vm10, %v6388_v13  ;;  %5354 = vmatprep.mubr.msk.f32.mxu0 %vm1133_vm10, %v6433_v49 }
 0x10b   : > { %5314 = vmatprep.mubr.msk.f32.mxu1 %vm1133_vm10, %v6405_v25 }
 0x10d   : > { %5355 = vmatmul.mubr.msk.f32.gmra.mxu0 %vm1133_vm10, %v6430_v48 }
 0x10e   : > { %5315 = vmatmul.mubr.msk.f32.gmra.mxu1 %vm1133_vm10, %v6402_v24  ;;  %5357 = vmatprep.mubr.msk.f32.mxu0 %vm1133_vm10, %v6447_v55 }
 0x10f   : > { %5317 = vmatprep.mubr.msk.f32.mxu1 %vm1133_vm10, %v6419_v11 }
 0x111   : > { %5358 = vmatmul.mubr.msk.f32.gmra.mxu0 %vm1133_vm10, %v6444_v54 }
 0x112   : > { %5318 = vmatmul.mubr.msk.f32.gmra.mxu1 %vm1133_vm10, %v6416_v33  ;;  %5360 = vmatprep.mubr.msk.f32.mxu0 %vm1133_vm10, %v6461_v9 }
 0x113   : > { %5320 = vmatprep.mubr.msk.f32.mxu1 %vm1133_vm10, %v6433_v49 }
 0x115   : > { %5361 = vmatmul.mubr.msk.f32.gmra.mxu0 %vm1133_vm10, %v6458_v61 }
 0x116   : > { %5321 = vmatmul.mubr.msk.f32.gmra.mxu1 %vm1133_vm10, %v6430_v48  ;;  %5363 = vmatprep.mubr.msk.f32.mxu0 %vm1133_vm10, %v6470_v7 }
 0x117   : > { %5323 = vmatprep.mubr.msk.f32.mxu1 %vm1133_vm10, %v6447_v55 }
 0x119   : > { %5364 = vmatmul.mubr.msk.f32.gmra.mxu0 %vm1133_vm10, %v6477_v17 }
 0x11a   : > { %5324 = vmatmul.mubr.msk.f32.gmra.mxu1 %vm1133_vm10, %v6444_v54  ;;  %5366 = vmatprep.mubr.msk.f32.mxu0 %vm1133_vm10, %v6503_v39 }
 0x11b   : > { %5326 = vmatprep.mubr.msk.f32.mxu1 %vm1133_vm10, %v6461_v9 }
 0x11d   : > { %5367 = vmatmul.mubr.msk.f32.gmra.mxu0 %vm1133_vm10, %v6510_v36 }
 0x11e   : > { %5327 = vmatmul.mubr.msk.f32.gmra.mxu1 %vm1133_vm10, %v6458_v61  ;;  %5369 = vmatprep.mubr.msk.f32.mxu0 %vm1133_vm10, %v6484_v28  ;;  %v1843_v28 = vadd.s32 1, %v6660_v10 }
 0x11f   : > { %5329 = vmatprep.mubr.msk.f32.mxu1 %vm1133_vm10, %v6470_v7 }
 0x120   : > { %vm1855_vm2 = vcmp.ge.s32.totalorder %v1843_v28, 0  ;;  %vm1867_vm3 = vcmp.lt.s32.totalorder %v1843_v28, 32 }
 0x121   : > { %5370 = vmatmul.mubr.msk.f32.gmra.mxu0 %vm1133_vm10, %v6491_v29  ;;  %vm6684_vm4 = vmand %vm1855_vm2, %vm1867_vm3 }
 0x122   : > { %5330 = vmatmul.mubr.msk.f32.gmra.mxu1 %vm1133_vm10, %v6477_v17  ;;  %5372 = vmatprep.mubr.msk.f32.mxu0 %vm1133_vm10, %v1126_v59 }
 0x123   : > { %5332 = vmatprep.mubr.msk.f32.mxu1 %vm1133_vm10, %v6503_v39 }
 0x125   : > { %5373 = vmatmul.mubr.msk.f32.gmra.mxu0 %vm1133_vm10, %v1127_v4 }
 0x126   : > { %5333 = vmatmul.mubr.msk.f32.gmra.mxu1 %vm1133_vm10, %v6510_v36  ;;  %v6677_v36 = vadd.s32 2, %v6660_v10  ;;  %vm1869_vm10 = vcmp.lt.s32.totalorder %v6696_v46, 32 }
 0x128   : > { %vm1856_vm5 = vcmp.ge.s32.totalorder %v6677_v36, 0  ;;  %vm1868_vm7 = vcmp.lt.s32.totalorder %v6677_v36, 32 }
 0x129   : > { %vm6751_vm3 = vmand %vm1856_vm5, %vm1868_vm7 }
 0x162   : > { %v5261_v62 = vpop.f32.mrf.mxu0 }
 0x164   : > { %v1276_v5 = vpop.f32.mrf.mxu0 }
 0x16a   : > { %v5264_v13 = vpop.f32.mrf.mxu0 }
 0x16c   : > { %v1286_v14 = vpop.f32.mrf.mxu0 }
 0x16e   : > { %v5267_v24 = vpop.f32.mrf.mxu0 }
 0x170   : > { %v6618_v25 = vpop.f32.mrf.mxu0 }
 0x172   : > { %v6620_v33 = vpop.f32.mrf.mxu0 }
 0x174   : > { %v6622_v11 = vpop.f32.mrf.mxu0 }
 0x17a   : > { %v6624_v48 = vpop.f32.mrf.mxu0 }
 0x17c   : > { %v6626_v49 = vpop.f32.mrf.mxu0 }
 0x182   : > { %v6628_v63 = vpop.f32.mrf.mxu0 }
 0x184   : > { %v6630_v53 = vpop.f32.mrf.mxu0 }
 0x18a   : > { %v6632_v34 = vpop.f32.mrf.mxu0 }
 0x18c   : > { %v6634_v54 = vpop.f32.mrf.mxu0 }
 0x192   : > { %v6636_v55 = vpop.f32.mrf.mxu0 }
 0x194   : > { %v6638_v12 = vpop.f32.mrf.mxu0 }
 0x19a   : > { %v6640_v60 = vpop.f32.mrf.mxu0 }
 0x19c   : > { %v6642_v26 = vpop.f32.mrf.mxu0 }
 0x1a5   : > { %v6644_v30 = vpop.f32.mrf.mxu0 }
 0x1a7   : > { %v6646_v37 = vpop.f32.mrf.mxu0 }
 0x1ad   : > { %v6651_v61 = vpop.f32.mrf.mxu1 }
 0x1af   : > { %v6658_v8 = vpop.f32.mrf.mxu1 }
 0x1b5   : > { %v6653_v9 = vpop.f32.mrf.mxu0 }
 0x1b7   : > { %v6655_v6 = vpop.f32.mrf.mxu0 }
 0x1b9   : > { %v5341_v0 = vpop.f32.mrf.mxu0 }
 0x1ba   : > { %v5301_v52 = vpop.f32.mrf.mxu1 }
 0x1bb   : > { %v1476_v7 = vadd.f32 %v5301_v52, %v5261_v62  ;;  %v1667_v15 = vpop.f32.mrf.mxu0  ;;  %v6699_v52 = vadd.s32 4, %v6660_v10 }
 0x1bc   : > { %v1470_v1 = vpop.f32.mrf.mxu1 }
 0x1bd   : > { %v1787_v17 = vadd.f32 %v5341_v0, %v1476_v7  ;;  %v1471_v22 = vadd.f32 %v1470_v1, %v1276_v5  ;;  %v5344_v21 = vpop.f32.mrf.mxu0  ;;  %vm1858_vm13 = vcmp.ge.s32.totalorder %v6699_v52, 0  ;;  %vm1870_vm14 = vcmp.lt.s32.totalorder %v6699_v52, 32 }
 0x1be   : > { %v5304_v31 = vpop.f32.mrf.mxu1  ;;  %vm6813_vm5 = vmand %vm1858_vm13, %vm1870_vm14 }
 0x1bf   : > { %v1818_v19 = vadd.f32 %v6665_v58, %v1787_v17  ;;  %v1786_v18 = vadd.f32 %v1667_v15, %v1471_v22  ;;  %v1486_v20 = vadd.f32 %v5304_v31, %v5264_v13  ;;  %v1677_v29 = vpop.f32.mrf.mxu0 }
 0x1c0   : > { %v1480_v32 = vpop.f32.mrf.mxu1 }
 0x1c1   : > { %v1891_v38 = vmax.f32 %v1818_v19, 0.0  ;;  %v1817_v41 = vadd.f32 %v6665_v58, %v1786_v18  ;;  %v1789_v39 = vadd.f32 %v5344_v21, %v1486_v20  ;;  %v1481_v40 = vadd.f32 %v1480_v32, %v1286_v14  ;;  %v5347_v42 = vpop.f32.mrf.mxu0  ;;  %v4888_v18 = vld [vmem:[%s8437_s5 + $0x20] sm:$0xff] }
 0x1c2   : > { %v5307_v44 = vpop.f32.mrf.mxu1  ;;  %v6712_v19 = vadd.s32 5, %v6660_v10  ;;  %5377 = vmatprep.subr.mxu1 %v4888_v18 }
 0x1c3   : > { %v1939_v3 = vsel %vm6671_vm15, %v1891_v38, 0.0  ;;  %v1890_v47 = vmax.f32 %v1817_v41, 0.0  ;;  %v1820_v51 = vadd.f32 %v6665_v58, %v1789_v39  ;;  %v1788_v35 = vadd.f32 %v1677_v29, %v1481_v40  ;;  %v1687_v2 = vpop.f32.mrf.mxu0  ;;  %5378 = vmatpush3.msra.mxu1 %v4888_v18 }
 0x1c4   : > { %v1987_v57 = vrot.slane %v1939_v3, 7  ;;  %v1496_v16 = vadd.f32 %v5307_v44, %v5267_v24  ;;  %v1490_v27 = vpop.f32.mrf.mxu1  ;;  %vm1871_vm2 = vcmp.lt.s32.totalorder %v6712_v19, 32 }
 0x1c5   : > { %v1938_v45 = vsel %vm6671_vm15, %v1890_v47, 0.0  ;;  %v1893_v56 = vmax.f32 %v1820_v51, 0.0  ;;  %v1819_v59 = vadd.f32 %v6665_v58, %v1788_v35  ;;  %v1491_v23 = vadd.f32 %v1490_v27, %v6618_v25  ;;  %v5350_v4 = vpop.f32.mrf.mxu0  ;;  %v4887_v35 = vld [vmem:[%s8437_s5 + $0x18] sm:$0xff] }
 0x1c6   : > { %v1986_v62 = vrot.slane %v1938_v45, 7  ;;  %v5310_v5 = vpop.f32.mrf.mxu1  ;;  %v6693_v13 = vsel %vm619_vm0, %v1987_v57, 0.0  ;;  %v1791_v7 = vadd.f32 %v5347_v42, %v1496_v16  ;;  %vm1859_vm15 = vcmp.ge.s32.totalorder %v6712_v19, 0  ;;  %5379 = vmatprep.subr.mxu1 %v4887_v35 }
 0x1c7   : > { %v1892_v14 = vmax.f32 %v1819_v59, 0.0  ;;  %v1790_v24 = vadd.f32 %v1687_v2, %v1491_v23  ;;  %v1697_v0 = vpop.f32.mrf.mxu0  ;;  %v1941_v25 = vsel %vm6684_vm4, %v1893_v56, 0.0  ;;  %v1506_v15 = vadd.f32 %v5310_v5, %v6620_v33  ;;  %5380 = vmatpush3.msra.mxu1 %v4887_v35 }
 0x1c8   : > { %v1500_v1 = vpop.f32.mrf.mxu1  ;;  %v6705_v17 = vsel %vm619_vm0, %v1986_v62, %v1987_v57  ;;  %v2109_v28 = vrot.slane %v6693_v13, 1  ;;  %v6720_v32 = vsel %vm619_vm0, 0.0, %v1986_v62  ;;  %v1990_v38 = vrot.slane %v1941_v25, 7 }
 0x1c9   : > { %v1940_v22 = vsel %vm6684_vm4, %v1892_v14, 0.0  ;;  %v1821_v21 = vadd.f32 %v6665_v58, %v1790_v24  ;;  %v5353_v31 = vpop.f32.mrf.mxu0  ;;  %v1501_v20 = vadd.f32 %v1500_v1, %v6622_v11  ;;  %v2107_v43 = vrot.slane %v6705_v17, 1  ;;  %vm6802_vm4 = vmand %vm1857_vm8, %vm1869_vm10 }
 0x1ca   : > { %v1989_v33 = vrot.slane %v1940_v22, 7  ;;  %v5313_v29 = vpop.f32.mrf.mxu1  ;;  %v1822_v40 = vadd.f32 %v6665_v58, %v1791_v7  ;;  %v1793_v42 = vadd.f32 %v5350_v4, %v1506_v15  ;;  %v2106_v3 = vrot.slane %v6720_v32, 1  ;;  %vm6836_vm10 = vmand %vm1859_vm15, %vm1871_vm2 }
 0x1cb   : > { %v1516_v41 = vadd.f32 %v5313_v29, %v6624_v48  ;;  %v1707_v39 = vpop.f32.mrf.mxu0  ;;  %v2110_v44 = vsel %vm760_vm1, %v2107_v43, %v2109_v28  ;;  %v1894_v47 = vmax.f32 %v1821_v21, 0.0  ;;  %v1792_v2 = vadd.f32 %v1697_v0, %v1501_v20 }
 0x1cc   : > { %v1510_v11 = vpop.f32.mrf.mxu1  ;;  %2168 = vrot.lane.b32.xlu1 %v2110_v44, %s5771_s12  ;;  %v6732_v48 = vsel %vm619_vm0, %v1989_v33, %v1990_v38  ;;  %v2108_v27 = vsel %vm760_vm1, %v2106_v3, %v2107_v43  ;;  %v2071_v59 = vsel %vm619_vm0, %v1990_v38, 0.0  ;;  %v6745_v23 = vadd.s32 6, %v6660_v10  ;;  %v4932_v43 = vld [vmem:[%s8437_s5 + $0x40] sm:$0xff] }
 0x1cd   : > { %v5356_v51 = vpop.f32.mrf.mxu0  ;;  %v1795_v57 = vadd.f32 %v5353_v31, %v1516_v41  ;;  %v1511_v16 = vadd.f32 %v1510_v11, %v6626_v49  ;;  %2166 = vrot.lane.b32.xlu0 %v2108_v27, %s5771_s12  ;;  %v1895_v4 = vmax.f32 %v1822_v40, 0.0  ;;  %v2112_v14 = vrot.slane %v6732_v48, 1  ;;  %5447 = vmatprep.subr.mxu0 %v4932_v43 }
 0x1ce   : > { %v5316_v45 = vpop.f32.mrf.mxu1  ;;  %v6759_v24 = vsel %vm6751_vm3, %v1894_v47, 0.0  ;;  %v2114_v7 = vrot.slane %v2071_v59, 1  ;;  %v1823_v15 = vadd.f32 %v6665_v58, %v1792_v2  ;;  %v6768_v21 = vsel %vm619_vm0, 0.0, %v1989_v33  ;;  %v4931_v33 = vld [vmem:[%s8437_s5 + $0x38] sm:$0xff]  ;;  %5448 = vmatpush3.msra.mxu0 %v4932_v43 }
 0x1cf   : > { %v1526_v50 = vadd.f32 %v5316_v45, %v6628_v63  ;;  %v1717_v56 = vpop.f32.mrf.mxu0  ;;  %v1824_v63 = vadd.f32 %v6665_v58, %v1793_v42  ;;  %v1794_v62 = vadd.f32 %v1707_v39, %v1511_v16  ;;  %v1826_v1 = vadd.f32 %v6665_v58, %v1795_v57  ;;  %5449 = vmatprep.subr.mxu0 %v4931_v33 }
 0x1d0   : > { %v1520_v5 = vpop.f32.mrf.mxu1  ;;  %v2115_v18 = vsel %vm760_vm1, %v2112_v14, %v2114_v7  ;;  %v2111_v20 = vrot.slane %v6768_v21, 1  ;;  %v1943_v38 = vsel %vm6751_vm3, %v1895_v4, 0.0  ;;  %v2244_v40 = vrot.slane %v6732_v48, 2  ;;  %5450 = vmatpush3.msra.mxu0 %v4931_v33 }
 0x1d1   : > { %v1797_v0 = vadd.f32 %v5356_v51, %v1526_v50  ;;  %v1521_v25 = vadd.f32 %v1520_v5, %v6630_v53  ;;  %v6762_v36 = vpop.f32.mrf.mxu0  ;;  %v1825_v22 = vadd.f32 %v6665_v58, %v1794_v62  ;;  %v6775_v53 = vadd.s32 7, %v6660_v10  ;;  %2172 = vrot.lane.b32.xlu1 %v2115_v18, %s5771_s12 }
 0x1d2   : > { %v5319_v31 = vpop.f32.mrf.mxu1  ;;  %v6789_v42 = vadd.s32 8, %v6660_v10  ;;  %v1992_v11 = vrot.slane %v6759_v24, 7  ;;  %v1897_v44 = vmax.f32 %v1824_v63, 0.0  ;;  %v2113_v3 = vsel %vm760_vm1, %v2111_v20, %v2112_v14 }
 0x1d3   : > { %v1796_v28 = vadd.f32 %v1717_v56, %v1521_v25  ;;  %v6772_v29 = vpop.f32.mrf.mxu0  ;;  %v1828_v41 = vadd.f32 %v6665_v58, %v1797_v0  ;;  %v6796_v51 = vadd.s32 9, %v6660_v10  ;;  %v1896_v2 = vmax.f32 %v1823_v15, 0.0  ;;  %2170 = vrot.lane.b32.xlu0 %v2113_v3, %s5771_s12 }
 0x1d4   : > { %v1530_v39 = vpop.f32.mrf.mxu1  ;;  %v1899_v57 = vmax.f32 %v1826_v1, 0.0  ;;  %v1898_v16 = vmax.f32 %v1825_v22, 0.0  ;;  %v2246_v27 = vrot.slane %v2071_v59, 2  ;;  %v1993_v50 = vrot.slane %v1943_v38, 7  ;;  %v4930_v59 = vld [vmem:[%s8437_s5 + $0x30] sm:$0xff] }
 0x1d5   : > { %v6793_v47 = vpop.f32.mrf.mxu0  ;;  %v1827_v56 = vadd.f32 %v6665_v58, %v1796_v28  ;;  %v1536_v49 = vadd.f32 %v5319_v31, %v6632_v34  ;;  %v2243_v4 = vrot.slane %v6768_v21, 2  ;;  %v1901_v62 = vmax.f32 %v1828_v41, 0.0  ;;  %5451 = vmatprep.subr.mxu0 %v4930_v59 }
 0x1d6   : > { %v6807_v45 = vpop.f32.mrf.mxu1  ;;  %v2247_v52 = vsel %vm915_vm6, %v2244_v40, %v2246_v27  ;;  %vm1862_vm7 = vcmp.ge.s32.totalorder %v6789_v42, 0  ;;  %vm1874_vm8 = vcmp.lt.s32.totalorder %v6789_v42, 32  ;;  %v6830_v34 = vsel %vm6802_vm4, %v1897_v44, 0.0  ;;  %5452 = vmatpush3.msra.mxu0 %v4930_v59 }
 0x1d7   : > { %v6820_v63 = vpop.f32.mrf.mxu0  ;;  %2304 = vrot.lane.b32.xlu1 %v2247_v52, %s5772_s22  ;;  %v2245_v24 = vsel %vm915_vm6, %v2243_v4, %v2244_v40  ;;  %v6843_v25 = vadd.s32 10, %v6660_v10  ;;  %v6846_v7 = vadd.s32 11, %v6660_v10  ;;  %v6850_v19 = vsel %vm6802_vm4, %v1896_v2, 0.0  ;;  %vm6914_vm3 = vmand %vm1862_vm7, %vm1874_vm8 }
 0x1d8   : > { %v1540_v5 = vpop.f32.mrf.mxu1  ;;  %v6854_v15 = vsel %vm6813_vm5, %v1899_v57, 0.0  ;;  %v6858_v1 = vsel %vm6813_vm5, %v1898_v16, 0.0  ;;  %2302 = vrot.lane.b32.xlu0 %v2245_v24, %s5772_s22  ;;  %v6862_v22 = vsel %vm619_vm0, %v1992_v11, %v1993_v50  ;;  %v1900_v31 = vmax.f32 %v1827_v56, 0.0 }
 0x1d9   : > { %v5365_v0 = vpop.f32.mrf.mxu0  ;;  %v1799_v28 = vadd.f32 %v6762_v36, %v1536_v49  ;;  %v2072_v18 = vsel %vm619_vm0, %v1993_v50, 0.0  ;;  %v2117_v20 = vrot.slane %v6862_v22, 1  ;;  %vm1863_vm13 = vcmp.ge.s32.totalorder %v6796_v51, 0 }
 0x1da   : > { %v5325_v10 = vpop.f32.mrf.mxu1  ;;  %vm1875_vm14 = vcmp.lt.s32.totalorder %v6796_v51, 32  ;;  %v6871_v33 = vsel %vm6836_vm10, %v1901_v62, 0.0  ;;  %v1531_v38 = vadd.f32 %v1530_v39, %v6634_v54  ;;  %v2119_v41 = vrot.slane %v2072_v18, 1 }
 0x1db   : > { %v1747_v43 = vpop.f32.mrf.mxu0  ;;  %v6875_v40 = vsel %vm619_vm0, 0.0, %v1992_v11  ;;  %v1996_v44 = vrot.slane %v6830_v34, 7  ;;  %v1995_v3 = vrot.slane %v6850_v19, 7  ;;  %v1999_v35 = vrot.slane %v6854_v15, 7  ;;  %vm6943_vm7 = vmand %vm1863_vm13, %vm1875_vm14 }
 0x1dc   : > { %v1550_v36 = vpop.f32.mrf.mxu1  ;;  %v2116_v2 = vrot.slane %v6875_v40, 1  ;;  %v1998_v16 = vrot.slane %v6858_v1, 7  ;;  %v2120_v27 = vsel %vm760_vm1, %v2117_v20, %v2119_v41  ;;  %v1556_v54 = vadd.f32 %v5325_v10, %v6640_v60 }
 0x1dd   : > { %v5368_v57 = vpop.f32.mrf.mxu0  ;;  %v1551_v39 = vadd.f32 %v1550_v36, %v6642_v26  ;;  %v2002_v50 = vrot.slane %v6871_v33, 7  ;;  %v6888_v46 = vsel %vm6836_vm10, %v1900_v31, 0.0  ;;  %v6891_v56 = vadd.f32 %v6665_v58, %v1799_v28  ;;  %2176 = vrot.lane.b32.xlu1 %v2120_v27, %s5771_s12 }
 0x1de   : > { %v5328_v11 = vpop.f32.mrf.mxu1  ;;  %v2118_v49 = vsel %vm760_vm1, %v2116_v2, %v2117_v20  ;;  %v1798_v59 = vadd.f32 %v6772_v29, %v1531_v38  ;;  %v1803_v60 = vadd.f32 %v5365_v0, %v1556_v54  ;;  %v2249_v62 = vrot.slane %v6862_v22, 2 }
 0x1df   : > { %v1757_v4 = vpop.f32.mrf.mxu0  ;;  %2174 = vrot.lane.b32.xlu0 %v2118_v49, %s5771_s12  ;;  %v1802_v26 = vadd.f32 %v1747_v43, %v1551_v39  ;;  %vm1864_vm15 = vcmp.ge.s32.totalorder %v6843_v25, 0  ;;  %vm1876_vm2 = vcmp.lt.s32.totalorder %v6843_v25, 32  ;;  %v6902_v34 = vadd.f32 %v6807_v45, %v6636_v55 }
 0x1e0   : > { %v1560_v52 = vpop.f32.mrf.mxu1  ;;  %v2251_v14 = vrot.slane %v2072_v18, 2  ;;  %v2248_v24 = vrot.slane %v6875_v40, 2  ;;  %v1566_v29 = vadd.f32 %v5328_v11, %v6644_v30  ;;  %v2001_v19 = vrot.slane %v6888_v46, 7  ;;  %vm6977_vm13 = vmand %vm1864_vm15, %vm1876_vm2  ;;  %v7067_v46 = vld [vmem:[%s8437_s5 + $0x10] sm:$0xff] }
 0x1e1   : > { %v1541_v0 = vadd.f32 %v1540_v5, %v6638_v12  ;;  %v1834_v10 = vadd.f32 %v6665_v58, %v1803_v60  ;;  %v1833_v31 = vadd.f32 %v6665_v58, %v1802_v26  ;;  %v5371_v28 = vpop.f32.mrf.mxu0  ;;  %v1561_v12 = vadd.f32 %v1560_v52, %v6646_v37  ;;  %5411 = vmatprep.subr.mxu1 %v7067_v46 }
 0x1e2   : > { %v5331_v20 = vpop.f32.mrf.mxu1  ;;  %v2252_v30 = vsel %vm915_vm6, %v2249_v62, %v2251_v14  ;;  %v2250_v45 = vsel %vm915_vm6, %v2248_v24, %v2249_v62  ;;  %v1805_v18 = vadd.f32 %v5368_v57, %v1566_v29  ;;  %v6924_v38 = vsel %vm619_vm0, %v1995_v3, %v1996_v44 }
 0x1e3   : > { %v1907_v5 = vmax.f32 %v1834_v10, 0.0  ;;  %v1906_v43 = vmax.f32 %v1833_v31, 0.0  ;;  %2308 = vrot.lane.b32.xlu1 %v2252_v30, %s5772_s22  ;;  %2306 = vrot.lane.b32.xlu0 %v2250_v45, %s5772_s22  ;;  %v2073_v42 = vsel %vm619_vm0, %v1996_v44, 0.0  ;;  %vm1860_vm4 = vcmp.ge.s32.totalorder %v6745_v23, 0  ;;  %v1767_v49 = vpop.f32.mrf.mxu0 }
 0x1e4   : > { %v1570_v41 = vpop.f32.mrf.mxu1  ;;  %vm1872_vm5 = vcmp.lt.s32.totalorder %v6745_v23, 32  ;;  %v1836_v36 = vadd.f32 %v6665_v58, %v1805_v18  ;;  %v1804_v2 = vadd.f32 %v1757_v4, %v1561_v12  ;;  %v2122_v37 = vrot.slane %v6924_v38, 1 }
 0x1e5   : > { %v2124_v57 = vrot.slane %v2073_v42, 1  ;;  %v6933_v27 = vsel %vm6914_vm3, %v1907_v5, 0.0  ;;  %v6937_v54 = vsel %vm6914_vm3, %v1906_v43, 0.0  ;;  %v6948_v39 = vsel %vm619_vm0, 0.0, %v1995_v3  ;;  %v5374_v24 = vpop.f32.mrf.mxu0  ;;  %vm1884_vm15 = vmand %vm1860_vm4, %vm1872_vm5 }
 0x1e6   : > { %v1576_v11 = vadd.f32 %v5331_v20, %v6653_v9  ;;  %v5334_v4 = vpop.f32.mrf.mxu1  ;;  %v1903_v60 = vmax.f32 %v6891_v56, 0.0  ;;  %v1829_v26 = vadd.f32 %v6665_v58, %v1798_v59  ;;  %v1909_v62 = vmax.f32 %v1836_v36, 0.0 }
 0x1e7   : > { %v1835_v52 = vadd.f32 %v6665_v58, %v1804_v2  ;;  %vm1865_vm8 = vcmp.ge.s32.totalorder %v6846_v7, 0  ;;  %vm1877_vm10 = vcmp.lt.s32.totalorder %v6846_v7, 32  ;;  %v2125_v51 = vsel %vm760_vm1, %v2122_v37, %v2124_v57  ;;  %v1777_v36 = vpop.f32.mrf.mxu0 }
 0x1e8   : > { %v2121_v3 = vrot.slane %v6948_v39, 1  ;;  %v1807_v14 = vadd.f32 %v5371_v28, %v1576_v11  ;;  %v1571_v9 = vadd.f32 %v1570_v41, %v6655_v6  ;;  %v1800_v29 = vadd.f32 %v6820_v63, %v1541_v0  ;;  %2180 = vrot.lane.b32.xlu1 %v2125_v51, %s5771_s12  ;;  %v1580_v20 = vpop.f32.mrf.mxu1  ;;  %vm1889_vm2 = vmand %vm1865_vm8, %vm1877_vm10 }
 0x1e9   : > { %v6962_v59 = vsel %vm6943_vm7, %v1909_v62, 0.0  ;;  %v1908_v10 = vmax.f32 %v1835_v52, 0.0  ;;  %v2254_v31 = vrot.slane %v6924_v38, 2  ;;  %v2256_v45 = vrot.slane %v2073_v42, 2 }
 0x1ea   : > { %v2123_v55 = vsel %vm760_vm1, %v2121_v3, %v2122_v37  ;;  %v1838_v30 = vadd.f32 %v6665_v58, %v1807_v14  ;;  %v1806_v28 = vadd.f32 %v1767_v49, %v1571_v9  ;;  %v1902_v6 = vmax.f32 %v1829_v26, 0.0 }
 0x1eb   : > { %v6970_v63 = vsel %vm6943_vm7, %v1908_v10, 0.0  ;;  %2178 = vrot.lane.b32.xlu0 %v2123_v55, %s5771_s12  ;;  %v2253_v18 = vrot.slane %v6948_v39, 2  ;;  %v1586_v12 = vadd.f32 %v5334_v4, %v6651_v61  ;;  %v2257_v42 = vsel %vm915_vm6, %v2254_v31, %v2256_v45 }
 0x1ec   : > { %v1911_v5 = vmax.f32 %v1838_v30, 0.0  ;;  %v1837_v43 = vadd.f32 %v6665_v58, %v1806_v28  ;;  %v1581_v41 = vadd.f32 %v1580_v20, %v6658_v8  ;;  %vm1861_vm14 = vcmp.ge.s32.totalorder %v6775_v53, 0  ;;  %2312 = vrot.lane.b32.xlu1 %v2257_v42, %s5772_s22 }
 0x1ed   : > { %vm1873_vm3 = vcmp.lt.s32.totalorder %v6775_v53, 32  ;;  %v2255_v25 = vsel %vm915_vm6, %v2253_v18, %v2254_v31  ;;  %v6995_v61 = vsel %vm619_vm0, %v1998_v16, %v1999_v35  ;;  %v2074_v8 = vsel %vm619_vm0, %v1999_v35, 0.0 }
 0x1ee   : > { %v7003_v2 = vsel %vm619_vm0, 0.0, %v1998_v16  ;;  %v7007_v37 = vsel %vm6977_vm13, %v1911_v5, 0.0  ;;  %v1910_v57 = vmax.f32 %v1837_v43, 0.0  ;;  %v2127_v44 = vrot.slane %v6995_v61, 1  ;;  %vm1885_vm4 = vmand %vm1861_vm14, %vm1873_vm3 }
 0x1ef   : > { %v2129_v11 = vrot.slane %v2074_v8, 1  ;;  %v1801_v49 = vadd.f32 %v6793_v47, %v6902_v34  ;;  %2310 = vrot.lane.b32.xlu0 %v2255_v25, %s5772_s22  ;;  %v2126_v15 = vrot.slane %v7003_v2, 1  ;;  %v1809_v35 = vadd.f32 %v5374_v24, %v1586_v12 }
 0x1f0   : > { %v1808_v1 = vadd.f32 %v1777_v36, %v1581_v41  ;;  %v1831_v16 = vadd.f32 %v6665_v58, %v1800_v29  ;;  %v7021_v4 = vsel %vm6977_vm13, %v1910_v57, 0.0  ;;  %v2259_v47 = vrot.slane %v6995_v61, 2 }
 0x1f1   : > { %v2130_v26 = vsel %vm760_vm1, %v2127_v44, %v2129_v11  ;;  %v1950_v34 = vsel %vm1884_vm15, %v1902_v6, 0.0  ;;  %v1840_v62 = vadd.f32 %v6665_v58, %v1809_v35  ;;  %v2261_v51 = vrot.slane %v2074_v8, 2 }
 0x1f2   : > { %2184 = vrot.lane.b32.xlu1 %v2130_v26, %s5771_s12  ;;  %v1839_v52 = vadd.f32 %v6665_v58, %v1808_v1  ;;  %v2128_v23 = vsel %vm760_vm1, %v2126_v15, %v2127_v44  ;;  %v2258_v3 = vrot.slane %v7003_v2, 2  ;;  %v7039_v14 = vsel %vm619_vm0, %v2001_v19, %v2002_v50 }
 0x1f3   : > { %v2075_v9 = vsel %vm619_vm0, %v2002_v50, 0.0  ;;  %v1951_v24 = vsel %vm1884_vm15, %v1903_v60, 0.0  ;;  %v1832_v29 = vadd.f32 %v6665_v58, %v1801_v49  ;;  %2182 = vrot.lane.b32.xlu0 %v2128_v23, %s5771_s12  ;;  %v1913_v7 = vmax.f32 %v1840_v62, 0.0 }
 0x1f4   : > { %v1912_v10 = vmax.f32 %v1839_v52, 0.0  ;;  %v2004_v31 = vrot.slane %v1950_v34, 7  ;;  %v2262_v20 = vsel %vm915_vm6, %v2259_v47, %v2261_v51  ;;  %v2132_v55 = vrot.slane %v7039_v14, 1 }
 0x1f5   : > { %v7053_v33 = vsel %vm619_vm0, 0.0, %v2001_v19  ;;  %v1904_v50 = vmax.f32 %v1831_v16, 0.0  ;;  %v7055_v30 = vsel %vm1889_vm2, %v1913_v7, 0.0  ;;  %v2134_v58 = vrot.slane %v2075_v9, 1 }
 0x1f6   : > { %v7057_v56 = vsel %vm1889_vm2, %v1912_v10, 0.0  ;;  %2316 = vrot.lane.b32.xlu1 %v2262_v20, %s5772_s22  ;;  %v2020_v60 = vrot.slane %v7055_v30, 7  ;;  %v2260_v45 = vsel %vm915_vm6, %v2258_v3, %v2259_v47  ;;  %v2131_v6 = vrot.slane %v7053_v33, 1 }
 0x1f7   : > { %v2019_v28 = vrot.slane %v7057_v56, 7  ;;  %v2005_v19 = vrot.slane %v1951_v24, 7  ;;  %v1905_v0 = vmax.f32 %v1832_v29, 0.0  ;;  %2314 = vrot.lane.b32.xlu0 %v2260_v45, %s5772_s22  ;;  %v2135_v12 = vsel %vm760_vm1, %v2132_v55, %v2134_v58 }
 0x1f8   : > { %v2264_v5 = vrot.slane %v7039_v14, 2  ;;  %v1952_v43 = vsel %vm1885_vm4, %v1904_v50, 0.0  ;;  %v2263_v42 = vrot.slane %v7053_v33, 2  ;;  %v2010_v53 = vrot.slane %v6937_v54, 7 }
 0x1f9   : > { %v7080_v18 = vsel %vm619_vm0, %v2019_v28, %v2020_v60  ;;  %v7087_v41 = vsel %vm619_vm0, %v2004_v31, %v2005_v19  ;;  %v2013_v36 = vrot.slane %v6970_v63, 7  ;;  %v2133_v25 = vsel %vm760_vm1, %v2131_v6, %v2132_v55 }
 0x1fa   : > { %2188 = vrot.lane.b32.xlu1 %v2135_v12, %s5771_s12  ;;  %v2266_v8 = vrot.slane %v2075_v9, 2  ;;  %v1953_v57 = vsel %vm1885_vm4, %v1905_v0, 0.0  ;;  %v2076_v44 = vsel %vm619_vm0, %v2005_v19, 0.0  ;;  %v7095_v11 = vsel %vm619_vm0, 0.0, %v2004_v31 }
 0x1fb   : > { %2186 = vrot.lane.b32.xlu0 %v2133_v25, %s5771_s12  ;;  %v2011_v49 = vrot.slane %v6933_v27, 7  ;;  %v2014_v15 = vrot.slane %v6962_v59, 7  ;;  %v2137_v54 = vrot.slane %v7087_v41, 1  ;;  %v2007_v1 = vrot.slane %v1952_v43, 7 }
 0x1fc   : > { %v2267_v35 = vsel %vm915_vm6, %v2264_v5, %v2266_v8  ;;  %v2265_v16 = vsel %vm915_vm6, %v2263_v42, %v2264_v5  ;;  %v2139_v26 = vrot.slane %v2076_v44, 1  ;;  %v2136_v47 = vrot.slane %v7095_v11, 1 }
 0x1fd   : > { %v7105_v34 = vsel %vm619_vm0, %v2010_v53, %v2011_v49  ;;  %v7110_v27 = vsel %vm619_vm0, %v2013_v36, %v2014_v15  ;;  %v2008_v59 = vrot.slane %v1953_v57, 7  ;;  %v2016_v62 = vrot.slane %v7021_v4, 7 }
 0x1fe   : > { %2320 = vrot.lane.b32.xlu1 %v2267_v35, %s5772_s22  ;;  %v2140_v52 = vsel %vm760_vm1, %v2137_v54, %v2139_v26  ;;  %v2269_v51 = vrot.slane %v7087_v41, 2  ;;  %v2017_v3 = vrot.slane %v7007_v37, 7  ;;  %v2138_v9 = vsel %vm760_vm1, %v2136_v47, %v2137_v54 }
 0x1ff   : > { %2318 = vrot.lane.b32.xlu0 %v2265_v16, %s5772_s22  ;;  %v7118_v23 = vsel %vm619_vm0, %v2007_v1, %v2008_v59  ;;  %v2271_v24 = vrot.slane %v2076_v44, 2  ;;  %v2268_v29 = vrot.slane %v7095_v11, 2  ;;  %v2077_v4 = vsel %vm619_vm0, %v2008_v59, 0.0 }
 0x200   : > { %v7126_v7 = vsel %vm619_vm0, 0.0, %v2007_v1  ;;  %v2142_v31 = vrot.slane %v7118_v23, 1  ;;  %v7131_v20 = vsel %vm619_vm0, %v2016_v62, %v2017_v3  ;;  %v2144_v55 = vrot.slane %v2077_v4, 1 }
 0x201   : > { %v2272_v10 = vsel %vm915_vm6, %v2269_v51, %v2271_v24  ;;  %v2270_v37 = vsel %vm915_vm6, %v2268_v29, %v2269_v51  ;;  %v2141_v50 = vrot.slane %v7126_v7, 1  ;;  %v2274_v45 = vrot.slane %v7118_v23, 2 }
 0x202   : > { %2192 = vrot.lane.b32.xlu1 %v2140_v52, %s5771_s12  ;;  %v2145_v58 = vsel %vm760_vm1, %v2142_v31, %v2144_v55  ;;  %v2276_v19 = vrot.slane %v2077_v4, 2  ;;  %v2273_v0 = vrot.slane %v7126_v7, 2  ;;  %v2078_v12 = vsel %vm619_vm0, %v2011_v49, 0.0 }
 0x203   : > { %2190 = vrot.lane.b32.xlu0 %v2138_v9, %s5771_s12  ;;  %v2143_v6 = vsel %vm760_vm1, %v2141_v50, %v2142_v31  ;;  %v7145_v5 = vsel %vm619_vm0, 0.0, %v2010_v53  ;;  %v2147_v42 = vrot.slane %v7105_v34, 1  ;;  %v2149_v8 = vrot.slane %v2078_v12, 1 }
 0x204   : > { %v2277_v43 = vsel %vm915_vm6, %v2274_v45, %v2276_v19  ;;  %v2275_v25 = vsel %vm915_vm6, %v2273_v0, %v2274_v45  ;;  %v2146_v57 = vrot.slane %v7145_v5, 1  ;;  %v2279_v49 = vrot.slane %v7105_v34, 2 }
 0x205   : > { %v2150_v44 = vsel %vm760_vm1, %v2147_v42, %v2149_v8  ;;  %v2281_v35 = vrot.slane %v2078_v12, 2  ;;  %v2278_v54 = vrot.slane %v7145_v5, 2  ;;  %v2079_v1 = vsel %vm619_vm0, %v2014_v15, 0.0 }
 0x206   : > { %2324 = vrot.lane.b32.xlu1 %v2272_v10, %s5772_s22  ;;  %v2148_v53 = vsel %vm760_vm1, %v2146_v57, %v2147_v42  ;;  %v7163_v16 = vsel %vm619_vm0, 0.0, %v2013_v36  ;;  %v2152_v47 = vrot.slane %v7110_v27, 1  ;;  %v2154_v52 = vrot.slane %v2079_v1, 1 }
 0x207   : > { %2322 = vrot.lane.b32.xlu0 %v2270_v37, %s5772_s22  ;;  %v2282_v26 = vsel %vm915_vm6, %v2279_v49, %v2281_v35  ;;  %v2280_v59 = vsel %vm915_vm6, %v2278_v54, %v2279_v49  ;;  %v2151_v51 = vrot.slane %v7163_v16, 1  ;;  %v2284_v63 = vrot.slane %v7110_v27, 2 }
 0x208   : > { %v2155_v15 = vsel %vm760_vm1, %v2152_v47, %v2154_v52  ;;  %v2286_v9 = vrot.slane %v2079_v1, 2  ;;  %v2283_v24 = vrot.slane %v7163_v16, 2  ;;  %v2080_v29 = vsel %vm619_vm0, %v2017_v3, 0.0 }
 0x209   : > { %v2153_v36 = vsel %vm760_vm1, %v2151_v51, %v2152_v47  ;;  %v7179_v4 = vsel %vm619_vm0, 0.0, %v2016_v62  ;;  %v2157_v31 = vrot.slane %v7131_v20, 1  ;;  %v2159_v55 = vrot.slane %v2080_v29, 1 }
 0x20a   : > { %2196 = vrot.lane.b32.xlu1 %v2145_v58, %s5771_s12  ;;  %v2287_v10 = vsel %vm915_vm6, %v2284_v63, %v2286_v9  ;;  %v2285_v37 = vsel %vm915_vm6, %v2283_v24, %v2284_v63  ;;  %v2156_v50 = vrot.slane %v7179_v4, 1  ;;  %v2289_v3 = vrot.slane %v7131_v20, 2 }
 0x20b   : > { %2194 = vrot.lane.b32.xlu0 %v2143_v6, %s5771_s12  ;;  %v2160_v58 = vsel %vm760_vm1, %v2157_v31, %v2159_v55  ;;  %v2291_v45 = vrot.slane %v2080_v29, 2  ;;  %v2288_v6 = vrot.slane %v7179_v4, 2  ;;  %v2239_v0 = vrot.slane %v6705_v17, 2  ;;  %v2420_v29 = vld [vmem:[%s8437_s5 + $0x8] sm:$0xff] }
 0x20c   : > { %v2158_v62 = vsel %vm760_vm1, %v2156_v50, %v2157_v31  ;;  %v2238_v42 = vrot.slane %v6720_v32, 2  ;;  %v7205_v8 = vsel %vm619_vm0, 0.0, %v2019_v28  ;;  %vm8445_vm5 = vcmask 130048  }
 0x20d   : > { %v2292_v19 = vsel %vm915_vm6, %v2289_v3, %v2291_v45  ;;  %v2290_v12 = vsel %vm915_vm6, %v2288_v6, %v2289_v3  ;;  %v2161_v30 = vrot.slane %v7205_v8, 1  ;;  %v2293_v35 = vrot.slane %v7205_v8, 2 }
 0x20e   : > { %2328 = vrot.lane.b32.xlu1 %v2277_v43, %s5772_s22  ;;  %v2241_v43 = vrot.slane %v6693_v13, 2  ;;  %v2240_v13 = vsel %vm915_vm6, %v2238_v42, %v2239_v0  ;;  %vm8444_vm7 = vcmask 195584  }
 0x20f   : > { %2326 = vrot.lane.b32.xlu0 %v2275_v25, %s5772_s22  ;;  %v2081_v25 = vsel %vm619_vm0, %v2020_v60, 0.0  ;;  %v2294_v60 = vrot.slane %v7080_v18, 2 }
 0x210   : > { %v2242_v57 = vsel %vm915_vm6, %v2239_v0, %v2241_v43  ;;  %v2164_v49 = vrot.slane %v2081_v25, 1 }
 0x211   : > { %v2295_v1 = vsel %vm915_vm6, %v2293_v35, %v2294_v60 }
 0x212   : > { %2200 = vrot.lane.b32.xlu1 %v2150_v44, %s5771_s12  ;;  %v2162_v44 = vrot.slane %v7080_v18, 1 }
 0x213   : > { %2198 = vrot.lane.b32.xlu0 %v2148_v53, %s5771_s12  ;;  %v2296_v53 = vrot.slane %v2081_v25, 2 }
 0x214   : > { %v2165_v56 = vsel %vm760_vm1, %v2162_v44, %v2164_v49  ;;  %v2163_v28 = vsel %vm760_vm1, %v2161_v30, %v2162_v44 }
 0x215   : > { %v2297_v54 = vsel %vm915_vm6, %v2294_v60, %v2296_v53 }
 0x216   : > { %2332 = vrot.lane.b32.xlu1 %v2282_v26, %s5772_s22 }
 0x217   : > { %2330 = vrot.lane.b32.xlu0 %v2280_v59, %s5772_s22 }
 0x21a   : > { %2204 = vrot.lane.b32.xlu1 %v2155_v15, %s5771_s12 }
 0x21b   : > { %2202 = vrot.lane.b32.xlu0 %v2153_v36, %s5771_s12 }
 0x21e   : > { %2336 = vrot.lane.b32.xlu1 %v2287_v10, %s5772_s22 }
 0x21f   : > { %2334 = vrot.lane.b32.xlu0 %v2285_v37, %s5772_s22 }
 0x222   : > { %2208 = vrot.lane.b32.xlu1 %v2160_v58, %s5771_s12 }
 0x223   : > { %2206 = vrot.lane.b32.xlu0 %v2158_v62, %s5771_s12 }
 0x226   : > { %2340 = vrot.lane.b32.xlu1 %v2292_v19, %s5772_s22 }
 0x227   : > { %2338 = vrot.lane.b32.xlu0 %v2290_v12, %s5772_s22 }
 0x22a   : > { %2300 = vrot.lane.b32.xlu1 %v2242_v57, %s5772_s22 }
 0x22b   : > { %2298 = vrot.lane.b32.xlu0 %v2240_v13, %s5772_s22 }
 0x22e   : > { %2212 = vrot.lane.b32.xlu1 %v2165_v56, %s5771_s12 }
 0x22f   : > { %2210 = vrot.lane.b32.xlu0 %v2163_v28, %s5771_s12 }
 0x232   : > { %2344 = vrot.lane.b32.xlu1 %v2297_v54, %s5772_s22 }
 0x233   : > { %2342 = vrot.lane.b32.xlu0 %v2295_v1, %s5772_s22 }
 0x23e   : > { %v7224_v26 = vpop.permute.xlu1 %2168 }
 0x23f   : > { %v7226_v47 = vpop.permute.xlu0 %2166 }
 0x243   : > { %v2173_v59 = vpop.permute.xlu1 %2172 }
 0x244   : > { %v2373_v51 = vsel %vm8446_vm11, %v6732_v48, %v2173_v59  ;;  %v2419_v48 = vld [vmem:[%s8437_s5] sm:$0xff] }
 0x245   : > { %v2171_v52 = vpop.permute.xlu0 %2170 }
 0x246   : > { %v2372_v63 = vsel %vm8446_vm11, %v6768_v21, %v2171_v52 }
 0x249   : > { %v2305_v15 = vpop.permute.xlu1 %2304 }
 0x24a   : > { %v7233_v36 = vsel %vm8445_vm5, %v2373_v51, %v2305_v15  ;;  %v2303_v9 = vpop.permute.xlu0 %2302 }
 0x24b   : > { %v7236_v24 = vsel %vm8445_vm5, %v2372_v63, %v2303_v9 }
 0x24c   : > { %5381 = vmatprep.mubr.msk.f32.mxu1 %vm8444_vm7, %v7236_v24 }
 0x24d   : > { %5382 = vmatmul.mubr.msk.f32.vlgmr.msra.gmra.mxu1 %vm8444_vm7, %v7233_v36 }
 0x24e   : > { %5412 = vmatpush3.msra.mxu1 %v7067_v46 }
 0x24f   : > { %v2177_v21 = vpop.permute.xlu1 %2176  ;;  %5413 = vmatprep.subr.mxu1 %v2420_v29 }
 0x250   : > { %5414 = vmatpush3.msra.mxu1 %v2420_v29  ;;  %v2375_v31 = vsel %vm8446_vm11, %v6862_v22, %v2177_v21 }
 0x251   : > { %v2175_v10 = vpop.permute.xlu0 %2174  ;;  %5415 = vmatprep.subr.mxu1 %v2419_v48 }
 0x252   : > { %5416 = vmatpush3.msra.mxu1 %v2419_v48  ;;  %v2374_v37 = vsel %vm8446_vm11, %v6875_v40, %v2175_v10 }
 0x255   : > { %v2309_v55 = vpop.permute.xlu1 %2308  ;;  %v2307_v50 = vpop.permute.xlu0 %2306 }
 0x256   : > { %v7254_v46 = vsel %vm8445_vm5, %v2375_v31, %v2309_v55  ;;  %v7257_v58 = vsel %vm8445_vm5, %v2374_v37, %v2307_v50 }
 0x257   : > { %5384 = vmatprep.mubr.msk.f32.mxu1 %vm8444_vm7, %v7257_v58  ;;  %5453 = vmatprep.mubr.msk.f32.mxu0 %vm8444_vm7, %v7257_v58 }
 0x258   : > { %5385 = vmatmul.mubr.msk.f32.gmra.mxu1 %vm8444_vm7, %v7254_v46  ;;  %5454 = vmatmul.mubr.msk.f32.vlgmr.msra.gmra.mxu0 %vm8444_vm7, %v7254_v46 }
 0x25a   : > { %v2181_v22 = vpop.permute.xlu1 %2180 }
 0x25b   : > { %v2377_v62 = vsel %vm8446_vm11, %v6924_v38, %v2181_v22 }
 0x25d   : > { %v2179_v40 = vpop.permute.xlu0 %2178 }
 0x25e   : > { %v2313_v3 = vpop.permute.xlu1 %2312  ;;  %v2376_v45 = vsel %vm8446_vm11, %v6948_v39, %v2179_v40 }
 0x25f   : > { %v7272_v6 = vsel %vm8445_vm5, %v2377_v62, %v2313_v3 }
 0x261   : > { %v2311_v19 = vpop.permute.xlu0 %2310 }
 0x262   : > { %v7275_v0 = vsel %vm8445_vm5, %v2376_v45, %v2311_v19 }
 0x263   : > { %5387 = vmatprep.mubr.msk.f32.mxu1 %vm8444_vm7, %v7275_v0  ;;  %5456 = vmatprep.mubr.msk.f32.mxu0 %vm8444_vm7, %v7275_v0 }
 0x264   : > { %v2185_v12 = vpop.permute.xlu1 %2184  ;;  %5388 = vmatmul.mubr.msk.f32.gmra.mxu1 %vm8444_vm7, %v7272_v6  ;;  %5457 = vmatmul.mubr.msk.f32.gmra.mxu0 %vm8444_vm7, %v7272_v6 }
 0x265   : > { %v2183_v38 = vpop.permute.xlu0 %2182  ;;  %v2379_v43 = vsel %vm8446_vm11, %v6995_v61, %v2185_v12 }
 0x266   : > { %v2378_v42 = vsel %vm8446_vm11, %v7003_v2, %v2183_v38 }
 0x268   : > { %v2317_v39 = vpop.permute.xlu1 %2316 }
 0x269   : > { %v7290_v25 = vsel %vm8445_vm5, %v2379_v43, %v2317_v39  ;;  %v2315_v57 = vpop.permute.xlu0 %2314 }
 0x26a   : > { %v7293_v44 = vsel %vm8445_vm5, %v2378_v42, %v2315_v57 }
 0x26b   : > { %5390 = vmatprep.mubr.msk.f32.mxu1 %vm8444_vm7, %v7293_v44  ;;  %5459 = vmatprep.mubr.msk.f32.mxu0 %vm8444_vm7, %v7293_v44 }
 0x26c   : > { %v2189_v13 = vpop.permute.xlu1 %2188  ;;  %5391 = vmatmul.mubr.msk.f32.gmra.mxu1 %vm8444_vm7, %v7290_v25  ;;  %5460 = vmatmul.mubr.msk.f32.gmra.mxu0 %vm8444_vm7, %v7290_v25 }
 0x26d   : > { %v2187_v61 = vpop.permute.xlu0 %2186  ;;  %v2381_v49 = vsel %vm8446_vm11, %v7039_v14, %v2189_v13 }
 0x26e   : > { %v2380_v30 = vsel %vm8446_vm11, %v7053_v33, %v2187_v61  ;;  %v2371_v61 = vsel %vm8446_vm11, %v6705_v17, %v7224_v26 }
 0x270   : > { %v2321_v2 = vpop.permute.xlu1 %2320 }
 0x271   : > { %v7308_v56 = vsel %vm8445_vm5, %v2381_v49, %v2321_v2  ;;  %v2319_v60 = vpop.permute.xlu0 %2318 }
 0x272   : > { %v7311_v28 = vsel %vm8445_vm5, %v2380_v30, %v2319_v60 }
 0x273   : > { %5393 = vmatprep.mubr.msk.f32.mxu1 %vm8444_vm7, %v7311_v28  ;;  %5462 = vmatprep.mubr.msk.f32.mxu0 %vm8444_vm7, %v7311_v28 }
 0x274   : > { %v2193_v53 = vpop.permute.xlu1 %2192  ;;  %5394 = vmatmul.mubr.msk.f32.gmra.mxu1 %vm8444_vm7, %v7308_v56  ;;  %5463 = vmatmul.mubr.msk.f32.gmra.mxu0 %vm8444_vm7, %v7308_v56 }
 0x275   : > { %v2191_v14 = vpop.permute.xlu0 %2190  ;;  %v2383_v35 = vsel %vm8446_vm11, %v7087_v41, %v2193_v53 }
 0x276   : > { %v2382_v54 = vsel %vm8446_vm11, %v7095_v11, %v2191_v14 }
 0x278   : > { %v2325_v33 = vpop.permute.xlu1 %2324 }
 0x279   : > { %v7326_v1 = vsel %vm8445_vm5, %v2383_v35, %v2325_v33  ;;  %v2323_v59 = vpop.permute.xlu0 %2322 }
 0x27a   : > { %v7329_v52 = vsel %vm8445_vm5, %v2382_v54, %v2323_v59 }
 0x27b   : > { %5396 = vmatprep.mubr.msk.f32.mxu1 %vm8444_vm7, %v7329_v52  ;;  %5465 = vmatprep.mubr.msk.f32.mxu0 %vm8444_vm7, %v7329_v52 }
 0x27c   : > { %v2197_v51 = vpop.permute.xlu1 %2196  ;;  %5397 = vmatmul.mubr.msk.f32.gmra.mxu1 %vm8444_vm7, %v7326_v1  ;;  %5466 = vmatmul.mubr.msk.f32.gmra.mxu0 %vm8444_vm7, %v7326_v1 }
 0x27d   : > { %v2195_v41 = vpop.permute.xlu0 %2194  ;;  %v2385_v15 = vsel %vm8446_vm11, %v7118_v23, %v2197_v51 }
 0x27e   : > { %v2384_v63 = vsel %vm8446_vm11, %v7126_v7, %v2195_v41 }
 0x280   : > { %v2329_v11 = vpop.permute.xlu1 %2328 }
 0x281   : > { %v7344_v9 = vsel %vm8445_vm5, %v2385_v15, %v2329_v11  ;;  %v2327_v29 = vpop.permute.xlu0 %2326 }
 0x282   : > { %v7347_v48 = vsel %vm8445_vm5, %v2384_v63, %v2327_v29 }
 0x283   : > { %5399 = vmatprep.mubr.msk.f32.mxu1 %vm8444_vm7, %v7347_v48  ;;  %5468 = vmatprep.mubr.msk.f32.mxu0 %vm8444_vm7, %v7347_v48 }
 0x284   : > { %v2201_v21 = vpop.permute.xlu1 %2200  ;;  %5400 = vmatmul.mubr.msk.f32.gmra.mxu1 %vm8444_vm7, %v7344_v9  ;;  %5469 = vmatmul.mubr.msk.f32.gmra.mxu0 %vm8444_vm7, %v7344_v9 }
 0x285   : > { %v2199_v23 = vpop.permute.xlu0 %2198  ;;  %v2387_v10 = vsel %vm8446_vm11, %v7105_v34, %v2201_v21  ;;  %v7471_v21 = vstv %s4954_s29  ;;  %s5779_s29 = smov 32  }
 0x286   : > { %v2386_v31 = vsel %vm8446_vm11, %v7145_v5, %v2199_v23  ;;  %vm3056_vm8 = vcmp.ge.s32.totalorder %v7471_v21, 0  ;;  %vm3066_vm10 = vcmp.lt.s32.totalorder %v7471_v21, 32 }
 0x287   : > { %vm7482_vm13 = vmand %vm3056_vm8, %vm3066_vm10 }
 0x288   : > { %v2333_v7 = vpop.permute.xlu1 %2332 }
 0x289   : > { %v7362_v37 = vsel %vm8445_vm5, %v2387_v10, %v2333_v7  ;;  %v2331_v55 = vpop.permute.xlu0 %2330  ;;  %v7476_v10 = vld [vmem:[%s8438_s6] ss:$0 sm:$0xff] }
 0x28a   : > { %v2411_v50 = vsel %vm8445_vm5, %v2386_v31, %v2331_v55 }
 0x28b   : > { %5402 = vmatprep.mubr.msk.f32.mxu1 %vm8444_vm7, %v2411_v50  ;;  %5471 = vmatprep.mubr.msk.f32.mxu0 %vm8444_vm7, %v2411_v50 }
 0x28c   : > { %v2205_v22 = vpop.permute.xlu1 %2204  ;;  %5403 = vmatmul.mubr.msk.f32.gmra.mxu1 %vm8444_vm7, %v7362_v37  ;;  %5472 = vmatmul.mubr.msk.f32.gmra.mxu0 %vm8444_vm7, %v7362_v37 }
 0x28d   : > { %v2203_v34 = vpop.permute.xlu0 %2202  ;;  %v2389_v5 = vsel %vm8446_vm11, %v7110_v27, %v2205_v22 }
 0x28e   : > { %v2388_v3 = vsel %vm8446_vm11, %v7163_v16, %v2203_v34 }
 0x290   : > { %v2337_v40 = vpop.permute.xlu1 %2336 }
 0x291   : > { %v2414_v62 = vsel %vm8445_vm5, %v2389_v5, %v2337_v40  ;;  %v2335_v45 = vpop.permute.xlu0 %2334 }
 0x292   : > { %v2413_v19 = vsel %vm8445_vm5, %v2388_v3, %v2335_v45 }
 0x293   : > { %5405 = vmatprep.mubr.msk.f32.mxu1 %vm8444_vm7, %v2413_v19  ;;  %5474 = vmatprep.mubr.msk.f32.mxu0 %vm8444_vm7, %v2413_v19 }
 0x294   : > { %v2209_v12 = vpop.permute.xlu1 %2208  ;;  %5406 = vmatmul.mubr.msk.f32.gmra.mxu1 %vm8444_vm7, %v2414_v62  ;;  %5475 = vmatmul.mubr.msk.f32.gmra.mxu0 %vm8444_vm7, %v2414_v62 }
 0x295   : > { %v2207_v38 = vpop.permute.xlu0 %2206  ;;  %v2391_v27 = vsel %vm8446_vm11, %v7131_v20, %v2209_v12  ;;  %v2370_v20 = vsel %vm8446_vm11, %v6720_v32, %v7226_v47 }
 0x296   : > { %v2390_v16 = vsel %vm8446_vm11, %v7179_v4, %v2207_v38 }
 0x298   : > { %v2341_v39 = vpop.permute.xlu1 %2340 }
 0x299   : > { %v2416_v43 = vsel %vm8445_vm5, %v2391_v27, %v2341_v39  ;;  %v2339_v42 = vpop.permute.xlu0 %2338 }
 0x29a   : > { %v2415_v57 = vsel %vm8445_vm5, %v2390_v16, %v2339_v42 }
 0x29b   : > { %5408 = vmatprep.mubr.msk.f32.mxu1 %vm8444_vm7, %v2415_v57  ;;  %5477 = vmatprep.mubr.msk.f32.mxu0 %vm8444_vm7, %v2415_v57 }
 0x29c   : > { %v2301_v13 = vpop.permute.xlu1 %2300  ;;  %5409 = vmatmul.mubr.msk.f32.gmra.mxu1 %vm8444_vm7, %v2416_v43  ;;  %5478 = vmatmul.mubr.msk.f32.gmra.mxu0 %vm8444_vm7, %v2416_v43  ;;  %v3048_v43 = vadd.s32 2, %v7471_v21 }
 0x29d   : > { %v2396_v4 = vsel %vm8445_vm5, %v2371_v61, %v2301_v13  ;;  %v2299_v2 = vpop.permute.xlu0 %2298 }
 0x29e   : > { %v2395_v49 = vsel %vm8445_vm5, %v2370_v20, %v2299_v2  ;;  %vm3058_vm2 = vcmp.ge.s32.totalorder %v3048_v43, 0  ;;  %vm3068_vm4 = vcmp.lt.s32.totalorder %v3048_v43, 32 }
 0x29f   : > { %5417 = vmatprep.mubr.msk.f32.mxu1 %vm8444_vm7, %v2395_v49  ;;  %vm7544_vm10 = vmand %vm3058_vm2, %vm3068_vm4 }
 0x2a0   : > { %v2213_v30 = vpop.permute.xlu1 %2212  ;;  %5418 = vmatmul.mubr.msk.f32.vlgmr.msra.gmra.mxu1 %vm8444_vm7, %v2396_v4 }
 0x2a1   : > { %5420 = vmatprep.mubr.msk.f32.mxu1 %vm8444_vm7, %v7236_v24  ;;  %v2211_v17 = vpop.permute.xlu0 %2210  ;;  %v2393_v60 = vsel %vm8446_vm11, %v7080_v18, %v2213_v30 }
 0x2a2   : > { %v2392_v32 = vsel %vm8446_vm11, %v7205_v8, %v2211_v17 }
 0x2a4   : > { %v2345_v26 = vpop.permute.xlu1 %2344  ;;  %5421 = vmatmul.mubr.msk.f32.gmra.mxu1 %vm8444_vm7, %v7233_v36 }
 0x2a5   : > { %v2418_v47 = vsel %vm8445_vm5, %v2393_v60, %v2345_v26  ;;  %5423 = vmatprep.mubr.msk.f32.mxu1 %vm8444_vm7, %v7257_v58  ;;  %v2343_v53 = vpop.permute.xlu0 %2342 }
 0x2a6   : > { %v2417_v14 = vsel %vm8445_vm5, %v2392_v32, %v2343_v53 }
 0x2a7   : > { %5480 = vmatprep.mubr.msk.f32.mxu0 %vm8444_vm7, %v2417_v14 }
 0x2a8   : > { %5424 = vmatmul.mubr.msk.f32.gmra.mxu1 %vm8444_vm7, %v7254_v46  ;;  %5481 = vmatmul.mubr.msk.f32.gmra.mxu0 %vm8444_vm7, %v2418_v47 }
 0x2a9   : > { %5426 = vmatprep.mubr.msk.f32.mxu1 %vm8444_vm7, %v7275_v0 }
 0x2ac   : > { %5427 = vmatmul.mubr.msk.f32.gmra.mxu1 %vm8444_vm7, %v7272_v6 }
 0x2ad   : > { %5429 = vmatprep.mubr.msk.f32.mxu1 %vm8444_vm7, %v7293_v44 }
 0x2b0   : > { %5430 = vmatmul.mubr.msk.f32.gmra.mxu1 %vm8444_vm7, %v7290_v25 }
 0x2b1   : > { %5432 = vmatprep.mubr.msk.f32.mxu1 %vm8444_vm7, %v7311_v28 }
 0x2b4   : > { %5433 = vmatmul.mubr.msk.f32.gmra.mxu1 %vm8444_vm7, %v7308_v56 }
 0x2b5   : > { %5435 = vmatprep.mubr.msk.f32.mxu1 %vm8444_vm7, %v7329_v52 }
 0x2b8   : > { %5436 = vmatmul.mubr.msk.f32.gmra.mxu1 %vm8444_vm7, %v7326_v1 }
 0x2b9   : > { %5438 = vmatprep.mubr.msk.f32.mxu1 %vm8444_vm7, %v7347_v48 }
 0x2bc   : > { %5439 = vmatmul.mubr.msk.f32.gmra.mxu1 %vm8444_vm7, %v7344_v9 }
 0x2bd   : > { %5441 = vmatprep.mubr.msk.f32.mxu1 %vm8444_vm7, %v2411_v50 }
 0x2c0   : > { %5442 = vmatmul.mubr.msk.f32.gmra.mxu1 %vm8444_vm7, %v7362_v37  ;;  %v3047_v37 = vadd.s32 1, %v7471_v21 }
 0x2c1   : > { %5444 = vmatprep.mubr.msk.f32.mxu1 %vm8444_vm7, %v2413_v19 }
 0x2c2   : > { %vm3057_vm14 = vcmp.ge.s32.totalorder %v3047_v37, 0  ;;  %vm3067_vm3 = vcmp.lt.s32.totalorder %v3047_v37, 32 }
 0x2c3   : > { %vm7494_vm15 = vmand %vm3057_vm14, %vm3067_vm3 }
 0x2c4   : > { %5445 = vmatmul.mubr.msk.f32.gmra.mxu1 %vm8444_vm7, %v2414_v62 }
 0x30d   : > { %v5383_v18 = vpop.f32.mrf.mxu1 }
 0x30f   : > { %v2553_v8 = vpop.f32.mrf.mxu1 }
 0x318   : > { %v5386_v36 = vpop.f32.mrf.mxu1  ;;  %v5455_v1 = vpop.f32.mrf.mxu0 }
 0x31a   : > { %v2563_v24 = vpop.f32.mrf.mxu1  ;;  %v2899_v52 = vpop.f32.mrf.mxu0 }
 0x324   : > { %v5389_v46 = vpop.f32.mrf.mxu1  ;;  %v5458_v41 = vpop.f32.mrf.mxu0 }
 0x326   : > { %v2573_v58 = vpop.f32.mrf.mxu1  ;;  %v2909_v15 = vpop.f32.mrf.mxu0 }
 0x32c   : > { %v7442_v6 = vpop.f32.mrf.mxu1  ;;  %v5461_v9 = vpop.f32.mrf.mxu0 }
 0x32e   : > { %v7444_v0 = vpop.f32.mrf.mxu1  ;;  %v2919_v23 = vpop.f32.mrf.mxu0 }
 0x334   : > { %v7446_v25 = vpop.f32.mrf.mxu1  ;;  %v5464_v55 = vpop.f32.mrf.mxu0 }
 0x336   : > { %v7448_v44 = vpop.f32.mrf.mxu1  ;;  %v2929_v19 = vpop.f32.mrf.mxu0 }
 0x33c   : > { %v7450_v56 = vpop.f32.mrf.mxu1  ;;  %v7488_v42 = vpop.f32.mrf.mxu0 }
 0x33e   : > { %v7452_v28 = vpop.f32.mrf.mxu1  ;;  %v7501_v14 = vpop.f32.mrf.mxu0 }
 0x344   : > { %v7454_v33 = vpop.f32.mrf.mxu1 }
 0x346   : > { %v7456_v35 = vpop.f32.mrf.mxu1 }
 0x34c   : > { %v7458_v54 = vpop.f32.mrf.mxu1 }
 0x34e   : > { %v7460_v59 = vpop.f32.mrf.mxu1 }
 0x354   : > { %v7462_v51 = vpop.f32.mrf.mxu1 }
 0x356   : > { %v7464_v11 = vpop.f32.mrf.mxu1 }
 0x35c   : > { %v7466_v63 = vpop.f32.mrf.mxu1 }
 0x35e   : > { %v7469_v29 = vpop.f32.mrf.mxu1 }
 0x360   : > { %v5419_v48 = vpop.f32.mrf.mxu1 }
 0x361   : > { %v2730_v7 = vadd.f32 %v5419_v48, %v5383_v18  ;;  %v3528_v48 = vld [vmem:[%s8439_s7 + $0x10] sm:$0xff] }
 0x362   : > { %v2724_v31 = vpop.f32.mrf.mxu1  ;;  %5513 = vmatprep.subr.mxu0 %v3528_v48 }
 0x363   : > { %v2999_v50 = vadd.f32 %v5455_v1, %v2730_v7  ;;  %v2725_v22 = vadd.f32 %v2724_v31, %v2553_v8  ;;  %5514 = vmatpush3.msra.mxu0 %v3528_v48 }
 0x364   : > { %v5422_v34 = vpop.f32.mrf.mxu1 }
 0x365   : > { %v3026_v40 = vadd.f32 %v7476_v10, %v2999_v50  ;;  %v2998_v5 = vadd.f32 %v2899_v52, %v2725_v22  ;;  %v2740_v3 = vadd.f32 %v5422_v34, %v5386_v36  ;;  %v3049_v52 = vadd.s32 3, %v7471_v21 }
 0x366   : > { %v2734_v45 = vpop.f32.mrf.mxu1 }
 0x367   : > { %v3087_v12 = vmax.f32 %v3026_v40, 0.0  ;;  %v3025_v38 = vadd.f32 %v7476_v10, %v2998_v5  ;;  %v3001_v39 = vadd.f32 %v5458_v41, %v2740_v3  ;;  %v2735_v27 = vadd.f32 %v2734_v45, %v2563_v24 }
 0x368   : > { %v5425_v16 = vpop.f32.mrf.mxu1  ;;  %v7532_v45 = vadd.s32 4, %v7471_v21  ;;  %vm3059_vm8 = vcmp.ge.s32.totalorder %v3049_v52, 0 }
 0x369   : > { %v3127_v57 = vsel %vm7482_vm13, %v3087_v12, 0.0  ;;  %v3086_v13 = vmax.f32 %v3025_v38, 0.0  ;;  %v3028_v61 = vadd.f32 %v7476_v10, %v3001_v39  ;;  %v3000_v20 = vadd.f32 %v2909_v15, %v2735_v27  ;;  %v4957_v15 = vld [vmem:[%s8439_s7 + $0x28] sm:$0xff] }
 0x36a   : > { %v2750_v2 = vadd.f32 %v5425_v16, %v5389_v46  ;;  %v2744_v49 = vpop.f32.mrf.mxu1  ;;  %v3167_v32 = vrot.slane %v3127_v57, 7  ;;  %5483 = vmatprep.subr.mxu1 %v4957_v15  ;;  %vm3060_vm14 = vcmp.ge.s32.totalorder %v7532_v45, 0  ;;  %vm3070_vm3 = vcmp.lt.s32.totalorder %v7532_v45, 32 }
 0x36b   : > { %v3126_v30 = vsel %vm7482_vm13, %v3086_v13, 0.0  ;;  %v3089_v17 = vmax.f32 %v3028_v61, 0.0  ;;  %v3027_v26 = vadd.f32 %v7476_v10, %v3000_v20  ;;  %v2745_v60 = vadd.f32 %v2744_v49, %v2573_v58  ;;  %5484 = vmatpush3.msra.mxu1 %v4957_v15  ;;  %v3527_v49 = vld [vmem:[%s8439_s7 + $0x8] sm:$0xff] }
 0x36c   : > { %v3166_v47 = vrot.slane %v3126_v30, 7  ;;  %v5428_v53 = vpop.f32.mrf.mxu1  ;;  %v3003_v1 = vadd.f32 %v5461_v9, %v2750_v2  ;;  %vm3069_vm13 = vcmp.lt.s32.totalorder %v3049_v52, 32  ;;  %v7551_v13 = vsel %vm619_vm0, %v3167_v32, 0.0  ;;  %5515 = vmatprep.subr.mxu0 %v3527_v49 }
 0x36d   : > { %v3129_v18 = vsel %vm7494_vm15, %v3089_v17, 0.0  ;;  %v3088_v8 = vmax.f32 %v3027_v26, 0.0  ;;  %v3002_v36 = vadd.f32 %v2919_v23, %v2745_v60  ;;  %v2760_v24 = vadd.f32 %v5428_v53, %v7442_v6  ;;  %v7519_v23 = vpop.f32.mrf.mxu0  ;;  %v3526_v26 = vld [vmem:[%s8439_s7] sm:$0xff]  ;;  %5516 = vmatpush3.msra.mxu0 %v3527_v49 }
 0x36e   : > { %v7507_v46 = vsel %vm619_vm0, 0.0, %v3166_v47  ;;  %v2754_v58 = vpop.f32.mrf.mxu1  ;;  %v7511_v41 = vsel %vm619_vm0, %v3166_v47, %v3167_v32  ;;  %v3170_v6 = vrot.slane %v3129_v18, 7  ;;  %v3030_v39 = vadd.f32 %v7476_v10, %v3003_v1  ;;  %5517 = vmatprep.subr.mxu0 %v3526_v26 }
 0x36f   : > { %v7523_v9 = vsel %vm7494_vm15, %v3088_v8, 0.0  ;;  %v3029_v7 = vadd.f32 %v7476_v10, %v3002_v36  ;;  %v2755_v31 = vadd.f32 %v2754_v58, %v7444_v0  ;;  %v3005_v50 = vadd.f32 %v5464_v55, %v2760_v24  ;;  %v2949_v38 = vpop.f32.mrf.mxu0  ;;  %vm7574_vm15 = vmand %vm3059_vm8, %vm3069_vm13  ;;  %5518 = vmatpush3.msra.mxu0 %v3526_v26 }
 0x370   : > { %v3169_v37 = vrot.slane %v7523_v9, 7  ;;  %v5431_v22 = vpop.f32.mrf.mxu1  ;;  %v3266_v34 = vrot.slane %v7507_v46, 1  ;;  %v3267_v40 = vrot.slane %v7511_v41, 1  ;;  %v3237_v57 = vsel %vm619_vm0, %v3170_v6, 0.0  ;;  %vm7649_vm13 = vmand %vm3060_vm14, %vm3070_vm3 }
 0x371   : > { %v3090_v5 = vmax.f32 %v3029_v7, 0.0  ;;  %v3004_v3 = vadd.f32 %v2929_v19, %v2755_v31  ;;  %v2770_v62 = vadd.f32 %v5431_v22, %v7446_v25  ;;  %v3032_v19 = vadd.f32 %v7476_v10, %v3005_v50  ;;  %v7553_v61 = vpop.f32.mrf.mxu0 }
 0x372   : > { %v2764_v0 = vpop.f32.mrf.mxu1  ;;  %v3268_v12 = vsel %vm760_vm1, %v3266_v34, %v3267_v40  ;;  %v7538_v55 = vsel %vm619_vm0, %v3169_v37, %v3170_v6  ;;  %v3091_v60 = vmax.f32 %v3030_v39, 0.0  ;;  %v3274_v32 = vrot.slane %v3237_v57, 1 }
 0x373   : > { %v3031_v27 = vadd.f32 %v7476_v10, %v3004_v3  ;;  %3316 = vrot.lane.b32.xlu0 %v3268_v12, %s5771_s12  ;;  %v7557_v20 = vsel %vm7544_vm10, %v3090_v5, 0.0  ;;  %v3007_v4 = vadd.f32 %v7488_v42, %v2770_v62  ;;  %v3272_v2 = vrot.slane %v7538_v55, 1  ;;  %v7582_v24 = vpop.f32.mrf.mxu0 }
 0x374   : > { %v5434_v16 = vpop.f32.mrf.mxu1  ;;  %v2765_v30 = vadd.f32 %v2764_v0, %v7448_v44  ;;  %v3172_v47 = vrot.slane %v7557_v20, 7  ;;  %v3093_v44 = vmax.f32 %v3032_v19, 0.0  ;;  %v7579_v18 = vadd.s32 5, %v7471_v21 }
 0x375   : > { %v3092_v43 = vmax.f32 %v3031_v27, 0.0  ;;  %v2780_v42 = vadd.f32 %v5434_v16, %v7450_v56  ;;  %v3269_v8 = vrot.slane %v7551_v13, 1  ;;  %v3034_v1 = vadd.f32 %v7476_v10, %v3007_v4  ;;  %v5476_v50 = vpop.f32.mrf.mxu0  ;;  %v4956_v27 = vld [vmem:[%s8439_s7 + $0x20] sm:$0xff] }
 0x376   : > { %v2774_v17 = vpop.f32.mrf.mxu1  ;;  %v3275_v58 = vsel %vm760_vm1, %v3272_v2, %v3274_v32  ;;  %v3006_v15 = vadd.f32 %v7501_v14, %v2765_v30  ;;  %v7597_v6 = vadd.s32 6, %v7471_v21  ;;  %v7600_v31 = vadd.s32 8, %v7471_v21  ;;  %5485 = vmatprep.subr.mxu1 %v4956_v27 }
 0x377   : > { %v7586_v56 = vsel %vm7574_vm15, %v3092_v43, 0.0  ;;  %v2775_v52 = vadd.f32 %v2774_v17, %v7452_v28  ;;  %3322 = vrot.lane.b32.xlu1 %v3275_v58, %s5771_s12  ;;  %v3270_v48 = vsel %vm760_vm1, %v3267_v40, %v3269_v8  ;;  %v7604_v28 = vsel %vm7544_vm10, %v3091_v60, 0.0  ;;  %5486 = vmatpush3.msra.mxu1 %v4956_v27 }
 0x378   : > { %v5437_v36 = vpop.f32.mrf.mxu1  ;;  %v3009_v22 = vadd.f32 %v7519_v23, %v2780_v42  ;;  %3318 = vrot.lane.b32.xlu0 %v3270_v48, %s5771_s12  ;;  %v7609_v14 = vadd.s32 7, %v7471_v21  ;;  %v7612_v34 = vadd.s32 9, %v7471_v21  ;;  %v7616_v40 = vsel %vm7574_vm15, %v3093_v44, 0.0 }
 0x379   : > { %v3175_v5 = vrot.slane %v7586_v56, 7  ;;  %v3382_v3 = vrot.slane %v7538_v55, 2  ;;  %v3384_v62 = vrot.slane %v3237_v57, 2  ;;  %v7623_v23 = vsel %vm619_vm0, 0.0, %v3169_v37 }
 0x37a   : > { %v2784_v7 = vpop.f32.mrf.mxu1  ;;  %v7626_v12 = vsel %vm619_vm0, 0.0, %v3172_v47  ;;  %v3095_v21 = vmax.f32 %v3034_v1, 0.0  ;;  %vm3061_vm2 = vcmp.ge.s32.totalorder %v7579_v18, 0  ;;  %vm3071_vm4 = vcmp.lt.s32.totalorder %v7579_v18, 32 }
 0x37b   : > { %v3008_v39 = vadd.f32 %v2949_v38, %v2775_v52  ;;  %v7634_v25 = vadd.f32 %v7476_v10, %v3006_v15  ;;  %v2790_v9 = vadd.f32 %v5437_v36, %v7454_v33  ;;  %v3385_v37 = vsel %vm915_vm6, %v3382_v3, %v3384_v62  ;;  %v2969_v38 = vpop.f32.mrf.mxu0  ;;  %v4955_v36 = vld [vmem:[%s8439_s7 + $0x18] sm:$0xff]  ;;  %vm7718_vm11 = vmand %vm3061_vm2, %vm3071_vm4 }
 0x37c   : > { %v5440_v0 = vpop.f32.mrf.mxu1  ;;  %v3376_v19 = vrot.slane %v7507_v46, 2  ;;  %vm3064_vm8 = vcmp.ge.s32.totalorder %v7600_v31, 0  ;;  %vm3074_vm10 = vcmp.lt.s32.totalorder %v7600_v31, 32  ;;  %v3173_v57 = vrot.slane %v7604_v28, 7  ;;  %3432 = vrot.lane.b32.xlu1 %v3385_v37, %s5772_s22  ;;  %5487 = vmatprep.subr.mxu1 %v4955_v36 }
 0x37d   : > { %v3176_v20 = vrot.slane %v7616_v40, 7  ;;  %v7654_v43 = vadd.f32 %v7476_v10, %v3009_v22  ;;  %v3377_v4 = vrot.slane %v7511_v41, 2  ;;  %v7661_v49 = vsel %vm619_vm0, 0.0, %v3175_v5  ;;  %v5479_v60 = vpop.f32.mrf.mxu0  ;;  %5488 = vmatpush3.msra.mxu1 %v4955_v36 }
 0x37e   : > { %v2794_v16 = vpop.f32.mrf.mxu1  ;;  %v2785_v30 = vadd.f32 %v2784_v7, %v7456_v35  ;;  %v2800_v45 = vadd.f32 %v5440_v0, %v7458_v54  ;;  %v3035_v42 = vadd.f32 %v7476_v10, %v3008_v39  ;;  %v7669_v53 = vsel %vm619_vm0, %v3172_v47, %v3173_v57 }
 0x37f   : > { %v2795_v17 = vadd.f32 %v2794_v16, %v7460_v59  ;;  %v3378_v32 = vsel %vm915_vm6, %v3376_v19, %v3377_v4  ;;  %v3276_v44 = vrot.slane %v7626_v12, 1  ;;  %vm3065_vm14 = vcmp.ge.s32.totalorder %v7612_v34, 0  ;;  %v2979_v22 = vpop.f32.mrf.mxu0 }
 0x380   : > { %v5443_v26 = vpop.f32.mrf.mxu1  ;;  %vm3075_vm3 = vcmp.lt.s32.totalorder %v7612_v34, 32  ;;  %v7676_v35 = vsel %vm7649_vm13, %v3095_v21, 0.0  ;;  %v3094_v54 = vmax.f32 %v7634_v25, 0.0  ;;  %v3011_v59 = vadd.f32 %v7553_v61, %v2790_v9  ;;  %3426 = vrot.lane.b32.xlu0 %v3378_v32, %s5772_s22 }
 0x381   : > { %vm3062_vm15 = vcmp.ge.s32.totalorder %v7597_v6, 0  ;;  %vm3072_vm9 = vcmp.lt.s32.totalorder %v7597_v6, 32  ;;  %v3013_v47 = vadd.f32 %v5476_v50, %v2800_v45  ;;  %v3012_v1 = vadd.f32 %v2969_v38, %v2795_v17  ;;  %v5482_v27 = vpop.f32.mrf.mxu0  ;;  %vm7760_vm2 = vmand %vm3065_vm14, %vm3075_vm3 }
 0x382   : > { %v2804_v8 = vpop.f32.mrf.mxu1  ;;  %v3277_v52 = vrot.slane %v7669_v53, 1  ;;  %v3379_v58 = vrot.slane %v7551_v13, 2  ;;  %v2810_v15 = vadd.f32 %v5443_v26, %v7462_v51  ;;  %v3010_v61 = vadd.f32 %v7582_v24, %v2785_v30  ;;  %vm3082_vm4 = vmand %vm3062_vm15, %vm3072_vm9 }
 0x383   : > { %v7691_v48 = vadd.f32 %v7476_v10, %v3013_v47  ;;  %v2805_v7 = vadd.f32 %v2804_v8, %v7464_v11  ;;  %v7695_v50 = vsel %vm619_vm0, %v3173_v57, 0.0  ;;  %v3096_v62 = vmax.f32 %v3035_v42, 0.0  ;;  %v2989_v32 = vpop.f32.mrf.mxu0 }
 0x384   : > { %v5446_v28 = vpop.f32.mrf.mxu1  ;;  %v7698_v0 = vadd.f32 %v7476_v10, %v3012_v1  ;;  %v3278_v51 = vsel %vm760_vm1, %v3276_v44, %v3277_v52  ;;  %v3380_v13 = vsel %vm915_vm6, %v3377_v4, %v3379_v58  ;;  %v3179_v24 = vrot.slane %v7676_v35, 7  ;;  %v7855_v35 = vld [vmem:[%s8439_s7 + $0x40] sm:$0xff] }
 0x385   : > { %v3038_v21 = vadd.f32 %v7476_v10, %v3011_v59  ;;  %3324 = vrot.lane.b32.xlu1 %v3278_v51, %s5771_s12  ;;  %3428 = vrot.lane.b32.xlu0 %v3380_v13, %s5772_s22  ;;  %v3015_v11 = vadd.f32 %v5479_v60, %v2810_v15  ;;  %v3014_v39 = vadd.f32 %v2979_v22, %v2805_v7  ;;  %v3097_v25 = vmax.f32 %v7654_v43, 0.0 }
 0x386   : > { %vm3063_vm7 = vcmp.ge.s32.totalorder %v7609_v14, 0  ;;  %vm3073_vm5 = vcmp.lt.s32.totalorder %v7609_v14, 32  ;;  %v3279_v9 = vrot.slane %v7695_v50, 1  ;;  %v3271_v37 = vrot.slane %v7623_v23, 1  ;;  %v2814_v16 = vpop.f32.mrf.mxu1  ;;  %5543 = vmatprep.subr.mxu1 %v7855_v35 }
 0x387   : > { %v2820_v19 = vadd.f32 %v5446_v28, %v7466_v63  ;;  %v3134_v38 = vsel %vm7649_vm13, %v3094_v54, 0.0  ;;  %v3037_v43 = vadd.f32 %v7476_v10, %v3010_v61  ;;  %v3042_v4 = vadd.f32 %v7476_v10, %v3015_v11  ;;  %vm7733_vm13 = vmand %vm3064_vm8, %vm3074_vm10 }
 0x388   : > { %v3041_v30 = vadd.f32 %v7476_v10, %v3014_v39  ;;  %v7727_v63 = vsel %vm7718_vm11, %v3096_v62, 0.0  ;;  %v3280_v33 = vsel %vm760_vm1, %v3277_v52, %v3279_v9  ;;  %v3273_v45 = vsel %vm760_vm1, %v3271_v37, %v3272_v2  ;;  %vm3083_vm9 = vmand %vm3063_vm7, %vm3073_vm5 }
 0x389   : > { %v3017_v17 = vadd.f32 %v5482_v27, %v2820_v19  ;;  %v3099_v26 = vmax.f32 %v3038_v21, 0.0  ;;  %v3103_v60 = vmax.f32 %v3042_v4, 0.0  ;;  %3326 = vrot.lane.b32.xlu1 %v3280_v33, %s5771_s12  ;;  %3320 = vrot.lane.b32.xlu0 %v3273_v45, %s5771_s12  ;;  %v2815_v31 = vadd.f32 %v2814_v16, %v7469_v29 }
 0x38a   : > { %v3102_v42 = vmax.f32 %v3041_v30, 0.0  ;;  %v3386_v54 = vrot.slane %v7626_v12, 2  ;;  %v3387_v59 = vrot.slane %v7669_v53, 2  ;;  %v3381_v47 = vrot.slane %v7623_v23, 2 }
 0x38b   : > { %v3044_v44 = vadd.f32 %v7476_v10, %v3017_v17  ;;  %v3098_v2 = vmax.f32 %v3037_v43, 0.0  ;;  %v7750_v8 = vsel %vm7733_vm13, %v3103_v60, 0.0  ;;  %v3016_v1 = vadd.f32 %v2989_v32, %v2815_v31 }
 0x38c   : > { %v7754_v36 = vsel %vm7733_vm13, %v3102_v42, 0.0  ;;  %v3178_v52 = vrot.slane %v3134_v38, 7  ;;  %v7766_v58 = vsel %vm7718_vm11, %v3097_v25, 0.0  ;;  %v3388_v61 = vsel %vm915_vm6, %v3386_v54, %v3387_v59 }
 0x38d   : > { %v3105_v15 = vmax.f32 %v3044_v44, 0.0  ;;  %v3181_v34 = vrot.slane %v7727_v63, 7  ;;  %v3043_v7 = vadd.f32 %v7476_v10, %v3016_v1  ;;  %3434 = vrot.lane.b32.xlu1 %v3388_v61, %s5772_s22  ;;  %v3383_v28 = vsel %vm915_vm6, %v3381_v47, %v3382_v3 }
 0x38e   : > { %v7784_v6 = vsel %vm619_vm0, %v3175_v5, %v3176_v20  ;;  %3430 = vrot.lane.b32.xlu0 %v3383_v28, %s5772_s22  ;;  %v3389_v10 = vrot.slane %v7695_v50, 2  ;;  %v3281_v62 = vrot.slane %v7661_v49, 1  ;;  %v7794_v3 = vsel %vm3082_vm4, %v3099_v26, 0.0 }
 0x38f   : > { %v7788_v22 = vsel %vm7760_vm2, %v3105_v15, 0.0  ;;  %v3282_v51 = vrot.slane %v7784_v6, 1  ;;  %v7796_v13 = vsel %vm3082_vm4, %v3098_v2, 0.0  ;;  %v3104_v56 = vmax.f32 %v3043_v7, 0.0  ;;  %v7882_v15 = vld [vmem:[%s8441_s9] sm:$0xf] }
 0x390   : > { %v3239_v5 = vsel %vm619_vm0, %v3176_v20, 0.0  ;;  %v3101_v21 = vmax.f32 %v7691_v48, 0.0  ;;  %v3100_v11 = vmax.f32 %v7698_v0, 0.0  ;;  %v3390_v39 = vsel %vm915_vm6, %v3387_v59, %v3389_v10  ;;  %5573 = vmatprep.subr.msk.mxu0 %vm1206_vm12, %v7882_v15 }
 0x391   : > { %v3283_v50 = vsel %vm760_vm1, %v3281_v62, %v3282_v51  ;;  %v7811_v27 = vsel %vm7760_vm2, %v3104_v56, 0.0  ;;  %3436 = vrot.lane.b32.xlu1 %v3390_v39, %s5772_s22  ;;  %v3391_v40 = vrot.slane %v7661_v49, 2  ;;  %v3392_v20 = vrot.slane %v7784_v6, 2 }
 0x392   : > { %v7819_v48 = vsel %vm619_vm0, %v3178_v52, %v3179_v24  ;;  %v7822_v0 = vsel %vm619_vm0, 0.0, %v3178_v52  ;;  %3328 = vrot.lane.b32.xlu0 %v3283_v50, %s5771_s12  ;;  %v3284_v14 = vrot.slane %v3239_v5, 1  ;;  %v3182_v25 = vrot.slane %v7766_v58, 7 }
 0x393   : > { %v3184_v9 = vrot.slane %v7796_v13, 7  ;;  %v3185_v37 = vrot.slane %v7794_v3, 7  ;;  %v7828_v19 = vsel %vm3083_vm9, %v3101_v21, 0.0  ;;  %v3140_v16 = vsel %vm3083_vm9, %v3100_v11, 0.0 }
 0x394   : > { %v3285_v38 = vsel %vm760_vm1, %v3282_v51, %v3284_v14  ;;  %v3393_v57 = vsel %vm915_vm6, %v3391_v40, %v3392_v20  ;;  %v3286_v43 = vrot.slane %v7822_v0, 1  ;;  %v3287_v4 = vrot.slane %v7819_v48, 1 }
 0x395   : > { %3330 = vrot.lane.b32.xlu1 %v3285_v38, %s5771_s12  ;;  %v7836_v30 = vsel %vm619_vm0, %v3181_v34, %v3182_v25  ;;  %v3394_v63 = vrot.slane %v3239_v5, 2  ;;  %v3187_v18 = vrot.slane %v3140_v16, 7  ;;  %v3240_v33 = vsel %vm619_vm0, %v3179_v24, 0.0 }
 0x396   : > { %3438 = vrot.lane.b32.xlu0 %v3393_v57, %s5772_s22  ;;  %v7843_v45 = vsel %vm619_vm0, %v3184_v9, %v3185_v37  ;;  %v3188_v17 = vrot.slane %v7828_v19, 7  ;;  %v3190_v60 = vrot.slane %v7754_v36, 7  ;;  %v3288_v42 = vsel %vm760_vm1, %v3286_v43, %v3287_v4 }
 0x397   : > { %v3395_v26 = vsel %vm915_vm6, %v3392_v20, %v3394_v63  ;;  %v3396_v31 = vrot.slane %v7822_v0, 2  ;;  %v3397_v32 = vrot.slane %v7819_v48, 2  ;;  %v7858_v24 = vsel %vm619_vm0, 0.0, %v3181_v34 }
 0x398   : > { %v3289_v44 = vrot.slane %v3240_v33, 1  ;;  %v3191_v54 = vrot.slane %v7750_v8, 7  ;;  %v7864_v59 = vsel %vm619_vm0, %v3187_v18, %v3188_v17  ;;  %v3193_v47 = vrot.slane %v7811_v27, 7 }
 0x399   : > { %3440 = vrot.lane.b32.xlu1 %v3395_v26, %s5772_s22  ;;  %v3398_v29 = vsel %vm915_vm6, %v3396_v31, %v3397_v32  ;;  %v3291_v1 = vrot.slane %v7858_v24, 1  ;;  %v3292_v52 = vrot.slane %v7836_v30, 1  ;;  %v3399_v61 = vrot.slane %v3240_v33, 2 }
 0x39a   : > { %3332 = vrot.lane.b32.xlu0 %v3288_v42, %s5771_s12  ;;  %v3290_v2 = vsel %vm760_vm1, %v3287_v4, %v3289_v44  ;;  %v7877_v58 = vsel %vm619_vm0, %v3190_v60, %v3191_v54  ;;  %v3194_v34 = vrot.slane %v7788_v22, 7  ;;  %v3241_v7 = vsel %vm619_vm0, %v3182_v25, 0.0 }
 0x39b   : > { %v3400_v28 = vsel %vm915_vm6, %v3397_v32, %v3399_v61  ;;  %v3293_v10 = vsel %vm760_vm1, %v3291_v1, %v3292_v52  ;;  %v3401_v62 = vrot.slane %v7858_v24, 2  ;;  %v3402_v51 = vrot.slane %v7836_v30, 2 }
 0x39c   : > { %v7899_v3 = vsel %vm619_vm0, %v3193_v47, %v3194_v34  ;;  %v7902_v13 = vsel %vm619_vm0, 0.0, %v3184_v9  ;;  %v3294_v56 = vrot.slane %v3241_v7, 1  ;;  %v3297_v39 = vrot.slane %v7843_v45, 1 }
 0x39d   : > { %3334 = vrot.lane.b32.xlu1 %v3290_v2, %s5771_s12  ;;  %v3403_v21 = vsel %vm915_vm6, %v3401_v62, %v3402_v51  ;;  %v3296_v11 = vrot.slane %v7902_v13, 1  ;;  %v3404_v50 = vrot.slane %v3241_v7, 2  ;;  %v3242_v40 = vsel %vm619_vm0, %v3185_v37, 0.0 }
 0x39e   : > { %3442 = vrot.lane.b32.xlu0 %v3398_v29, %s5772_s22  ;;  %v3295_v5 = vsel %vm760_vm1, %v3292_v52, %v3294_v56  ;;  %v3406_v25 = vrot.slane %v7902_v13, 2  ;;  %v3407_v9 = vrot.slane %v7843_v45, 2  ;;  %v7918_v19 = vsel %vm619_vm0, 0.0, %v3187_v18 }
 0x39f   : > { %v3405_v20 = vsel %vm915_vm6, %v3402_v51, %v3404_v50  ;;  %v3298_v14 = vsel %vm760_vm1, %v3296_v11, %v3297_v39  ;;  %v3299_v16 = vrot.slane %v3242_v40, 1  ;;  %v3301_v57 = vrot.slane %v7918_v19, 1 }
 0x3a0   : > { %v3408_v37 = vsel %vm915_vm6, %v3406_v25, %v3407_v9  ;;  %v3302_v43 = vrot.slane %v7864_v59, 1  ;;  %v3409_v4 = vrot.slane %v3242_v40, 2  ;;  %v3243_v63 = vsel %vm619_vm0, %v3188_v17, 0.0 }
 0x3a1   : > { %3444 = vrot.lane.b32.xlu1 %v3400_v28, %s5772_s22  ;;  %v3300_v38 = vsel %vm760_vm1, %v3297_v39, %v3299_v16  ;;  %v3411_v26 = vrot.slane %v7918_v19, 2  ;;  %v3412_v42 = vrot.slane %v7864_v59, 2  ;;  %v7936_v31 = vsel %vm619_vm0, 0.0, %v3190_v60 }
 0x3a2   : > { %3336 = vrot.lane.b32.xlu0 %v3293_v10, %s5771_s12  ;;  %v3410_v18 = vsel %vm915_vm6, %v3407_v9, %v3409_v4  ;;  %v3303_v33 = vsel %vm760_vm1, %v3301_v57, %v3302_v43  ;;  %v3304_v32 = vrot.slane %v3243_v63, 1  ;;  %v3306_v2 = vrot.slane %v7936_v31, 1 }
 0x3a3   : > { %v3413_v44 = vsel %vm915_vm6, %v3411_v26, %v3412_v42  ;;  %v3307_v29 = vrot.slane %v7877_v58, 1  ;;  %v3414_v1 = vrot.slane %v3243_v63, 2  ;;  %v3244_v36 = vsel %vm619_vm0, %v3191_v54, 0.0 }
 0x3a4   : > { %v3305_v17 = vsel %vm760_vm1, %v3302_v43, %v3304_v32  ;;  %v3416_v61 = vrot.slane %v7936_v31, 2  ;;  %v3417_v7 = vrot.slane %v7877_v58, 2  ;;  %v7956_v28 = vsel %vm619_vm0, 0.0, %v3193_v47 }
 0x3a5   : > { %3338 = vrot.lane.b32.xlu1 %v3295_v5, %s5771_s12  ;;  %v3415_v60 = vsel %vm915_vm6, %v3412_v42, %v3414_v1  ;;  %v3308_v52 = vsel %vm760_vm1, %v3306_v2, %v3307_v29  ;;  %v3309_v8 = vrot.slane %v3244_v36, 1  ;;  %v3311_v62 = vrot.slane %v7956_v28, 1  ;;  %v4991_v2 = vld [vmem:[%s8439_s7 + $0x38] sm:$0xff] }
 0x3a6   : > { %3446 = vrot.lane.b32.xlu0 %v3403_v21, %s5772_s22  ;;  %v3418_v10 = vsel %vm915_vm6, %v3416_v61, %v3417_v7  ;;  %v3312_v51 = vrot.slane %v7899_v3, 1  ;;  %v3419_v56 = vrot.slane %v3244_v36, 2  ;;  %v3245_v27 = vsel %vm619_vm0, %v3194_v34, 0.0 }
 0x3a7   : > { %v3310_v54 = vsel %vm760_vm1, %v3307_v29, %v3309_v8  ;;  %v3421_v21 = vrot.slane %v7956_v28, 2  ;;  %v3422_v11 = vrot.slane %v7899_v3, 2  ;;  %v3314_v39 = vrot.slane %v3245_v27, 1  ;;  %v4990_v29 = vld [vmem:[%s8439_s7 + $0x30] sm:$0xff] }
 0x3a8   : > { %v3420_v47 = vsel %vm915_vm6, %v3417_v7, %v3419_v56  ;;  %v3313_v5 = vsel %vm760_vm1, %v3311_v62, %v3312_v51  ;;  %v3424_v34 = vrot.slane %v3245_v27, 2  ;;  %vm8499_vm0 = vcmask 64512  }
 0x3a9   : > { %3448 = vrot.lane.b32.xlu1 %v3405_v20, %s5772_s22  ;;  %v3315_v50 = vsel %vm760_vm1, %v3312_v51, %v3314_v39  ;;  %v3423_v22 = vsel %vm915_vm6, %v3421_v21, %v3422_v11  ;;  %vm8500_vm1 = vcmask 130048   ;;  %vm8501_vm11 = vcmask 195584   ;;  %vm8502_vm5 = vmmov %vm8499_vm0 }
 0x3aa   : > { %3340 = vrot.lane.b32.xlu0 %v3298_v14, %s5771_s12  ;;  %v3425_v40 = vsel %vm915_vm6, %v3422_v11, %v3424_v34  ;;  %vm8503_vm6 = vmmov %vm8500_vm1 }
 0x3ab   : > { %vm8504_vm7 = vmmov %vm8501_vm11 }
 0x3ac   : > { %vm8505_vm8 = vmmov %vm8499_vm0 }
 0x3ad   : > { %3342 = vrot.lane.b32.xlu1 %v3300_v38, %s5771_s12  ;;  %vm8506_vm10 = vmmov %vm8499_vm0 }
 0x3ae   : > { %3450 = vrot.lane.b32.xlu0 %v3408_v37, %s5772_s22  ;;  %vm8507_vm14 = vmmov %vm8500_vm1 }
 0x3af   : > { %vm8508_vm3 = vmmov %vm8500_vm1 }
 0x3b0   : > { %vm8509_vm15 = vmmov %vm8499_vm0 }
 0x3b1   : > { %3452 = vrot.lane.b32.xlu1 %v3410_v18, %s5772_s22  ;;  %vm8510_vm13 = vmmov %vm8504_vm7 }
 0x3b2   : > { %3344 = vrot.lane.b32.xlu0 %v3303_v33, %s5771_s12  ;;  %vm8512_vm2 = vmmov %vm8499_vm0 }
 0x3b3   : > { %vm8513_vm4 = vmmov %vm8500_vm1 }
 0x3b4   : > { %vm8514_vm9 = vmmov %vm8504_vm7 }
 0x3b5   : > { %3346 = vrot.lane.b32.xlu1 %v3305_v17, %s5771_s12 }
 0x3b6   : > { %3454 = vrot.lane.b32.xlu0 %v3413_v44, %s5772_s22 }
 0x3b9   : > { %3456 = vrot.lane.b32.xlu1 %v3415_v60, %s5772_s22 }
 0x3ba   : > { %3348 = vrot.lane.b32.xlu0 %v3308_v52, %s5771_s12 }
 0x3bd   : > { %3350 = vrot.lane.b32.xlu1 %v3310_v54, %s5771_s12 }
 0x3be   : > { %3458 = vrot.lane.b32.xlu0 %v3418_v10, %s5772_s22 }
 0x3c1   : > { %3460 = vrot.lane.b32.xlu1 %v3420_v47, %s5772_s22 }
 0x3c2   : > { %3352 = vrot.lane.b32.xlu0 %v3313_v5, %s5771_s12 }
 0x3c5   : > { %3354 = vrot.lane.b32.xlu1 %v3315_v50, %s5771_s12 }
 0x3c6   : > { %3462 = vrot.lane.b32.xlu0 %v3423_v22, %s5772_s22 }
 0x3c9   : > { %3464 = vrot.lane.b32.xlu1 %v3425_v40, %s5772_s22 }
 0x3e5   : > { %v3317_v20 = vpop.permute.xlu0 %3316 }
 0x3e6   : > { %v3486_v16 = vsel %vm8499_vm0, %v7507_v46, %v3317_v20  ;;  %vm8515_vm0 = vmmov %vm8504_vm7 }
 0x3e9   : > { %v3323_v14 = vpop.permute.xlu1 %3322 }
 0x3ea   : > { %v3319_v25 = vpop.permute.xlu0 %3318  ;;  %v3489_v32 = vsel %vm8506_vm10, %v7538_v55, %v3323_v14  ;;  %vm8521_vm10 = vmmov %vm8500_vm1 }
 0x3eb   : > { %v3487_v57 = vsel %vm8502_vm5, %v7511_v41, %v3319_v25  ;;  %vm8517_vm5 = vmmov %vm8515_vm0 }
 0x3ee   : > { %v3433_v9 = vpop.permute.xlu1 %3432 }
 0x3ef   : > { %v3509_v17 = vsel %vm8508_vm3, %v3489_v32, %v3433_v9  ;;  %vm8523_vm3 = vmmov %vm8515_vm0  ;;  %v5679_v32 = vld [vmem:[%s5913_s20 + $0x18] sm:$0xff] }
 0x3f2   : > { %v3427_v38 = vpop.permute.xlu0 %3426 }
 0x3f3   : > { %v3506_v37 = vsel %vm8500_vm1, %v3486_v16, %v3427_v38 }
 0x3f4   : > { %5519 = vmatprep.mubr.msk.f32.mxu0 %vm8501_vm11, %v3506_v37  ;;  %vm8516_vm11 = vmmov %vm8515_vm0 }
 0x3f7   : > { %v3325_v43 = vpop.permute.xlu1 %3324  ;;  %v3429_v4 = vpop.permute.xlu0 %3428 }
 0x3f8   : > { %v3507_v63 = vsel %vm8503_vm6, %v3487_v57, %v3429_v4  ;;  %v3490_v44 = vsel %vm8509_vm15, %v7626_v12, %v3325_v43  ;;  %vm8518_vm6 = vmmov %vm8515_vm0 }
 0x3f9   : > { %5520 = vmatmul.mubr.msk.f32.vlgmr.msra.gmra.mxu0 %vm8504_vm7, %v3507_v63  ;;  %vm8524_vm15 = vmmov %vm8512_vm2 }
 0x3fa   : > { %5574 = vmatpush3.msk.msra.mxu0 %vm1206_vm12, %v7882_v15  ;;  %vm8511_vm12 = vmmov %vm8504_vm7 }
 0x3fb   : > { %v3327_v18 = vpop.permute.xlu1 %3326  ;;  %v3321_v33 = vpop.permute.xlu0 %3320  ;;  %vm8519_vm7 = vmmov %vm8515_vm0 }
 0x3fc   : > { %v3488_v26 = vsel %vm8505_vm8, %v7623_v23, %v3321_v33  ;;  %v3491_v15 = vsel %vm8512_vm2, %v7669_v53, %v3327_v18  ;;  %vm8520_vm8 = vmmov %vm8512_vm2  ;;  %v5677_v33 = vld [vmem:[%s5913_s20 + $0x8] sm:$0xff] }
 0x3fd   : > { %vm8527_vm2 = vmmov %vm8515_vm0 }
 0x3ff   : > { %v3435_v46 = vpop.permute.xlu1 %3434 }
 0x400   : > { %v3431_v42 = vpop.permute.xlu0 %3430  ;;  %v8003_v23 = vsel %vm8513_vm4, %v3490_v44, %v3435_v46  ;;  %vm8528_vm4 = vmmov %vm8520_vm8  ;;  %v5678_v46 = vld [vmem:[%s5913_s20 + $0x10] sm:$0xff]  ;;  %v5683_v44 = vld [vmem:[%s5913_s20 + $0x38] sm:$0xff] }
 0x401   : > { %v3508_v41 = vsel %vm8507_vm14, %v3488_v26, %v3431_v42  ;;  %vm8522_vm14 = vmmov %vm8515_vm0 }
 0x402   : > { %5489 = vmatprep.mubr.msk.f32.mxu1 %vm8510_vm13, %v3508_v41  ;;  %5522 = vmatprep.mubr.msk.f32.mxu0 %vm8511_vm12, %v3508_v41  ;;  %vm8525_vm13 = vmmov %vm8500_vm1  ;;  %v5680_v41 = vld [vmem:[%s5913_s20 + $0x20] sm:$0xff] }
 0x403   : > { %5490 = vmatmul.mubr.msk.f32.vlgmr.msra.gmra.mxu1 %vm8514_vm9, %v3509_v17  ;;  %5523 = vmatmul.mubr.msk.f32.gmra.mxu0 %vm8515_vm0, %v3509_v17  ;;  %v3437_v55 = vpop.permute.xlu1 %3436  ;;  %vm8526_vm12 = vmmov %vm8515_vm0  ;;  %v5682_v17 = vld [vmem:[%s5913_s20 + $0x30] sm:$0xff] }
 0x404   : > { %v8011_v12 = vsel %vm8500_vm1, %v3491_v15, %v3437_v55  ;;  %5492 = vmatprep.mubr.msk.f32.mxu1 %vm8516_vm11, %v8003_v23  ;;  %5525 = vmatprep.mubr.msk.f32.mxu0 %vm8517_vm5, %v8003_v23  ;;  %v3329_v53 = vpop.permute.xlu0 %3328  ;;  %vm8529_vm9 = vmmov %vm8500_vm1  ;;  %v5684_v15 = vld [vmem:[%s5913_s20 + $0x40] sm:$0xff]  ;;  %v5686_v55 = vld [vmem:[%s5913_s20 + $0x50] sm:$0xff] }
 0x405   : > { %5544 = vmatpush3.msra.mxu1 %v7855_v35  ;;  %v3492_v36 = vsel %vm8520_vm8, %v7661_v49, %v3329_v53  ;;  %vm8530_vm1 = vmmov %vm8515_vm0 }
 0x406   : > { %5545 = vmatprep.subr.mxu1 %v4991_v2  ;;  %vm8531_vm11 = vmmov %vm8528_vm4 }
 0x407   : > { %5493 = vmatmul.mubr.msk.f32.gmra.mxu1 %vm8518_vm6, %v8011_v12  ;;  %5526 = vmatmul.mubr.msk.f32.gmra.mxu0 %vm8519_vm7, %v8011_v12  ;;  %v3331_v1 = vpop.permute.xlu1 %3330  ;;  %vm8532_vm5 = vmmov %vm8529_vm9 }
 0x408   : > { %v3439_v60 = vpop.permute.xlu0 %3438  ;;  %5546 = vmatpush3.msra.mxu1 %v4991_v2  ;;  %v3493_v35 = vsel %vm8524_vm15, %v7784_v6, %v3331_v1  ;;  %vm8533_vm6 = vmmov %vm8515_vm0  ;;  %v5687_v2 = vld [vmem:[%s5913_s20 + $0x58] sm:$0xff]  ;;  %v5690_v1 = vld [vmem:[%s5913_s20 + $0x70] sm:$0xff] }
 0x409   : > { %v8028_v52 = vsel %vm8521_vm10, %v3492_v36, %v3439_v60  ;;  %5547 = vmatprep.subr.mxu1 %v4990_v29  ;;  %vm8534_vm7 = vmmov %vm8515_vm0  ;;  %v5691_v60 = vld [vmem:[%s5913_s20 + $0x78] sm:$0xff] }
 0x40a   : > { %5495 = vmatprep.mubr.msk.f32.mxu1 %vm8522_vm14, %v8028_v52  ;;  %5528 = vmatprep.mubr.msk.f32.mxu0 %vm8523_vm3, %v8028_v52  ;;  %vm8535_vm8 = vmmov %vm8528_vm4 }
 0x40b   : > { %v3441_v61 = vpop.permute.xlu1 %3440  ;;  %5548 = vmatpush3.msra.mxu1 %v4990_v29  ;;  %vm8536_vm10 = vmmov %vm8532_vm5  ;;  %v5689_v29 = vld [vmem:[%s5913_s20 + $0x68] sm:$0xff] }
 0x40c   : > { %v8037_v7 = vsel %vm8525_vm13, %v3493_v35, %v3441_v61  ;;  %v3333_v49 = vpop.permute.xlu0 %3332  ;;  %vm8537_vm14 = vmmov %vm8515_vm0 }
 0x40d   : > { %5496 = vmatmul.mubr.msk.f32.gmra.mxu1 %vm8526_vm12, %v8037_v7  ;;  %5529 = vmatmul.mubr.msk.f32.gmra.mxu0 %vm8527_vm2, %v8037_v7  ;;  %v3494_v54 = vsel %vm8528_vm4, %v7822_v0, %v3333_v49  ;;  %vm8538_vm3 = vmmov %vm8515_vm0 }
 0x40e   : > { %vm8539_vm15 = vmmov %vm8528_vm4 }
 0x40f   : > { %v3335_v8 = vpop.permute.xlu1 %3334  ;;  %vm8540_vm13 = vmmov %vm8532_vm5 }
 0x410   : > { %v3443_v10 = vpop.permute.xlu0 %3442  ;;  %v3495_v6 = vsel %vm8531_vm11, %v7819_v48, %v3335_v8  ;;  %vm8541_vm12 = vmmov %vm8515_vm0 }
 0x411   : > { %v8046_v62 = vsel %vm8529_vm9, %v3494_v54, %v3443_v10  ;;  %vm8542_vm2 = vmmov %vm8515_vm0 }
 0x412   : > { %5498 = vmatprep.mubr.msk.f32.mxu1 %vm8515_vm0, %v8046_v62  ;;  %5531 = vmatprep.mubr.msk.f32.mxu0 %vm8530_vm1, %v8046_v62  ;;  %vm8543_vm9 = vmmov %vm8532_vm5 }
 0x413   : > { %v3445_v51 = vpop.permute.xlu1 %3444  ;;  %vm8544_vm1 = vmmov %vm8515_vm0 }
 0x414   : > { %v8055_v56 = vsel %vm8532_vm5, %v3495_v6, %v3445_v51  ;;  %v3337_v27 = vpop.permute.xlu0 %3336  ;;  %vm8545_vm11 = vmmov %vm8528_vm4 }
 0x415   : > { %5499 = vmatmul.mubr.msk.f32.gmra.mxu1 %vm8533_vm6, %v8055_v56  ;;  %5532 = vmatmul.mubr.msk.f32.gmra.mxu0 %vm8534_vm7, %v8055_v56  ;;  %v3496_v47 = vsel %vm8535_vm8, %v7858_v24, %v3337_v27  ;;  %vm8546_vm6 = vmmov %vm8515_vm0 }
 0x416   : > { %vm8547_vm7 = vmmov %vm8515_vm0 }
 0x417   : > { %v3339_v0 = vpop.permute.xlu1 %3338  ;;  %vm8548_vm8 = vmmov %vm8528_vm4 }
 0x418   : > { %v3447_v5 = vpop.permute.xlu0 %3446  ;;  %v3497_v48 = vsel %vm8539_vm15, %v7836_v30, %v3339_v0  ;;  %vm8552_vm15 = vmmov %vm8528_vm4 }
 0x419   : > { %v8064_v21 = vsel %vm8536_vm10, %v3496_v47, %v3447_v5  ;;  %vm8549_vm10 = vmmov %vm8532_vm5 }
 0x41a   : > { %5501 = vmatprep.mubr.msk.f32.mxu1 %vm8537_vm14, %v8064_v21  ;;  %5534 = vmatprep.mubr.msk.f32.mxu0 %vm8538_vm3, %v8064_v21  ;;  %vm8550_vm14 = vmmov %vm8515_vm0 }
 0x41b   : > { %v3449_v11 = vpop.permute.xlu1 %3448  ;;  %vm8551_vm3 = vmmov %vm8515_vm0 }
 0x41c   : > { %v8073_v39 = vsel %vm8540_vm13, %v3497_v48, %v3449_v11  ;;  %v3341_v50 = vpop.permute.xlu0 %3340  ;;  %vm8553_vm13 = vmmov %vm8532_vm5 }
 0x41d   : > { %5502 = vmatmul.mubr.msk.f32.gmra.mxu1 %vm8541_vm12, %v8073_v39  ;;  %5535 = vmatmul.mubr.msk.f32.gmra.mxu0 %vm8542_vm2, %v8073_v39  ;;  %v3498_v22 = vsel %vm8528_vm4, %v7902_v13, %v3341_v50  ;;  %vm8554_vm12 = vmmov %vm8515_vm0  ;;  %vm8556_vm4 = vcmask 31744  }
 0x41e   : > { %vm8555_vm2 = vmmov %vm8515_vm0 }
 0x41f   : > { %v3343_v24 = vpop.permute.xlu1 %3342 }
 0x420   : > { %v3451_v34 = vpop.permute.xlu0 %3450  ;;  %v3499_v30 = vsel %vm8545_vm11, %v7843_v45, %v3343_v24  ;;  %vm8560_vm11 = vmmov %vm8555_vm2 }
 0x421   : > { %v3518_v40 = vsel %vm8543_vm9, %v3498_v22, %v3451_v34  ;;  %vm8557_vm9 = vmmov %vm8548_vm8 }
 0x422   : > { %5504 = vmatprep.mubr.msk.f32.mxu1 %vm8515_vm0, %v3518_v40  ;;  %5537 = vmatprep.mubr.msk.f32.mxu0 %vm8544_vm1, %v3518_v40  ;;  %vm8558_vm0 = vmmov %vm8532_vm5 }
 0x423   : > { %v3453_v20 = vpop.permute.xlu1 %3452  ;;  %vm8559_vm1 = vmmov %vm8556_vm4 }
 0x424   : > { %v3519_v14 = vsel %vm8532_vm5, %v3499_v30, %v3453_v20  ;;  %v3345_v25 = vpop.permute.xlu0 %3344  ;;  %vm8561_vm5 = vmmov %vm8559_vm1 }
 0x425   : > { %5505 = vmatmul.mubr.msk.f32.gmra.mxu1 %vm8546_vm6, %v3519_v14  ;;  %5538 = vmatmul.mubr.msk.f32.gmra.mxu0 %vm8547_vm7, %v3519_v14  ;;  %v3500_v9 = vsel %vm8548_vm8, %v7918_v19, %v3345_v25  ;;  %v5676_v19 = vld [vmem:[%s5913_s20] sm:$0xff]  ;;  %vm8562_vm6 = vmmov %vm8548_vm8 }
 0x426   : > { %vm8563_vm7 = vmmov %vm8558_vm0 }
 0x427   : > { %v3347_v13 = vpop.permute.xlu1 %3346  ;;  %vm8564_vm8 = vmmov %vm8555_vm2 }
 0x428   : > { %v3455_v16 = vpop.permute.xlu0 %3454  ;;  %v3501_v45 = vsel %vm8552_vm15, %v7864_v59, %v3347_v13  ;;  %vm8568_vm15 = vmmov %vm8555_vm2 }
 0x429   : > { %v3520_v38 = vsel %vm8549_vm10, %v3500_v9, %v3455_v16  ;;  %vm8565_vm10 = vmmov %vm8559_vm1 }
 0x42a   : > { %5507 = vmatprep.mubr.msk.f32.mxu1 %vm8550_vm14, %v3520_v38  ;;  %5540 = vmatprep.mubr.msk.f32.mxu0 %vm8551_vm3, %v3520_v38  ;;  %vm8566_vm14 = vmmov %vm8555_vm2 }
 0x42b   : > { %v3457_v37 = vpop.permute.xlu1 %3456  ;;  %vm8567_vm3 = vmmov %vm8559_vm1 }
 0x42c   : > { %v3521_v57 = vsel %vm8553_vm13, %v3501_v45, %v3457_v37  ;;  %v3349_v43 = vpop.permute.xlu0 %3348  ;;  %vm8569_vm13 = vmmov %vm8559_vm1 }
 0x42d   : > { %5508 = vmatmul.mubr.msk.f32.gmra.mxu1 %vm8554_vm12, %v3521_v57  ;;  %5541 = vmatmul.mubr.msk.f32.gmra.mxu0 %vm8555_vm2, %v3521_v57  ;;  %v3502_v63 = vsel %vm8557_vm9, %v7936_v31, %v3349_v43  ;;  %vm8570_vm12 = vmmov %vm8555_vm2 }
 0x42e   : > { %5575 = vmatprep.mubr.msk.f32.mxu0 %vm8556_vm4, %v5676_v19  ;;  %vm8571_vm2 = vmmov %vm8559_vm1 }
 0x42f   : > { %v3351_v4 = vpop.permute.xlu1 %3350  ;;  %vm8572_vm4 = vmmov %vm8564_vm8 }
 0x430   : > { %v3459_v18 = vpop.permute.xlu0 %3458  ;;  %v3503_v26 = vsel %vm8562_vm6, %v7877_v58, %v3351_v4  ;;  %v5681_v58 = vld [vmem:[%s5913_s20 + $0x28] sm:$0xff]  ;;  %vm8573_vm9 = vmmov %vm8559_vm1 }
 0x431   : > { %v3522_v59 = vsel %vm8558_vm0, %v3502_v63, %v3459_v18  ;;  %5576 = vmatmul.mubr.msk.f32.vlgmr.msra.gmra.mxu0 %vm8559_vm1, %v5677_v33  ;;  %vm8574_vm0 = vmmov %vm8572_vm4 }
 0x432   : > { %5510 = vmatprep.mubr.msk.f32.mxu1 %vm8560_vm11, %v3522_v59  ;;  %5578 = vmatprep.mubr.msk.f32.mxu0 %vm8561_vm5, %v5678_v46  ;;  %vm8575_vm11 = vmmov %vm8574_vm0 }
 0x433   : > { %v3461_v42 = vpop.permute.xlu1 %3460  ;;  %vm8576_vm5 = vmmov %vm8559_vm1 }
 0x434   : > { %v3523_v31 = vsel %vm8563_vm7, %v3503_v26, %v3461_v42  ;;  %vm8577_vm6 = vmmov %vm8574_vm0  ;;  %v3353_v53 = vpop.permute.xlu0 %3352 }
 0x435   : > { %5511 = vmatmul.mubr.msk.f32.gmra.mxu1 %vm8564_vm8, %v3523_v31  ;;  %5579 = vmatmul.mubr.msk.f32.gmra.mxu0 %vm8565_vm10, %v5679_v32  ;;  %vm8578_vm7 = vmmov %vm8559_vm1 }
 0x436   : > { %5549 = vmatprep.mubr.msk.f32.mxu1 %vm8566_vm14, %v8003_v23  ;;  %5581 = vmatprep.mubr.msk.f32.mxu0 %vm8567_vm3, %v5680_v41  ;;  %v5685_v23 = vld [vmem:[%s5913_s20 + $0x48] sm:$0xff]  ;;  %vm8579_vm8 = vmmov %vm8574_vm0 }
 0x437   : > { %vm8580_vm10 = vmmov %vm8559_vm1  ;;  %v3355_v36 = vpop.permute.xlu1 %3354 }
 0x438   : > { %vm8581_vm14 = vmmov %vm8574_vm0 }
 0x439   : > { %5550 = vmatmul.mubr.msk.f32.vlgmr.msra.gmra.mxu1 %vm8568_vm15, %v8011_v12  ;;  %5582 = vmatmul.mubr.msk.f32.gmra.mxu0 %vm8569_vm13, %v5681_v58  ;;  %v5688_v12 = vld [vmem:[%s5913_s20 + $0x60] sm:$0xff]  ;;  %vm8582_vm3 = vmmov %vm8559_vm1  ;;  %s5783_s20 = smov 96  }
 0x43a   : > { %5552 = vmatprep.mubr.msk.f32.mxu1 %vm8570_vm12, %v8028_v52  ;;  %5584 = vmatprep.mubr.msk.f32.mxu0 %vm8571_vm2, %v5682_v17  ;;  %vm8583_vm15 = vmmov %vm8574_vm0  ;;  %v3463_v52 = vpop.permute.xlu0 %3462 }
 0x43b   : > { %vm8584_vm13 = vmmov %vm8559_vm1 }
 0x43c   : > { %vm8585_vm12 = vmmov %vm8574_vm0 }
 0x43d   : > { %5553 = vmatmul.mubr.msk.f32.gmra.mxu1 %vm8572_vm4, %v8037_v7  ;;  %5585 = vmatmul.mubr.msk.f32.gmra.mxu0 %vm8573_vm9, %v5683_v44  ;;  %vm8586_vm2 = vmmov %vm8559_vm1  ;;  %v3465_v7 = vpop.permute.xlu1 %3464 }
 0x43e   : > { %5555 = vmatprep.mubr.msk.f32.mxu1 %vm8574_vm0, %v8046_v62  ;;  %5587 = vmatprep.mubr.msk.f32.mxu0 %vm8559_vm1, %v5684_v15  ;;  %vm8587_vm4 = vmmov %vm8574_vm0  ;;  %v5773_v15 = vmov 1983009808  }
 0x43f   : > { %vm8588_vm9 = vmmov %vm8559_vm1  ;;  %vm8589_vm1 = vcmask 64512  }
 0x440   : > { %v3504_v35 = vsel %vm8589_vm1, %v7956_v28, %v3353_v53 }
 0x441   : > { %5556 = vmatmul.mubr.msk.f32.gmra.mxu1 %vm8575_vm11, %v8055_v56  ;;  %5588 = vmatmul.mubr.msk.f32.gmra.mxu0 %vm8576_vm5, %v5685_v23  ;;  %vm8590_vm11 = vcmask 130048   ;;  %vm8591_vm5 = vmmov %vm8574_vm0  ;;  %v4287_v23 = vunpack.c.l.s4 %v5773_v15 }
 0x442   : > { %5558 = vmatprep.mubr.msk.f32.mxu1 %vm8577_vm6, %v8064_v21  ;;  %5590 = vmatprep.mubr.msk.f32.mxu0 %vm8578_vm7, %v5686_v55  ;;  %v3524_v61 = vsel %vm8590_vm11, %v3504_v35, %v3463_v52  ;;  %vm8592_vm6 = vmmov %vm8574_vm0  ;;  %v4289_v55 = vlaneseq }
 0x443   : > { %vm8593_vm7 = vmmov %vm8589_vm1  ;;  %v4288_v52 = vunpack.c.0.s8 %v4287_v23 }
 0x444   : > { %v3505_v49 = vsel %vm8593_vm7, %v7899_v3, %v3355_v36  ;;  %v8223_v35 = vshrl.u32 %v4289_v55, 7  ;;  %vm4639_vm7 = vcmask 916480  }
 0x445   : > { %5559 = vmatmul.mubr.msk.f32.gmra.mxu1 %vm8579_vm8, %v8073_v39  ;;  %5591 = vmatmul.mubr.msk.f32.gmra.mxu0 %vm8580_vm10, %v5687_v2  ;;  %vm8594_vm8 = vmmov %vm8590_vm11  ;;  %vm4633_vm11 = vcmask 719872  }
 0x446   : > { %5561 = vmatprep.mubr.msk.f32.mxu1 %vm8581_vm14, %v3518_v40  ;;  %5593 = vmatprep.mubr.msk.f32.mxu0 %vm8582_vm3, %v5688_v12  ;;  %v3525_v8 = vsel %vm8594_vm8, %v3505_v49, %v3465_v7  ;;  %vm8595_vm10 = vmmov %vm8574_vm0  ;;  %v8228_v49 = vld [vmem:[%s8440_s8] ss:$0 sm:$0xff]  ;;  %v8239_v55 = vsub.s32 %v4288_v52, %v8223_v35 }
 0x447   : > { %vm8596_vm14 = vmmov %vm8589_vm1  ;;  %vm4631_vm1 = vcmask 654336  }
 0x448   : > { %vm8597_vm3 = vmmov %vm8594_vm8  ;;  %vm4641_vm8 = vcmask 982016  }
 0x449   : > { %5562 = vmatmul.mubr.msk.f32.gmra.mxu1 %vm8583_vm15, %v3519_v14  ;;  %5594 = vmatmul.mubr.msk.f32.gmra.mxu0 %vm8584_vm13, %v5689_v29  ;;  %vm8598_vm15 = vmmov %vm8574_vm0  ;;  %vm4619_vm13 = vcmask 261120  }
 0x44a   : > { %5564 = vmatprep.mubr.msk.f32.mxu1 %vm8585_vm12, %v3520_v38  ;;  %5596 = vmatprep.mubr.msk.f32.mxu0 %vm8586_vm2, %v5690_v1  ;;  %vm4621_vm12 = vcmask 326656   ;;  %vm4623_vm2 = vcmask 392192  }
 0x44d   : > { %5565 = vmatmul.mubr.msk.f32.gmra.mxu1 %vm8587_vm4, %v3521_v57  ;;  %5597 = vmatmul.mubr.msk.f32.gmra.mxu0 %vm8588_vm9, %v5691_v60  ;;  %vm4625_vm4 = vcmask 457728   ;;  %vm4627_vm9 = vcmask 523264  }
 0x44e   : > { %5567 = vmatprep.mubr.msk.f32.mxu1 %vm8574_vm0, %v3522_v59  ;;  %vm4629_vm0 = vcmask 588800  }
 0x451   : > { %5568 = vmatmul.mubr.msk.f32.gmra.mxu1 %vm8591_vm5, %v3523_v31  ;;  %vm4635_vm5 = vcmask 785408  }
 0x452   : > { %5570 = vmatprep.mubr.msk.f32.mxu1 %vm8592_vm6, %v3524_v61  ;;  %vm4637_vm6 = vcmask 850944  }
 0x455   : > { %5571 = vmatmul.mubr.msk.f32.gmra.mxu1 %vm8595_vm10, %v3525_v8 }
 0x4b9   : > { %v5521_v54 = vpop.f32.mrf.mxu0 }
 0x4bb   : > { %v8169_v10 = vpop.f32.mrf.mxu0 }
 0x4c3   : > { %v5524_v62 = vpop.f32.mrf.mxu0  ;;  %v5491_v6 = vpop.f32.mrf.mxu1 }
 0x4c4   : > { %v3804_v12 = vadd.f32 %v5521_v54, %v5491_v6  ;;  %v5774_v6 = vmov 1934713408  }
 0x4c5   : > { %v8171_v28 = vpop.f32.mrf.mxu0  ;;  %v3647_v51 = vpop.f32.mrf.mxu1 }
 0x4c6   : > { %v3799_v54 = vadd.f32 %v8169_v10, %v3647_v51 }
 0x4c7   : > { %v5527_v56 = vpop.f32.mrf.mxu0  ;;  %v5494_v27 = vpop.f32.mrf.mxu1 }
 0x4c8   : > { %v3814_v29 = vadd.f32 %v5524_v62, %v5494_v27  ;;  %v8231_v62 = vunpack.c.l.s4 %v5774_v6 }
 0x4c9   : > { %v8173_v0 = vpop.f32.mrf.mxu0  ;;  %v8175_v47 = vpop.f32.mrf.mxu1 }
 0x4cd   : > { %v5530_v5 = vpop.f32.mrf.mxu0  ;;  %v5497_v3 = vpop.f32.mrf.mxu1 }
 0x4ce   : > { %v3824_v7 = vadd.f32 %v5527_v56, %v5497_v3  ;;  %v3809_v56 = vadd.f32 %v8171_v28, %v8175_v47  ;;  %v4352_v47 = vunpack.c.0.s8 %v8231_v62 }
 0x4cf   : > { %v3828_v21 = vpop.f32.mrf.mxu0  ;;  %v8177_v48 = vpop.f32.mrf.mxu1 }
 0x4d5   : > { %v8179_v11 = vpop.f32.mrf.mxu0  ;;  %v5500_v39 = vpop.f32.mrf.mxu1 }
 0x4d6   : > { %v3834_v1 = vadd.f32 %v5530_v5, %v5500_v39 }
 0x4d7   : > { %v8181_v50 = vpop.f32.mrf.mxu0  ;;  %v3677_v24 = vpop.f32.mrf.mxu1 }
 0x4d8   : > { %v3829_v5 = vadd.f32 %v3828_v21, %v3677_v24  ;;  %v3819_v24 = vadd.f32 %v8173_v0, %v8177_v48 }
 0x4dd   : > { %v8183_v22 = vpop.f32.mrf.mxu0  ;;  %v5503_v34 = vpop.f32.mrf.mxu1 }
 0x4de   : > { %v3844_v10 = vadd.f32 %v8179_v11, %v5503_v34 }
 0x4df   : > { %v8185_v40 = vpop.f32.mrf.mxu0  ;;  %v3687_v30 = vpop.f32.mrf.mxu1 }
 0x4e5   : > { %v8187_v20 = vpop.f32.mrf.mxu0  ;;  %v5506_v14 = vpop.f32.mrf.mxu1 }
 0x4e6   : > { %v3854_v28 = vadd.f32 %v8183_v22, %v5506_v14 }
 0x4e7   : > { %v8189_v25 = vpop.f32.mrf.mxu0  ;;  %v3697_v13 = vpop.f32.mrf.mxu1 }
 0x4ed   : > { %v8191_v9 = vpop.f32.mrf.mxu0  ;;  %v8193_v16 = vpop.f32.mrf.mxu1 }
 0x4ef   : > { %v8195_v38 = vpop.f32.mrf.mxu0  ;;  %v8199_v37 = vpop.f32.mrf.mxu1 }
 0x4f1   : > { %v8197_v45 = vpop.f32.mrf.mxu0 }
 0x4f3   : > { %v8201_v57 = vpop.f32.mrf.mxu0 }
 0x4f5   : > { %v8203_v43 = vpop.f32.mrf.mxu1  ;;  %v8205_v19 = vpop.f32.mrf.mxu0 }
 0x4f7   : > { %v8207_v4 = vpop.f32.mrf.mxu1  ;;  %v8209_v63 = vpop.f32.mrf.mxu0 }
 0x4f9   : > { %v5551_v18 = vpop.f32.mrf.mxu1  ;;  %v8211_v59 = vpop.f32.mrf.mxu0 }
 0x4fa   : > { %v4033_v60 = vadd.f32 %v5551_v18, %v3804_v12  ;;  %v3849_v12 = vadd.f32 %v8185_v40, %v3697_v13  ;;  %v3859_v13 = vadd.f32 %v8189_v25, %v8199_v37 }
 0x4fb   : > { %v3953_v33 = vpop.f32.mrf.mxu1  ;;  %v8213_v46 = vpop.f32.mrf.mxu0 }
 0x4fc   : > { %v4032_v3 = vadd.f32 %v3953_v33, %v3799_v54  ;;  %v4056_v23 = vadd.f32 %v8228_v49, %v4033_v60 }
 0x4fd   : > { %v5554_v26 = vpop.f32.mrf.mxu1  ;;  %v5586_v42 = vpop.f32.mrf.mxu0 }
 0x4fe   : > { %v4035_v8 = vadd.f32 %v5554_v26, %v3814_v29  ;;  %v8254_v60 = vadd.f32 %v8197_v45, %v4056_v23  ;;  %v4055_v0 = vadd.f32 %v8228_v49, %v4032_v3 }
 0x4ff   : > { %v3963_v31 = vpop.f32.mrf.mxu1  ;;  %v8215_v32 = vpop.f32.mrf.mxu0 }
 0x500   : > { %v4058_v51 = vadd.f32 %v8228_v49, %v4035_v8  ;;  %v4034_v29 = vadd.f32 %v3963_v31, %v3809_v56  ;;  %v4269_v25 = vmax.f32 %v8254_v60, 0.0  ;;  %v8276_v37 = vadd.f32 %v8201_v57, %v4055_v0 }
 0x501   : > { %v5557_v41 = vpop.f32.mrf.mxu1  ;;  %v8217_v58 = vpop.f32.mrf.mxu0 }
 0x502   : > { %v4037_v39 = vadd.f32 %v5557_v41, %v3824_v7  ;;  %v3839_v41 = vadd.f32 %v8181_v50, %v3687_v30  ;;  %v8258_v22 = vadd.f32 %v8205_v19, %v4058_v51  ;;  %v3869_v7 = vadd.f32 %v8195_v38, %v8207_v4 }
 0x503   : > { %v3973_v17 = vpop.f32.mrf.mxu1  ;;  %v8219_v44 = vpop.f32.mrf.mxu0 }
 0x504   : > { %v4060_v11 = vadd.f32 %v8228_v49, %v4037_v39  ;;  %v4036_v48 = vadd.f32 %v3973_v17, %v3819_v24  ;;  %v4057_v17 = vadd.f32 %v8228_v49, %v4034_v29  ;;  %v4271_v8 = vmax.f32 %v8258_v22, 0.0 }
 0x505   : > { %v5560_v2 = vpop.f32.mrf.mxu1  ;;  %v8221_v36 = vpop.f32.mrf.mxu0 }
 0x506   : > { %v4039_v15 = vadd.f32 %v5560_v2, %v3834_v1  ;;  %v8269_v52 = vadd.f32 %v8211_v59, %v4060_v11  ;;  %v4254_v57 = vadd.f32 %v8209_v63, %v4057_v17  ;;  %v8323_v17 = vsub.s32 %v4352_v47, %v8223_v35 }
 0x507   : > { %v3983_v53 = vpop.f32.mrf.mxu1  ;;  %v8233_v18 = vpop.f32.mrf.mxu0 }
 0x508   : > { %v4038_v2 = vadd.f32 %v3983_v53, %v3829_v5  ;;  %v4062_v21 = vadd.f32 %v8228_v49, %v4039_v15  ;;  %v3864_v53 = vadd.f32 %v8187_v20, %v8193_v16  ;;  %v3874_v20 = vadd.f32 %v8191_v9, %v8203_v43 }
 0x509   : > { %v5563_v61 = vpop.f32.mrf.mxu1  ;;  %v5595_v1 = vpop.f32.mrf.mxu0  ;;  %v4059_v9 = vadd.f32 %v8228_v49, %v4036_v48  ;;  %v4273_v39 = vmax.f32 %v8269_v52, 0.0 }
 0x50a   : > { %v4041_v34 = vadd.f32 %v5563_v61, %v3844_v10  ;;  %v8260_v30 = vadd.f32 %v5586_v42, %v4062_v21  ;;  %v4061_v40 = vadd.f32 %v8228_v49, %v4038_v2 }
 0x50b   : > { %v3993_v27 = vpop.f32.mrf.mxu1  ;;  %v4233_v61 = vpop.f32.mrf.mxu0  ;;  %v4421_v22 = vcombine.high %v4269_v25, %v4273_v39 }
 0x50c   : > { %v4040_v16 = vadd.f32 %v3993_v27, %v3839_v41  ;;  %v4064_v19 = vadd.f32 %v8228_v49, %v4041_v34  ;;  %v4275_v59 = vmax.f32 %v8260_v30, 0.0  ;;  %v4258_v15 = vadd.f32 %v8215_v32, %v4061_v40 }
 0x50d   : > { %v5566_v26 = vpop.f32.mrf.mxu1  ;;  %v5598_v23 = vpop.f32.mrf.mxu0  ;;  %v4256_v32 = vadd.f32 %v8213_v46, %v4059_v9  ;;  %v4270_v34 = vmax.f32 %v4254_v57, 0.0  ;;  %v4268_v40 = vmax.f32 %v8276_v37, 0.0  ;;  %v4435_v60 = vrot.slane %v4421_v22, %v8239_v55 }
 0x50e   : > { %v4043_v14 = vadd.f32 %v5566_v26, %v3854_v28  ;;  %v4063_v6 = vadd.f32 %v8228_v49, %v4040_v16  ;;  %v8288_v56 = vadd.f32 %v8217_v58, %v4064_v19  ;;  %v4436_v63 = vcombine.low %v4271_v8, %v4275_v59 }
 0x50f   : > { %v4003_v33 = vpop.f32.mrf.mxu1  ;;  %v4274_v2 = vmax.f32 %v4258_v15, 0.0  ;;  %v4243_v11 = vpop.f32.mrf.mxu0 }
 0x510   : > { %v4042_v42 = vadd.f32 %v4003_v33, %v3849_v12  ;;  %v4066_v54 = vadd.f32 %v8228_v49, %v4043_v14  ;;  %v4260_v24 = vadd.f32 %v8219_v44, %v4063_v6  ;;  %v4420_v33 = vcombine.low %v4269_v25, %v4273_v39 }
 0x511   : > { %v5569_v50 = vpop.f32.mrf.mxu1  ;;  %v4277_v12 = vmax.f32 %v8288_v56, 0.0  ;;  %v4444_v0 = vrot.slane %v4436_v63, %v8239_v55  ;;  %v4300_v14 = vcombine.low %v4270_v34, %v4274_v2 }
 0x512   : > { %v4045_v45 = vadd.f32 %v5569_v50, %v3864_v53  ;;  %v4065_v3 = vadd.f32 %v8228_v49, %v4042_v42  ;;  %v8300_v21 = vadd.f32 %v8221_v36, %v4066_v54 }
 0x513   : > { %v4013_v31 = vpop.f32.mrf.mxu1  ;;  %v4308_v9 = vrot.slane %v4300_v14, %v8239_v55 }
 0x514   : > { %v4044_v27 = vadd.f32 %v4013_v31, %v3859_v13  ;;  %v4068_v38 = vadd.f32 %v8228_v49, %v4045_v45  ;;  %v4262_v29 = vadd.f32 %v8233_v18, %v4065_v3  ;;  %v4279_v48 = vmax.f32 %v8300_v21, 0.0 }
 0x515   : > { %v5572_v43 = vpop.f32.mrf.mxu1  ;;  %v4276_v18 = vmax.f32 %v4260_v24, 0.0  ;;  %v4428_v13 = vrot.slane %v4420_v33, %v8239_v55 }
 0x516   : > { %v4047_v4 = vadd.f32 %v5572_v43, %v3874_v20  ;;  %v8292_v26 = vadd.f32 %v5595_v1, %v4068_v38  ;;  %v4067_v10 = vadd.f32 %v8228_v49, %v4044_v27  ;;  %v4272_v1 = vmax.f32 %v4256_v32, 0.0 }
 0x517   : > { %v4023_v5 = vpop.f32.mrf.mxu1  ;;  %v4278_v20 = vmax.f32 %v4262_v29, 0.0  ;;  %v4484_v42 = vcombine.low %v4428_v13, %v4444_v0  ;;  %v4301_v27 = vcombine.high %v4270_v34, %v4274_v2  ;;  %v4485_v62 = vcombine.high %v4428_v13, %v4444_v0 }
 0x518   : > { %v4046_v51 = vadd.f32 %v4023_v5, %v3869_v7  ;;  %v4070_v58 = vadd.f32 %v8228_v49, %v4047_v4  ;;  %v4281_v46 = vmax.f32 %v8292_v26, 0.0  ;;  %v4264_v41 = vadd.f32 %v4233_v61, %v4067_v10 }
 0x519   : > { %v4284_v31 = vcombine.low %v4268_v40, %v4272_v1  ;;  %v4492_v47 = vrot.slane %v4484_v42, %v8323_v17  ;;  %v4285_v57 = vcombine.high %v4268_v40, %v4272_v1  ;;  %v4315_v21 = vrot.slane %v4301_v27, %v8239_v55 }
 0x51a   : > { %v4069_v28 = vadd.f32 %v8228_v49, %v4046_v51  ;;  %v4267_v36 = vadd.f32 %v5598_v23, %v4070_v58  ;;  %v4280_v53 = vmax.f32 %v4264_v41, 0.0  ;;  %v4452_v49 = vcombine.low %v4277_v12, %v4281_v46 }
 0x51b   : > { %v4292_v6 = vrot.slane %v4284_v31, %v8239_v55  ;;  %v4499_v24 = vrot.slane %v4485_v62, %v8323_v17  ;;  %v4299_v33 = vrot.slane %v4285_v57, %v8239_v55 }
 0x51c   : > { %v4266_v44 = vadd.f32 %v4243_v11, %v4069_v28  ;;  %v4283_v50 = vmax.f32 %v4267_v36, 0.0  ;;  %v4316_v19 = vcombine.low %v4276_v18, %v4280_v53  ;;  %v4460_v61 = vrot.slane %v4452_v49, %v8239_v55 }
 0x51d   : > { %v4317_v4 = vcombine.high %v4276_v18, %v4280_v53  ;;  %v4348_v3 = vcombine.low %v4292_v6, %v4308_v9  ;;  %v4349_v41 = vcombine.high %v4292_v6, %v4308_v9  ;;  %v4364_v40 = vcombine.low %v4299_v33, %v4315_v21 }
 0x51e   : > { %v4468_v16 = vcombine.low %v4279_v48, %v4283_v50  ;;  %v4282_v45 = vmax.f32 %v4266_v44, 0.0  ;;  %v4324_v38 = vrot.slane %v4316_v19, %v8239_v55  ;;  %v4469_v36 = vcombine.high %v4279_v48, %v4283_v50 }
 0x51f   : > { %v4331_v28 = vrot.slane %v4317_v4, %v8239_v55  ;;  %v8343_v29 = vrot.slane %v4348_v3, %v8323_v17  ;;  %v4437_v44 = vcombine.high %v4271_v8, %v4275_v59  ;;  %v4363_v49 = vrot.slane %v4349_v41, %v8323_v17 }
 0x520   : > { %v4476_v7 = vrot.slane %v4468_v16, %v8239_v55  ;;  %v4332_v37 = vcombine.low %v4278_v20, %v4282_v45  ;;  %v4333_v43 = vcombine.high %v4278_v20, %v4282_v45  ;;  %v4453_v48 = vcombine.high %v4277_v12, %v4281_v46 }
 0x521   : > { %v4483_v30 = vrot.slane %v4469_v36, %v8239_v55  ;;  %v4451_v56 = vrot.slane %v4437_v44, %v8239_v55  ;;  %v4365_v46 = vcombine.high %v4299_v33, %v4315_v21  ;;  %v4372_v12 = vrot.slane %v4364_v40, %v8323_v17 }
 0x522   : > { %v4516_v15 = vcombine.low %v4460_v61, %v4476_v7  ;;  %v4517_v54 = vcombine.high %v4460_v61, %v4476_v7  ;;  %v4340_v35 = vrot.slane %v4332_v37, %v8239_v55  ;;  %v4347_v23 = vrot.slane %v4333_v43, %v8239_v55 }
 0x523   : > { %v4467_v14 = vrot.slane %v4453_v48, %v8239_v55  ;;  %v4500_v13 = vcombine.low %v4435_v60, %v4451_v56  ;;  %v4379_v20 = vrot.slane %v4365_v46, %v8323_v17  ;;  %v4501_v42 = vcombine.high %v4435_v60, %v4451_v56 }
 0x524   : > { %v4524_v5 = vrot.slane %v4516_v15, %v8323_v17  ;;  %v4380_v32 = vcombine.low %v4324_v38, %v4340_v35  ;;  %v4531_v10 = vrot.slane %v4517_v54, %v8323_v17  ;;  %v4381_v51 = vcombine.high %v4324_v38, %v4340_v35 }
 0x525   : > { %v4396_v34 = vcombine.low %v4331_v28, %v4347_v23  ;;  %v4397_v8 = vcombine.high %v4331_v28, %v4347_v23  ;;  %v4532_v52 = vcombine.low %v4467_v14, %v4483_v30  ;;  %v4533_v16 = vcombine.high %v4467_v14, %v4483_v30 }
 0x526   : > { %v4549_v63 = vcombine.high %v4492_v47, %v4524_v5  ;;  %v4548_v2 = vcombine.low %v4492_v47, %v4524_v5  ;;  %v8337_v58 = vrot.slane %v4380_v32, %v8323_v17  ;;  %v4395_v11 = vrot.slane %v4381_v51, %v8323_v17 }
 0x527   : > { %v4551_v1 = vcombine.high %v4499_v24, %v4531_v10  ;;  %v4550_v53 = vcombine.low %v4499_v24, %v4531_v10  ;;  %v4404_v59 = vrot.slane %v4396_v34, %v8323_v17  ;;  %v4411_v25 = vrot.slane %v4397_v8, %v8323_v17 }
 0x528   : > { %4589 = vrot.lane.b32.xlu0 %v4549_v63, %s5775_s27  ;;  %4585 = vrot.lane.b32.xlu1 %v4548_v2, %s5776_s11  ;;  %v4412_v0 = vcombine.low %v8343_v29, %v8337_v58  ;;  %v4414_v50 = vcombine.low %v4363_v49, %v4395_v11  ;;  %v4413_v26 = vcombine.high %v8343_v29, %v8337_v58  ;;  %s5785_s27 = smov 112   ;;  %s5786_s11 = smov 104  }
 0x529   : > { %v4416_v39 = vcombine.low %v4372_v12, %v4404_v59  ;;  %v4415_v18 = vcombine.high %v4363_v49, %v4395_v11  ;;  %v4540_v45 = vrot.slane %v4532_v52, %v8323_v17  ;;  %v4418_v31 = vcombine.low %v4379_v20, %v4411_v25 }
 0x52a   : > { %v4417_v19 = vcombine.high %v4372_v12, %v4404_v59  ;;  %v4508_v55 = vrot.slane %v4500_v13, %v8323_v17  ;;  %v4547_v61 = vrot.slane %v4533_v16, %v8323_v17  ;;  %v4419_v37 = vcombine.high %v4379_v20, %v4411_v25 }
 0x52b   : > { %v4515_v9 = vrot.slane %v4501_v42, %v8323_v17 }
 0x52c   : > { %4597 = vrot.lane.b32.xlu0 %v4551_v1, %s5777_s28  ;;  %4593 = vrot.lane.b32.xlu1 %v4550_v53, %s5778_s30  ;;  %v4552_v7 = vcombine.low %v4508_v55, %v4540_v45  ;;  %v4553_v15 = vcombine.high %v4508_v55, %v4540_v45  ;;  %s5787_s28 = smov 120   ;;  %s463_s30 = sand.u32 1, %s5752_s14  }
 0x52d   : > { %v4554_v43 = vcombine.low %v4515_v9, %v4547_v61  ;;  %v4555_v54 = vcombine.high %v4515_v9, %v4547_v61 }
 0x530   : > { %4561 = vrot.lane.b32.xlu1 %v4414_v50, %s5772_s22  ;;  %4557 = vrot.lane.b32.xlu0 %v4413_v26, %s5771_s12  ;;  %s5781_s12 = smov 48   ;;  %s5782_s22 = smov 40  }
 0x534   : > { %4569 = vrot.lane.b32.xlu1 %v4416_v39, %s5779_s29  ;;  %4565 = vrot.lane.b32.xlu0 %v4415_v18, %s5780_s24  ;;  %s4787_s29 = sshll.u32 %s463_s30, 3  ;;  %s5028_s24 = sshll.u32 %s5760_s16, 7 }
 0x538   : > { %4577 = vrot.lane.b32.xlu1 %v4418_v31, %s5781_s12  ;;  %4573 = vrot.lane.b32.xlu0 %v4417_v19, %s5782_s22  ;;  %s465_s12 = scalar_lea.vmem [#allocation2], %s4787_s29 }
 0x539   : > { %s4660_s22 = sshll.u32 %s465_s12, 4  ;;  %s4661_s22 = int_to_ptr.vmem [resolvable:$true] %s4660_s22 }
 0x53a   : > { %s5692_s16 = scalar_lea.vmem %s4661_s22, 128 }
 0x53b   : > { %p5693_p2 = scmp.ne.s32.totalorder %s4661_s22, %s5692_s16 }
 0x53c   : > { %4601 = vrot.lane.b32.xlu1 %v4552_v7, %s5783_s20  ;;  %4581 = vrot.lane.b32.xlu0 %v4419_v37, %s5784_s19 }
 0x53d   : > { %p5694_p3 = pnand %p5693_p2, %p5884_p4 }
 0x53f   : > { %p5695_p5 = pneg %p5694_p3 }
 0x540   : > { %4609 = vrot.lane.b32.xlu1 %v4554_v43, %s5785_s27  ;;  %4605 = vrot.lane.b32.xlu0 %v4553_v15, %s5786_s11  ;;  %s8390_s27 = scalar_lea.hbm %s8442_s10, %s5028_s24  ;;  %s4645_s11 = scalar_lea.sflag [#allocation3], %s463_s30 }
 0x544   : > { %4613 = vrot.lane.b32.xlu0 %v4555_v54, %s5787_s28  ;;  %s5788_s28 = smov [#allocation2]  }
 0x545   : > { %s5696_s29 = sshll.u32 %s5788_s28, 4  ;;  %s5697_s29 = int_to_ptr.vmem [resolvable:$false] %s5696_s29 }
 0x546   : > { %s5698_s0 = scalar_lea.vmem %s5697_s29, 256  ;;  %p5699_p6 = scmp.lt.s32.totalorder %s4661_s22, %s5697_s29 }
 0x547   : > { %p5700_p7 = scmp.lt.s32.totalorder %s5698_s0, %s5692_s16 }
 0x549   : > { %p5701_p9 = por %p5700_p7, %p5699_p6 }
 0x54b   : > { %p5702_p10 = pnand %p5701_p9, %p5695_p5 }
 0x59a   : > { %v4590_v6 = vpop.permute.xlu0 %4589  ;;  %v4586_v27 = vpop.permute.xlu1 %4585 }
 0x59e   : > { %v4598_v38 = vpop.permute.xlu0 %4597  ;;  %v4594_v35 = vpop.permute.xlu1 %4593 }
 0x5a2   : > { %v4562_v62 = vpop.permute.xlu1 %4561  ;;  %v4558_v17 = vpop.permute.xlu0 %4557 }
 0x5a3   : > { %v4616_v47 = vsel %vm8596_vm14, %v4412_v0, %v4558_v17 }
 0x5a4   : > { %v4617_v57 = vsel %vm8597_vm3, %v4616_v47, %v4562_v62 }
 0x5a6   : > { %v4570_v4 = vpop.permute.xlu1 %4569  ;;  %v4566_v5 = vpop.permute.xlu0 %4565 }
 0x5a7   : > { %v4618_v3 = vsel %vm8598_vm15, %v4617_v57, %v4566_v5 }
 0x5a8   : > { %v4620_v10 = vsel %vm4619_vm13, %v4618_v3, %v4570_v4 }
 0x5aa   : > { %v4578_v23 = vpop.permute.xlu1 %4577  ;;  %v4574_v32 = vpop.permute.xlu0 %4573 }
 0x5ab   : > { %v4622_v51 = vsel %vm4621_vm12, %v4620_v10, %v4574_v32 }
 0x5ac   : > { %v4624_v2 = vsel %vm4623_vm2, %v4622_v51, %v4578_v23 }
 0x5ae   : > { %v4582_v63 = vpop.permute.xlu0 %4581  ;;  %v4602_v21 = vpop.permute.xlu1 %4601 }
 0x5af   : > { %v4626_v58 = vsel %vm4625_vm4, %v4624_v2, %v4582_v63 }
 0x5b0   : > { %v4628_v24 = vsel %vm4627_vm9, %v4626_v58, %v4586_v27 }
 0x5b1   : > { %v4630_v41 = vsel %vm4629_vm0, %v4628_v24, %v4590_v6 }
 0x5b2   : > { %v4606_v28 = vpop.permute.xlu0 %4605  ;;  %v4632_v33 = vsel %vm4631_vm1, %v4630_v41, %v4594_v35  ;;  %v4610_v11 = vpop.permute.xlu1 %4609 }
 0x5b3   : > { %v4634_v29 = vsel %vm4633_vm11, %v4632_v33, %v4598_v38 }
 0x5b4   : > { %v4636_v36 = vsel %vm4635_vm5, %v4634_v29, %v4602_v21 }
 0x5b5   : > { %v4638_v34 = vsel %vm4637_vm6, %v4636_v36, %v4606_v28 }
 0x5b6   : > { %v4614_v1 = vpop.permute.xlu0 %4613  ;;  %v4640_v53 = vsel %vm4639_vm7, %v4638_v34, %v4610_v11 }
 0x5b7   : > { %v4642_v44 = vsel %vm4641_vm8, %v4640_v53, %v4614_v1 }
 0x5b8   : > { %4643 = vst [vmem:[%s465_s12] sm:$0xff] %v4642_v44 }
 0x5b9   : > { %5705 = shalt.err (!%p5702_p10)
}
 0x5ba   : > { %s5706_s24 = scalar_lea.hbm %s8390_s27, 128  ;;  %s5710_s20 = scalar_lea.hbm %s8442_s10, 512 }
 0x5bb   : > { %p5707_p11 = scmp.ne.s32.totalorder %s8390_s27, %s5706_s24  ;;  %p5711_p0 = scmp.lt.s32.totalorder %s8390_s27, %s8442_s10 }
 0x5bc   : > { %p5712_p1 = scmp.lt.s32.totalorder %s5710_s20, %s5706_s24 }
 0x5bd   : > { %p5708_p12 = pnand %p5707_p11, %p5884_p4 }
 0x5be   : > { %p5713_p2 = por %p5712_p1, %p5711_p0 }
 0x5bf   : > { %p5709_p13 = pneg %p5708_p12 }
 0x5c1   : > { %p5714_p3 = pnand %p5713_p2, %p5709_p13 }
 0x5c3   : > { %5717 = shalt.err (!%p5714_p3)
}
 0x5c4   : > { %5603 = dma.vmem_to_hbm [thread:$0]  (%p5884_p4), %s4661_s22, 128, %s8390_s27, %s4645_s11  }
 0x5c5 PF: > { %p5609_p5 = scmp.ge.s32.totalorder %s5768_s18, 2  ;;  %s4672_s0 = sand.u32 1, %s5748_s13  }
 0x5c6   : > { %s4673_s16 = scalar_lea.sflag [#allocation3], %s4672_s0 }
 0x5c7   : > { %p5606_p6 = pnand %p5609_p5, %p5891_p8 }
 0x5c9   : > { %p5607_p7 = pneg %p5606_p6 }
 0x5cb   : > { %5743 = dma.done.wait (%p5607_p7), %s4673_s16, 128  }
 0x5cc   : > { %5745 = vsyncadd (%p5607_p7), %s4673_s16, 4294967168  ;;  %s23_s18 = sadd.s32 1, %s5768_s18   ;;  %s8599_s13 = smov %s5752_s14 }
 0x5cd   : > { %p20_p9 = scmp.ge.s32.totalorder %s23_s18, 6   ;;  %s8600_s14 = smov %s5756_s15 }
 0x5ce   : > { %s8601_s15 = smov %s5897_s26  ;;  %s8602_s16 = smov %s5764_s17 }
 0x5cf   : > { %s8603_s17 = smov %s8605_s21  ;;  %22 = sbr.rel (!%p20_p9) target bundleno = 6 (0x6), region = 108 }
 0x5d4   :  { %4678 = vsyncpa [#allocation3], 1 }
 0x5d5   :  { %4680 = vsyncpa [#allocation3 + $0x1], 1 }

</bundles_post_ra>
